<compile_context>
chip_gen: v7x
topology: tpu7x:2x2x1
jax: 0.10.0
libtpu: 0.0.40
codegen_flags: <defaults>
</compile_context>

<pallas_src>
import math

import jax
import jax.numpy as jnp
import numpy as np
from jax.experimental import pallas as pl
from jax.experimental.pallas import tpu as pltpu

# ---------------- small synthetic configuration ----------------
IMAGE_SIZE = 64
PATCH_SIZE = 16
GRID_W = IMAGE_SIZE // PATCH_SIZE          # 4
L = GRID_W * GRID_W + 1                    # 17 tokens (CLS + patches)
D = 32                                     # embed dim
N_HEAD = 2
HEAD_DIM = D // N_HEAD                     # 16
HIDDEN = 4 * D                             # 128
NUM_LAYERS = 2
NUM_CLASSES = 10
C_PAD = 128                                # lane-padded class count
N = 2                                      # number of images / human-object pairs
LN_EPS = 1e-5
VROWS = 4 * NUM_LAYERS + 1                 # rows in the packed vector block


# ---------------- Pallas kernel (single fused invocation) ----------------
def hoi_head_kernel(x_ref, bias_ref, prior_ref, wmat_ref, wmlp_ref, vec_ref, out_ref):
    f32 = jnp.float32

    def layer_norm(h, g, b):
        mu = jnp.mean(h, axis=-1, keepdims=True)
        d = h - mu
        var = jnp.mean(d * d, axis=-1, keepdims=True)
        return d * jax.lax.rsqrt(var + LN_EPS) * g + b

    wmat = wmat_ref[...]                       # (NL+1, D, 128): [Wq*s|Wk|Wv|Wo], cls slab
    wmlp = wmlp_ref[...]                       # (NL, 2, D, HIDDEN): [W_fc, W_proj^T]
    vec = vec_ref[...]                         # (VROWS, 128): LN params + biases

    xs = [x_ref[n].astype(f32) for n in range(N)]        # per-image (L, D)
    biases = [bias_ref[n] for n in range(N)]              # per-image (L, L) additive

    for l in range(NUM_LAYERS):                            # unrolled layers
        r = 4 * l
        w_qkvo = wmat[l]                                   # (D, 128)
        w_out = w_qkvo[:, 3 * D:4 * D]                     # (D, D)
        ln_row = vec[r:r + 1]                              # [ln1_g|ln1_b|ln2_g|ln2_b]
        b_qkvo = vec[r + 1:r + 2]                          # [bq*s|bk|bv|b_out]
        b_out = b_qkvo[:, 3 * D:4 * D]
        b_fc = vec[r + 2:r + 3]                            # (1, HIDDEN)
        b_pr = vec[r + 3:r + 4, 0:D]                       # (1, D)
        w_fc = wmlp[l, 0]                                  # (D, HIDDEN)
        w_prT = wmlp[l, 1]                                 # (D, HIDDEN) = W_proj^T

        for n in range(N):                                 # unrolled images, shared weights
            x = xs[n]
            # ---- pre-LN multi-head self-attention ----
            h = layer_norm(x, ln_row[:, 0:D], ln_row[:, D:2 * D])
            # one wide 128-lane-output matmul: lanes [0:96]=QKV, [96:128] unused junk
            proj = jnp.dot(h, w_qkvo, preferred_element_type=f32) + b_qkvo   # (L, 128)
            heads = []
            for hd in range(N_HEAD):
                q = proj[:, hd * HEAD_DIM:(hd + 1) * HEAD_DIM]
                k = proj[:, D + hd * HEAD_DIM:D + (hd + 1) * HEAD_DIM]
                v = proj[:, 2 * D + hd * HEAD_DIM:2 * D + (hd + 1) * HEAD_DIM]
                s = jnp.einsum('qe,ke->qk', q, k,
                               preferred_element_type=f32) + biases[n]       # (L, L)
                # no max-subtraction: unmasked scores are tiny (LN'd, scale folded),
                # masked entries carry -1e9 and underflow exp() to exactly 0.
                p = jnp.exp(s)
                p = p * pl.reciprocal(jnp.sum(p, axis=-1, keepdims=True), approx=True)
                heads.append(jnp.dot(p, v, preferred_element_type=f32))      # (L, dh)
            o_cat = jnp.concatenate(heads, axis=-1)                          # (L, D)
            # single out-proj matmul; contraction over D sums the heads
            x = x + jnp.dot(o_cat, w_out, preferred_element_type=f32) + b_out

            # ---- MLP (fc -> GELU -> proj) ----
            h = layer_norm(x, ln_row[:, 2 * D:3 * D], ln_row[:, 3 * D:4 * D])
            h = jnp.dot(h, w_fc, preferred_element_type=f32) + b_fc          # (L, HIDDEN)
            h = jax.nn.gelu(h, approximate=True)                             # tanh GELU (EUP)
            x = x + jnp.einsum('lf,df->ld', h, w_prT,
                               preferred_element_type=f32) + b_pr
            xs[n] = x

    # ---- CLS tokens: ln_post + L2 normalize + zero-shot classifier ----
    cls = jnp.concatenate([xs[n][0:1, :] for n in range(N)], axis=0)         # (N, D)
    lnp = vec[4 * NUM_LAYERS:4 * NUM_LAYERS + 1]
    cls = layer_norm(cls, lnp[:, 0:D], lnp[:, D:2 * D])
    cls = cls * jax.lax.rsqrt(jnp.sum(cls * cls, axis=-1, keepdims=True))
    # classifier slab is pre-normalized, pre-scaled by exp(logit_scale), zero-padded
    logits = jnp.dot(cls, wmat[NUM_LAYERS], preferred_element_type=f32)      # (N, 128)
    out_ref[...] = jax.nn.sigmoid(logits) * prior_ref[...]                   # lane-dense store


# ---------------- host-side weight packing (constant folding) ----------------
def prepare_kernel_inputs(features, mask01, prior, params):
    NL = NUM_LAYERS
    f32 = jnp.float32
    scale = 1.0 / math.sqrt(HEAD_DIM)

    # fold 1/sqrt(head_dim) into the Q columns of W_qkv and b_qkv
    qscale = jnp.concatenate([jnp.full((D,), scale, f32), jnp.ones((2 * D,), f32)])
    w_qkv = params["w_qkv"] * qscale                                   # (NL, D, 3D)
    b_qkv = params["b_qkv"] * qscale                                   # (NL, 3D)

    # packed per-layer matrices: [Wq*s | Wk | Wv | Wo] -> (NL, D, 4D=128)
    w_attn = jnp.concatenate([w_qkv, params["w_out"]], axis=-1)

    # zero-shot classifier slab: normalize + fold exp(logit_scale), pad classes to 128
    txt = params["txt"]
    txt = txt / jnp.linalg.norm(txt, axis=-1, keepdims=True)
    wcls = jnp.exp(params["logit_scale"][0, 0]) * txt                   # (C, D)
    wcls_slab = jnp.zeros((D, C_PAD), f32).at[:, :NUM_CLASSES].set(wcls.T)
    wmat = jnp.concatenate([w_attn, wcls_slab[None]], axis=0)           # (NL+1, D, 128)

    # packed MLP weights: [:,0]=W_fc (D,H), [:,1]=W_proj^T (D,H)
    wmlp = jnp.stack([params["w_fc"], jnp.swapaxes(params["w_proj"], 1, 2)], axis=1)

    # packed LN params and bias vectors -> (VROWS, 128)
    rows = []
    for l in range(NL):
        rows.append(jnp.concatenate([params["ln1_g"][l], params["ln1_b"][l],
                                     params["ln2_g"][l], params["ln2_b"][l]]))
        rows.append(jnp.concatenate([b_qkv[l], params["b_out"][l]]))
        rows.append(params["b_fc"][l])
        rows.append(jnp.concatenate([params["b_proj"][l], jnp.zeros((3 * D,), f32)]))
    rows.append(jnp.concatenate([params["lnp_g"][0], params["lnp_b"][0],
                                 jnp.zeros((2 * D,), f32)]))
    vec = jnp.stack(rows, axis=0).astype(f32)                           # (VROWS, 128)

    attn_bias = mask01.astype(f32) * (-1e9)                             # (N, L, L) additive
    prior_prod = prior[:, 0, :] * prior[:, 1, :]                        # (N, C)
    prior_pad = jnp.zeros((N, C_PAD), f32).at[:, :NUM_CLASSES].set(prior_prod)

    return [features, attn_bias, prior_pad, wmat, wmlp, vec]


def hoi_head_forward(features, mask01, prior, params):
    inputs = prepare_kernel_inputs(features, mask01, prior, params)
    vmem = pl.BlockSpec(memory_space=pltpu.MemorySpace.VMEM)            # whole array in VMEM
    padded = pl.pallas_call(                                            # gridless: one step,
        hoi_head_kernel,                                                # no double buffering
        out_shape=jax.ShapeDtypeStruct((N, C_PAD), jnp.float32),
        in_specs=[vmem] * len(inputs),
        out_specs=vmem,
    )(*inputs)
    return padded[:, :NUM_CLASSES]                                      # (N, C)


# ---------------- host-side glue (mask building / postprocess) ----------------
# TODO(synk): mask construction from detection boxes is data-dependent Python over
# dicts; kept on host (setup, not the compute hot path). Heads share the same mask,
# exactly as in the PyTorch module (mask repeated n_head times).
def build_attention_masks(detections):
    masks = np.zeros((len(detections), L, L), dtype=np.float32)         # 1.0 == masked
    scale = GRID_W / IMAGE_SIZE
    for i, det in enumerate(detections):
        grid_mask = np.ones((GRID_W, GRID_W), np.float32)
        boxes = np.stack([det["box_h"], det["box_o"]], axis=0) * scale
        for box in boxes:
            xmin = max(0, int(np.floor(box[0])))
            ymin = max(0, int(np.floor(box[1])))
            xmax = min(GRID_W, int(np.ceil(box[2])))
            ymax = min(GRID_W, int(np.ceil(box[3])))
            grid_mask[ymin:ymax, xmin:xmax] = 0.0
        masks[i, 0, 1:] = grid_mask.reshape(-1)
    return masks


def postprocess(detections, scores):
    results = []
    for det, sc in zip(detections, scores):
        pred = jnp.arange(sc.shape[0])
        results.append(dict(boxes_h=det["box_h"], boxes_o=det["box_o"],
                            index=jnp.zeros(pred.shape[0]),
                            prediction=pred, scores=sc[pred]))
    return results


# ---------------- pure-JAX reference (for correctness check) ----------------
def reference_forward(features, mask01, prior, params):
    def layer_norm(h, g, b):
        mu = jnp.mean(h, -1, keepdims=True)
        var = jnp.mean((h - mu) ** 2, -1, keepdims=True)
        return (h - mu) / jnp.sqrt(var + LN_EPS) * g + b

    outs = []
    for i in range(features.shape[0]):
        t = features[i]
        for l in range(NUM_LAYERS):
            h = layer_norm(t, params["ln1_g"][l], params["ln1_b"][l])
            qkv = h @ params["w_qkv"][l] + params["b_qkv"][l]
            q, k, v = qkv[:, :D], qkv[:, D:2 * D], qkv[:, 2 * D:]
            heads = []
            for hd in range(N_HEAD):
                qh = q[:, hd * HEAD_DIM:(hd + 1) * HEAD_DIM]
                kh = k[:, hd * HEAD_DIM:(hd + 1) * HEAD_DIM]
                vh = v[:, hd * HEAD_DIM:(hd + 1) * HEAD_DIM]
                s = qh @ kh.T / math.sqrt(HEAD_DIM)
                s = jnp.where(mask01[i] > 0.5, -1e9, s)
                heads.append(jax.nn.softmax(s, axis=-1) @ vh)
            t = t + jnp.concatenate(heads, -1) @ params["w_out"][l] + params["b_out"][l]
            h = layer_norm(t, params["ln2_g"][l], params["ln2_b"][l])
            h = jax.nn.gelu(h @ params["w_fc"][l] + params["b_fc"][l], approximate=True)
            t = t + h @ params["w_proj"][l] + params["b_proj"][l]
        cls = layer_norm(t[0], params["lnp_g"][0], params["lnp_b"][0])
        cls = cls / jnp.linalg.norm(cls)
        txt = params["txt"] / jnp.linalg.norm(params["txt"], axis=-1, keepdims=True)
        logits = jnp.exp(params["logit_scale"][0, 0]) * (cls @ txt.T)
        outs.append(jax.nn.sigmoid(logits) * jnp.prod(prior[i], axis=0))
    return jnp.stack(outs)


# ---------------- deterministic parameter init ----------------
def init_params(key):
    ks = jax.random.split(key, 10)

    def nrm(k, shape, scale=0.05):
        return jax.random.normal(k, shape, dtype=jnp.float32) * scale

    return {
        "ln1_g": jnp.ones((NUM_LAYERS, D), jnp.float32),
        "ln1_b": jnp.zeros((NUM_LAYERS, D), jnp.float32),
        "w_qkv": nrm(ks[0], (NUM_LAYERS, D, 3 * D)),
        "b_qkv": nrm(ks[1], (NUM_LAYERS, 3 * D), 0.02),
        "w_out": nrm(ks[2], (NUM_LAYERS, D, D)),
        "b_out": nrm(ks[3], (NUM_LAYERS, D), 0.02),
        "ln2_g": jnp.ones((NUM_LAYERS, D), jnp.float32),
        "ln2_b": jnp.zeros((NUM_LAYERS, D), jnp.float32),
        "w_fc": nrm(ks[4], (NUM_LAYERS, D, HIDDEN)),
        "b_fc": nrm(ks[5], (NUM_LAYERS, HIDDEN), 0.02),
        "w_proj": nrm(ks[6], (NUM_LAYERS, HIDDEN, D)),
        "b_proj": nrm(ks[7], (NUM_LAYERS, D), 0.02),
        "lnp_g": jnp.ones((1, D), jnp.float32),
        "lnp_b": jnp.zeros((1, D), jnp.float32),
        "txt": nrm(ks[8], (NUM_CLASSES, D), 1.0),
        "logit_scale": jnp.full((1, 1), math.log(10.0), jnp.float32),
    }


if __name__ == "__main__":
    key = jax.random.PRNGKey(0)
    k_feat, k_prior, k_params = jax.random.split(key, 3)

    features = jax.random.normal(k_feat, (N, L, D), dtype=jnp.float32) * 0.5
    detections = [
        {"box_h": np.array([4., 4., 40., 60.], np.float32),
         "box_o": np.array([20., 10., 60., 50.], np.float32),
         "prior": jax.random.uniform(jax.random.fold_in(k_prior, 0),
                                     (2, NUM_CLASSES), minval=0.3, maxval=1.0)},
        {"box_h": np.array([0., 0., 32., 32.], np.float32),
         "box_o": np.array([30., 30., 64., 64.], np.float32),
         "prior": jax.random.uniform(jax.random.fold_in(k_prior, 1),
                                     (2, NUM_CLASSES), minval=0.3, maxval=1.0)},
    ]
    params = init_params(k_params)

    mask01 = jnp.asarray(build_attention_masks(detections))                 # (N, L, L)
    prior = jnp.stack([d["prior"] for d in detections]).astype(jnp.float32)  # (N, 2, C)

    scores = hoi_head_forward(features, mask01, prior, params)
    scores = jax.block_until_ready(scores)

    ref = reference_forward(features, mask01, prior, params)
    np.testing.assert_allclose(np.asarray(scores), np.asarray(ref), rtol=1e-2, atol=5e-3)

    results = postprocess(detections, scores)
    assert len(results) == N and results[0]["scores"].shape == (NUM_CLASSES,)
    print("KERNEL_OK")
</pallas_src>

<mosaic_0001>
module attributes {stable_mosaic.version = 11 : i64} {
  func.func @hoi_head_kernel(%arg0: memref<2x17x32xf32, #tpu.memory_space<vmem>>, %arg1: memref<2x17x17xf32, #tpu.memory_space<vmem>>, %arg2: memref<2x128xf32, #tpu.memory_space<vmem>>, %arg3: memref<3x32x128xf32, #tpu.memory_space<vmem>>, %arg4: memref<2x2x32x128xf32, #tpu.memory_space<vmem>>, %arg5: memref<9x128xf32, #tpu.memory_space<vmem>>, %arg6: memref<2x128xf32, #tpu.memory_space<vmem>>) attributes {dimension_semantics = [], scalar_prefetch = 0 : i64, scratch_operands = 0 : i64, tpu.core_type = #tpu.core_type<tc>} {
    %c0 = arith.constant 0 : index
    %c0_0 = arith.constant 0 : index
    %c0_1 = arith.constant 0 : index
    %0 = vector.load %arg3[%c0, %c0_0, %c0_1] : memref<3x32x128xf32, #tpu.memory_space<vmem>>, vector<3x32x128xf32>
    %c0_2 = arith.constant 0 : index
    %c0_3 = arith.constant 0 : index
    %c0_4 = arith.constant 0 : index
    %c0_5 = arith.constant 0 : index
    %1 = vector.load %arg4[%c0_2, %c0_3, %c0_4, %c0_5] : memref<2x2x32x128xf32, #tpu.memory_space<vmem>>, vector<2x2x32x128xf32>
    %c0_6 = arith.constant 0 : index
    %c0_7 = arith.constant 0 : index
    %2 = vector.load %arg5[%c0_6, %c0_7] : memref<9x128xf32, #tpu.memory_space<vmem>>, vector<9x128xf32>
    %c0_8 = arith.constant 0 : index
    %c0_9 = arith.constant 0 : index
    %c0_10 = arith.constant 0 : index
    %3 = vector.load %arg0[%c0_8, %c0_9, %c0_10] : memref<2x17x32xf32, #tpu.memory_space<vmem>>, vector<1x17x32xf32>
    %4 = vector.shape_cast %3 : vector<1x17x32xf32> to vector<17x32xf32>
    %c1 = arith.constant 1 : index
    %c0_11 = arith.constant 0 : index
    %c0_12 = arith.constant 0 : index
    %5 = vector.load %arg0[%c1, %c0_11, %c0_12] : memref<2x17x32xf32, #tpu.memory_space<vmem>>, vector<1x17x32xf32>
    %6 = vector.shape_cast %5 : vector<1x17x32xf32> to vector<17x32xf32>
    %c0_13 = arith.constant 0 : index
    %c0_14 = arith.constant 0 : index
    %c0_15 = arith.constant 0 : index
    %7 = vector.load %arg1[%c0_13, %c0_14, %c0_15] : memref<2x17x17xf32, #tpu.memory_space<vmem>>, vector<1x17x17xf32>
    %8 = vector.shape_cast %7 : vector<1x17x17xf32> to vector<17x17xf32>
    %c1_16 = arith.constant 1 : index
    %c0_17 = arith.constant 0 : index
    %c0_18 = arith.constant 0 : index
    %9 = vector.load %arg1[%c1_16, %c0_17, %c0_18] : memref<2x17x17xf32, #tpu.memory_space<vmem>>, vector<1x17x17xf32>
    %10 = vector.shape_cast %9 : vector<1x17x17xf32> to vector<17x17xf32>
    %11 = vector.extract_strided_slice %0 {offsets = [0, 0, 0], sizes = [1, 32, 128], strides = [1, 1, 1]} : vector<3x32x128xf32> to vector<1x32x128xf32>
    %12 = vector.shape_cast %11 : vector<1x32x128xf32> to vector<32x128xf32>
    %13 = vector.extract_strided_slice %12 {offsets = [0, 96], sizes = [32, 32], strides = [1, 1]} : vector<32x128xf32> to vector<32x32xf32>
    %14 = vector.extract_strided_slice %2 {offsets = [0, 0], sizes = [1, 128], strides = [1, 1]} : vector<9x128xf32> to vector<1x128xf32>
    %15 = vector.extract_strided_slice %2 {offsets = [1, 0], sizes = [1, 128], strides = [1, 1]} : vector<9x128xf32> to vector<1x128xf32>
    %16 = vector.extract_strided_slice %15 {offsets = [0, 96], sizes = [1, 32], strides = [1, 1]} : vector<1x128xf32> to vector<1x32xf32>
    %17 = vector.extract_strided_slice %2 {offsets = [2, 0], sizes = [1, 128], strides = [1, 1]} : vector<9x128xf32> to vector<1x128xf32>
    %18 = vector.extract_strided_slice %2 {offsets = [3, 0], sizes = [1, 32], strides = [1, 1]} : vector<9x128xf32> to vector<1x32xf32>
    %19 = vector.extract_strided_slice %1 {offsets = [0, 0, 0, 0], sizes = [1, 1, 32, 128], strides = [1, 1, 1, 1]} : vector<2x2x32x128xf32> to vector<1x1x32x128xf32>
    %20 = vector.shape_cast %19 : vector<1x1x32x128xf32> to vector<32x128xf32>
    %21 = vector.extract_strided_slice %1 {offsets = [0, 1, 0, 0], sizes = [1, 1, 32, 128], strides = [1, 1, 1, 1]} : vector<2x2x32x128xf32> to vector<1x1x32x128xf32>
    %22 = vector.shape_cast %21 : vector<1x1x32x128xf32> to vector<32x128xf32>
    %23 = vector.extract_strided_slice %14 {offsets = [0, 0], sizes = [1, 32], strides = [1, 1]} : vector<1x128xf32> to vector<1x32xf32>
    %24 = vector.extract_strided_slice %14 {offsets = [0, 32], sizes = [1, 32], strides = [1, 1]} : vector<1x128xf32> to vector<1x32xf32>
    %cst = arith.constant dense<0.000000e+00> : vector<17xf32>
    %25 = vector.multi_reduction <add>, %4, %cst [1] : vector<17x32xf32> to vector<17xf32>
    %26 = vector.shape_cast %25 : vector<17xf32> to vector<17x1xf32>
    %cst_19 = arith.constant 3.200000e+01 : f32
    %27 = vector.broadcast %cst_19 : f32 to vector<17x1xf32>
    %28 = arith.divf %26, %27 : vector<17x1xf32>
    %29 = vector.broadcast %28 : vector<17x1xf32> to vector<17x32xf32>
    %30 = arith.subf %4, %29 : vector<17x32xf32>
    %31 = arith.mulf %30, %30 : vector<17x32xf32>
    %cst_20 = arith.constant dense<0.000000e+00> : vector<17xf32>
    %32 = vector.multi_reduction <add>, %31, %cst_20 [1] : vector<17x32xf32> to vector<17xf32>
    %33 = vector.shape_cast %32 : vector<17xf32> to vector<17x1xf32>
    %cst_21 = arith.constant 3.200000e+01 : f32
    %34 = vector.broadcast %cst_21 : f32 to vector<17x1xf32>
    %35 = arith.divf %33, %34 : vector<17x1xf32>
    %cst_22 = arith.constant 9.99999974E-6 : f32
    %36 = vector.broadcast %cst_22 : f32 to vector<17x1xf32>
    %37 = arith.addf %35, %36 : vector<17x1xf32>
    %38 = math.rsqrt %37 : vector<17x1xf32>
    %39 = vector.broadcast %38 : vector<17x1xf32> to vector<17x32xf32>
    %40 = arith.mulf %30, %39 : vector<17x32xf32>
    %41 = vector.broadcast %23 : vector<1x32xf32> to vector<17x32xf32>
    %42 = arith.mulf %40, %41 : vector<17x32xf32>
    %43 = vector.broadcast %24 : vector<1x32xf32> to vector<17x32xf32>
    %44 = arith.addf %42, %43 : vector<17x32xf32>
    %cst_23 = arith.constant dense<0.000000e+00> : vector<17x128xf32>
    %45 = tpu.matmul %44, %12, %cst_23 {dimension_numbers = #tpu.dot_dimension_numbers<[1], [0], [0], [1], [0, 0, 1, 1], [], []>} : vector<17x32xf32>, vector<32x128xf32>, vector<17x128xf32> -> vector<17x128xf32>
    %46 = vector.broadcast %15 : vector<1x128xf32> to vector<17x128xf32>
    %47 = arith.addf %45, %46 : vector<17x128xf32>
    %48 = vector.extract_strided_slice %47 {offsets = [0, 0], sizes = [17, 16], strides = [1, 1]} : vector<17x128xf32> to vector<17x16xf32>
    %49 = vector.extract_strided_slice %47 {offsets = [0, 32], sizes = [17, 16], strides = [1, 1]} : vector<17x128xf32> to vector<17x16xf32>
    %50 = vector.extract_strided_slice %47 {offsets = [0, 64], sizes = [17, 16], strides = [1, 1]} : vector<17x128xf32> to vector<17x16xf32>
    "tpu.trace_start"() <{level = 10 : i32, message = "qe,ke->qk"}> : () -> ()
    %cst_24 = arith.constant dense<0.000000e+00> : vector<17x17xf32>
    %51 = tpu.matmul %48, %49, %cst_24 {dimension_numbers = #tpu.dot_dimension_numbers<[1], [1], [0], [0], [0, 0, 1, 0], [], []>} : vector<17x16xf32>, vector<17x16xf32>, vector<17x17xf32> -> vector<17x17xf32>
    "tpu.trace_stop"() : () -> ()
    %52 = arith.addf %51, %8 : vector<17x17xf32>
    %53 = math.exp %52 : vector<17x17xf32>
    %cst_25 = arith.constant dense<0.000000e+00> : vector<17xf32>
    %54 = vector.multi_reduction <add>, %53, %cst_25 [1] : vector<17x17xf32> to vector<17xf32>
    %55 = vector.shape_cast %54 : vector<17xf32> to vector<17x1xf32>
    %56 = tpu.reciprocal %55 {approx = true} : vector<17x1xf32> -> vector<17x1xf32>
    %57 = vector.broadcast %56 : vector<17x1xf32> to vector<17x17xf32>
    %58 = arith.mulf %53, %57 : vector<17x17xf32>
    %cst_26 = arith.constant dense<0.000000e+00> : vector<17x16xf32>
    %59 = tpu.matmul %58, %50, %cst_26 {dimension_numbers = #tpu.dot_dimension_numbers<[1], [0], [0], [1], [0, 0, 1, 1], [], []>} : vector<17x17xf32>, vector<17x16xf32>, vector<17x16xf32> -> vector<17x16xf32>
    %60 = vector.extract_strided_slice %47 {offsets = [0, 16], sizes = [17, 16], strides = [1, 1]} : vector<17x128xf32> to vector<17x16xf32>
    %61 = vector.extract_strided_slice %47 {offsets = [0, 48], sizes = [17, 16], strides = [1, 1]} : vector<17x128xf32> to vector<17x16xf32>
    %62 = vector.extract_strided_slice %47 {offsets = [0, 80], sizes = [17, 16], strides = [1, 1]} : vector<17x128xf32> to vector<17x16xf32>
    "tpu.trace_start"() <{level = 10 : i32, message = "qe,ke->qk"}> : () -> ()
    %cst_27 = arith.constant dense<0.000000e+00> : vector<17x17xf32>
    %63 = tpu.matmul %60, %61, %cst_27 {dimension_numbers = #tpu.dot_dimension_numbers<[1], [1], [0], [0], [0, 0, 1, 0], [], []>} : vector<17x16xf32>, vector<17x16xf32>, vector<17x17xf32> -> vector<17x17xf32>
    "tpu.trace_stop"() : () -> ()
    %64 = arith.addf %63, %8 : vector<17x17xf32>
    %65 = math.exp %64 : vector<17x17xf32>
    %cst_28 = arith.constant dense<0.000000e+00> : vector<17xf32>
    %66 = vector.multi_reduction <add>, %65, %cst_28 [1] : vector<17x17xf32> to vector<17xf32>
    %67 = vector.shape_cast %66 : vector<17xf32> to vector<17x1xf32>
    %68 = tpu.reciprocal %67 {approx = true} : vector<17x1xf32> -> vector<17x1xf32>
    %69 = vector.broadcast %68 : vector<17x1xf32> to vector<17x17xf32>
    %70 = arith.mulf %65, %69 : vector<17x17xf32>
    %cst_29 = arith.constant dense<0.000000e+00> : vector<17x16xf32>
    %71 = tpu.matmul %70, %62, %cst_29 {dimension_numbers = #tpu.dot_dimension_numbers<[1], [0], [0], [1], [0, 0, 1, 1], [], []>} : vector<17x17xf32>, vector<17x16xf32>, vector<17x16xf32> -> vector<17x16xf32>
    %72 = tpu.concatenate %59, %71 in 1 : vector<17x16xf32>, vector<17x16xf32> -> vector<17x32xf32>
    %cst_30 = arith.constant dense<0.000000e+00> : vector<17x32xf32>
    %73 = tpu.matmul %72, %13, %cst_30 {dimension_numbers = #tpu.dot_dimension_numbers<[1], [0], [0], [1], [0, 0, 1, 1], [], []>} : vector<17x32xf32>, vector<32x32xf32>, vector<17x32xf32> -> vector<17x32xf32>
    %74 = arith.addf %4, %73 : vector<17x32xf32>
    %75 = vector.broadcast %16 : vector<1x32xf32> to vector<17x32xf32>
    %76 = arith.addf %74, %75 : vector<17x32xf32>
    %77 = vector.extract_strided_slice %14 {offsets = [0, 64], sizes = [1, 32], strides = [1, 1]} : vector<1x128xf32> to vector<1x32xf32>
    %78 = vector.extract_strided_slice %14 {offsets = [0, 96], sizes = [1, 32], strides = [1, 1]} : vector<1x128xf32> to vector<1x32xf32>
    %cst_31 = arith.constant dense<0.000000e+00> : vector<17xf32>
    %79 = vector.multi_reduction <add>, %76, %cst_31 [1] : vector<17x32xf32> to vector<17xf32>
    %80 = vector.shape_cast %79 : vector<17xf32> to vector<17x1xf32>
    %cst_32 = arith.constant 3.200000e+01 : f32
    %81 = vector.broadcast %cst_32 : f32 to vector<17x1xf32>
    %82 = arith.divf %80, %81 : vector<17x1xf32>
    %83 = vector.broadcast %82 : vector<17x1xf32> to vector<17x32xf32>
    %84 = arith.subf %76, %83 : vector<17x32xf32>
    %85 = arith.mulf %84, %84 : vector<17x32xf32>
    %cst_33 = arith.constant dense<0.000000e+00> : vector<17xf32>
    %86 = vector.multi_reduction <add>, %85, %cst_33 [1] : vector<17x32xf32> to vector<17xf32>
    %87 = vector.shape_cast %86 : vector<17xf32> to vector<17x1xf32>
    %cst_34 = arith.constant 3.200000e+01 : f32
    %88 = vector.broadcast %cst_34 : f32 to vector<17x1xf32>
    %89 = arith.divf %87, %88 : vector<17x1xf32>
    %cst_35 = arith.constant 9.99999974E-6 : f32
    %90 = vector.broadcast %cst_35 : f32 to vector<17x1xf32>
    %91 = arith.addf %89, %90 : vector<17x1xf32>
    %92 = math.rsqrt %91 : vector<17x1xf32>
    %93 = vector.broadcast %92 : vector<17x1xf32> to vector<17x32xf32>
    %94 = arith.mulf %84, %93 : vector<17x32xf32>
    %95 = vector.broadcast %77 : vector<1x32xf32> to vector<17x32xf32>
    %96 = arith.mulf %94, %95 : vector<17x32xf32>
    %97 = vector.broadcast %78 : vector<1x32xf32> to vector<17x32xf32>
    %98 = arith.addf %96, %97 : vector<17x32xf32>
    %cst_36 = arith.constant dense<0.000000e+00> : vector<17x128xf32>
    %99 = tpu.matmul %98, %20, %cst_36 {dimension_numbers = #tpu.dot_dimension_numbers<[1], [0], [0], [1], [0, 0, 1, 1], [], []>} : vector<17x32xf32>, vector<32x128xf32>, vector<17x128xf32> -> vector<17x128xf32>
    %100 = vector.broadcast %17 : vector<1x128xf32> to vector<17x128xf32>
    %101 = arith.addf %99, %100 : vector<17x128xf32>
    %102 = arith.mulf %101, %101 : vector<17x128xf32>
    %103 = arith.mulf %101, %102 : vector<17x128xf32>
    %cst_37 = arith.constant 4.471500e-02 : f32
    %104 = vector.broadcast %cst_37 : f32 to vector<17x128xf32>
    %105 = arith.mulf %104, %103 : vector<17x128xf32>
    %106 = arith.addf %101, %105 : vector<17x128xf32>
    %cst_38 = arith.constant 0.797884583 : f32
    %107 = vector.broadcast %cst_38 : f32 to vector<17x128xf32>
    %108 = arith.mulf %107, %106 : vector<17x128xf32>
    %109 = math.tanh %108 : vector<17x128xf32>
    %cst_39 = arith.constant 1.000000e+00 : f32
    %110 = vector.broadcast %cst_39 : f32 to vector<17x128xf32>
    %111 = arith.addf %110, %109 : vector<17x128xf32>
    %cst_40 = arith.constant 5.000000e-01 : f32
    %112 = vector.broadcast %cst_40 : f32 to vector<17x128xf32>
    %113 = arith.mulf %112, %111 : vector<17x128xf32>
    %114 = arith.mulf %101, %113 : vector<17x128xf32>
    "tpu.trace_start"() <{level = 10 : i32, message = "lf,df->ld"}> : () -> ()
    %cst_41 = arith.constant dense<0.000000e+00> : vector<17x32xf32>
    %115 = tpu.matmul %114, %22, %cst_41 {dimension_numbers = #tpu.dot_dimension_numbers<[1], [1], [0], [0], [0, 0, 1, 0], [], []>} : vector<17x128xf32>, vector<32x128xf32>, vector<17x32xf32> -> vector<17x32xf32>
    "tpu.trace_stop"() : () -> ()
    %116 = arith.addf %76, %115 : vector<17x32xf32>
    %117 = vector.broadcast %18 : vector<1x32xf32> to vector<17x32xf32>
    %118 = arith.addf %116, %117 : vector<17x32xf32>
    %119 = vector.extract_strided_slice %14 {offsets = [0, 0], sizes = [1, 32], strides = [1, 1]} : vector<1x128xf32> to vector<1x32xf32>
    %120 = vector.extract_strided_slice %14 {offsets = [0, 32], sizes = [1, 32], strides = [1, 1]} : vector<1x128xf32> to vector<1x32xf32>
    %cst_42 = arith.constant dense<0.000000e+00> : vector<17xf32>
    %121 = vector.multi_reduction <add>, %6, %cst_42 [1] : vector<17x32xf32> to vector<17xf32>
    %122 = vector.shape_cast %121 : vector<17xf32> to vector<17x1xf32>
    %cst_43 = arith.constant 3.200000e+01 : f32
    %123 = vector.broadcast %cst_43 : f32 to vector<17x1xf32>
    %124 = arith.divf %122, %123 : vector<17x1xf32>
    %125 = vector.broadcast %124 : vector<17x1xf32> to vector<17x32xf32>
    %126 = arith.subf %6, %125 : vector<17x32xf32>
    %127 = arith.mulf %126, %126 : vector<17x32xf32>
    %cst_44 = arith.constant dense<0.000000e+00> : vector<17xf32>
    %128 = vector.multi_reduction <add>, %127, %cst_44 [1] : vector<17x32xf32> to vector<17xf32>
    %129 = vector.shape_cast %128 : vector<17xf32> to vector<17x1xf32>
    %cst_45 = arith.constant 3.200000e+01 : f32
    %130 = vector.broadcast %cst_45 : f32 to vector<17x1xf32>
    %131 = arith.divf %129, %130 : vector<17x1xf32>
    %cst_46 = arith.constant 9.99999974E-6 : f32
    %132 = vector.broadcast %cst_46 : f32 to vector<17x1xf32>
    %133 = arith.addf %131, %132 : vector<17x1xf32>
    %134 = math.rsqrt %133 : vector<17x1xf32>
    %135 = vector.broadcast %134 : vector<17x1xf32> to vector<17x32xf32>
    %136 = arith.mulf %126, %135 : vector<17x32xf32>
    %137 = vector.broadcast %119 : vector<1x32xf32> to vector<17x32xf32>
    %138 = arith.mulf %136, %137 : vector<17x32xf32>
    %139 = vector.broadcast %120 : vector<1x32xf32> to vector<17x32xf32>
    %140 = arith.addf %138, %139 : vector<17x32xf32>
    %cst_47 = arith.constant dense<0.000000e+00> : vector<17x128xf32>
    %141 = tpu.matmul %140, %12, %cst_47 {dimension_numbers = #tpu.dot_dimension_numbers<[1], [0], [0], [1], [0, 0, 1, 1], [], []>} : vector<17x32xf32>, vector<32x128xf32>, vector<17x128xf32> -> vector<17x128xf32>
    %142 = vector.broadcast %15 : vector<1x128xf32> to vector<17x128xf32>
    %143 = arith.addf %141, %142 : vector<17x128xf32>
    %144 = vector.extract_strided_slice %143 {offsets = [0, 0], sizes = [17, 16], strides = [1, 1]} : vector<17x128xf32> to vector<17x16xf32>
    %145 = vector.extract_strided_slice %143 {offsets = [0, 32], sizes = [17, 16], strides = [1, 1]} : vector<17x128xf32> to vector<17x16xf32>
    %146 = vector.extract_strided_slice %143 {offsets = [0, 64], sizes = [17, 16], strides = [1, 1]} : vector<17x128xf32> to vector<17x16xf32>
    "tpu.trace_start"() <{level = 10 : i32, message = "qe,ke->qk"}> : () -> ()
    %cst_48 = arith.constant dense<0.000000e+00> : vector<17x17xf32>
    %147 = tpu.matmul %144, %145, %cst_48 {dimension_numbers = #tpu.dot_dimension_numbers<[1], [1], [0], [0], [0, 0, 1, 0], [], []>} : vector<17x16xf32>, vector<17x16xf32>, vector<17x17xf32> -> vector<17x17xf32>
    "tpu.trace_stop"() : () -> ()
    %148 = arith.addf %147, %10 : vector<17x17xf32>
    %149 = math.exp %148 : vector<17x17xf32>
    %cst_49 = arith.constant dense<0.000000e+00> : vector<17xf32>
    %150 = vector.multi_reduction <add>, %149, %cst_49 [1] : vector<17x17xf32> to vector<17xf32>
    %151 = vector.shape_cast %150 : vector<17xf32> to vector<17x1xf32>
    %152 = tpu.reciprocal %151 {approx = true} : vector<17x1xf32> -> vector<17x1xf32>
    %153 = vector.broadcast %152 : vector<17x1xf32> to vector<17x17xf32>
    %154 = arith.mulf %149, %153 : vector<17x17xf32>
    %cst_50 = arith.constant dense<0.000000e+00> : vector<17x16xf32>
    %155 = tpu.matmul %154, %146, %cst_50 {dimension_numbers = #tpu.dot_dimension_numbers<[1], [0], [0], [1], [0, 0, 1, 1], [], []>} : vector<17x17xf32>, vector<17x16xf32>, vector<17x16xf32> -> vector<17x16xf32>
    %156 = vector.extract_strided_slice %143 {offsets = [0, 16], sizes = [17, 16], strides = [1, 1]} : vector<17x128xf32> to vector<17x16xf32>
    %157 = vector.extract_strided_slice %143 {offsets = [0, 48], sizes = [17, 16], strides = [1, 1]} : vector<17x128xf32> to vector<17x16xf32>
    %158 = vector.extract_strided_slice %143 {offsets = [0, 80], sizes = [17, 16], strides = [1, 1]} : vector<17x128xf32> to vector<17x16xf32>
    "tpu.trace_start"() <{level = 10 : i32, message = "qe,ke->qk"}> : () -> ()
    %cst_51 = arith.constant dense<0.000000e+00> : vector<17x17xf32>
    %159 = tpu.matmul %156, %157, %cst_51 {dimension_numbers = #tpu.dot_dimension_numbers<[1], [1], [0], [0], [0, 0, 1, 0], [], []>} : vector<17x16xf32>, vector<17x16xf32>, vector<17x17xf32> -> vector<17x17xf32>
    "tpu.trace_stop"() : () -> ()
    %160 = arith.addf %159, %10 : vector<17x17xf32>
    %161 = math.exp %160 : vector<17x17xf32>
    %cst_52 = arith.constant dense<0.000000e+00> : vector<17xf32>
    %162 = vector.multi_reduction <add>, %161, %cst_52 [1] : vector<17x17xf32> to vector<17xf32>
    %163 = vector.shape_cast %162 : vector<17xf32> to vector<17x1xf32>
    %164 = tpu.reciprocal %163 {approx = true} : vector<17x1xf32> -> vector<17x1xf32>
    %165 = vector.broadcast %164 : vector<17x1xf32> to vector<17x17xf32>
    %166 = arith.mulf %161, %165 : vector<17x17xf32>
    %cst_53 = arith.constant dense<0.000000e+00> : vector<17x16xf32>
    %167 = tpu.matmul %166, %158, %cst_53 {dimension_numbers = #tpu.dot_dimension_numbers<[1], [0], [0], [1], [0, 0, 1, 1], [], []>} : vector<17x17xf32>, vector<17x16xf32>, vector<17x16xf32> -> vector<17x16xf32>
    %168 = tpu.concatenate %155, %167 in 1 : vector<17x16xf32>, vector<17x16xf32> -> vector<17x32xf32>
    %cst_54 = arith.constant dense<0.000000e+00> : vector<17x32xf32>
    %169 = tpu.matmul %168, %13, %cst_54 {dimension_numbers = #tpu.dot_dimension_numbers<[1], [0], [0], [1], [0, 0, 1, 1], [], []>} : vector<17x32xf32>, vector<32x32xf32>, vector<17x32xf32> -> vector<17x32xf32>
    %170 = arith.addf %6, %169 : vector<17x32xf32>
    %171 = vector.broadcast %16 : vector<1x32xf32> to vector<17x32xf32>
    %172 = arith.addf %170, %171 : vector<17x32xf32>
    %173 = vector.extract_strided_slice %14 {offsets = [0, 64], sizes = [1, 32], strides = [1, 1]} : vector<1x128xf32> to vector<1x32xf32>
    %174 = vector.extract_strided_slice %14 {offsets = [0, 96], sizes = [1, 32], strides = [1, 1]} : vector<1x128xf32> to vector<1x32xf32>
    %cst_55 = arith.constant dense<0.000000e+00> : vector<17xf32>
    %175 = vector.multi_reduction <add>, %172, %cst_55 [1] : vector<17x32xf32> to vector<17xf32>
    %176 = vector.shape_cast %175 : vector<17xf32> to vector<17x1xf32>
    %cst_56 = arith.constant 3.200000e+01 : f32
    %177 = vector.broadcast %cst_56 : f32 to vector<17x1xf32>
    %178 = arith.divf %176, %177 : vector<17x1xf32>
    %179 = vector.broadcast %178 : vector<17x1xf32> to vector<17x32xf32>
    %180 = arith.subf %172, %179 : vector<17x32xf32>
    %181 = arith.mulf %180, %180 : vector<17x32xf32>
    %cst_57 = arith.constant dense<0.000000e+00> : vector<17xf32>
    %182 = vector.multi_reduction <add>, %181, %cst_57 [1] : vector<17x32xf32> to vector<17xf32>
    %183 = vector.shape_cast %182 : vector<17xf32> to vector<17x1xf32>
    %cst_58 = arith.constant 3.200000e+01 : f32
    %184 = vector.broadcast %cst_58 : f32 to vector<17x1xf32>
    %185 = arith.divf %183, %184 : vector<17x1xf32>
    %cst_59 = arith.constant 9.99999974E-6 : f32
    %186 = vector.broadcast %cst_59 : f32 to vector<17x1xf32>
    %187 = arith.addf %185, %186 : vector<17x1xf32>
    %188 = math.rsqrt %187 : vector<17x1xf32>
    %189 = vector.broadcast %188 : vector<17x1xf32> to vector<17x32xf32>
    %190 = arith.mulf %180, %189 : vector<17x32xf32>
    %191 = vector.broadcast %173 : vector<1x32xf32> to vector<17x32xf32>
    %192 = arith.mulf %190, %191 : vector<17x32xf32>
    %193 = vector.broadcast %174 : vector<1x32xf32> to vector<17x32xf32>
    %194 = arith.addf %192, %193 : vector<17x32xf32>
    %cst_60 = arith.constant dense<0.000000e+00> : vector<17x128xf32>
    %195 = tpu.matmul %194, %20, %cst_60 {dimension_numbers = #tpu.dot_dimension_numbers<[1], [0], [0], [1], [0, 0, 1, 1], [], []>} : vector<17x32xf32>, vector<32x128xf32>, vector<17x128xf32> -> vector<17x128xf32>
    %196 = vector.broadcast %17 : vector<1x128xf32> to vector<17x128xf32>
    %197 = arith.addf %195, %196 : vector<17x128xf32>
    %198 = arith.mulf %197, %197 : vector<17x128xf32>
    %199 = arith.mulf %197, %198 : vector<17x128xf32>
    %cst_61 = arith.constant 4.471500e-02 : f32
    %200 = vector.broadcast %cst_61 : f32 to vector<17x128xf32>
    %201 = arith.mulf %200, %199 : vector<17x128xf32>
    %202 = arith.addf %197, %201 : vector<17x128xf32>
    %cst_62 = arith.constant 0.797884583 : f32
    %203 = vector.broadcast %cst_62 : f32 to vector<17x128xf32>
    %204 = arith.mulf %203, %202 : vector<17x128xf32>
    %205 = math.tanh %204 : vector<17x128xf32>
    %cst_63 = arith.constant 1.000000e+00 : f32
    %206 = vector.broadcast %cst_63 : f32 to vector<17x128xf32>
    %207 = arith.addf %206, %205 : vector<17x128xf32>
    %cst_64 = arith.constant 5.000000e-01 : f32
    %208 = vector.broadcast %cst_64 : f32 to vector<17x128xf32>
    %209 = arith.mulf %208, %207 : vector<17x128xf32>
    %210 = arith.mulf %197, %209 : vector<17x128xf32>
    "tpu.trace_start"() <{level = 10 : i32, message = "lf,df->ld"}> : () -> ()
    %cst_65 = arith.constant dense<0.000000e+00> : vector<17x32xf32>
    %211 = tpu.matmul %210, %22, %cst_65 {dimension_numbers = #tpu.dot_dimension_numbers<[1], [1], [0], [0], [0, 0, 1, 0], [], []>} : vector<17x128xf32>, vector<32x128xf32>, vector<17x32xf32> -> vector<17x32xf32>
    "tpu.trace_stop"() : () -> ()
    %212 = arith.addf %172, %211 : vector<17x32xf32>
    %213 = vector.broadcast %18 : vector<1x32xf32> to vector<17x32xf32>
    %214 = arith.addf %212, %213 : vector<17x32xf32>
    %215 = vector.extract_strided_slice %0 {offsets = [1, 0, 0], sizes = [1, 32, 128], strides = [1, 1, 1]} : vector<3x32x128xf32> to vector<1x32x128xf32>
    %216 = vector.shape_cast %215 : vector<1x32x128xf32> to vector<32x128xf32>
    %217 = vector.extract_strided_slice %216 {offsets = [0, 96], sizes = [32, 32], strides = [1, 1]} : vector<32x128xf32> to vector<32x32xf32>
    %218 = vector.extract_strided_slice %2 {offsets = [4, 0], sizes = [1, 128], strides = [1, 1]} : vector<9x128xf32> to vector<1x128xf32>
    %219 = vector.extract_strided_slice %2 {offsets = [5, 0], sizes = [1, 128], strides = [1, 1]} : vector<9x128xf32> to vector<1x128xf32>
    %220 = vector.extract_strided_slice %219 {offsets = [0, 96], sizes = [1, 32], strides = [1, 1]} : vector<1x128xf32> to vector<1x32xf32>
    %221 = vector.extract_strided_slice %2 {offsets = [6, 0], sizes = [1, 128], strides = [1, 1]} : vector<9x128xf32> to vector<1x128xf32>
    %222 = vector.extract_strided_slice %2 {offsets = [7, 0], sizes = [1, 32], strides = [1, 1]} : vector<9x128xf32> to vector<1x32xf32>
    %223 = vector.extract_strided_slice %1 {offsets = [1, 0, 0, 0], sizes = [1, 1, 32, 128], strides = [1, 1, 1, 1]} : vector<2x2x32x128xf32> to vector<1x1x32x128xf32>
    %224 = vector.shape_cast %223 : vector<1x1x32x128xf32> to vector<32x128xf32>
    %225 = vector.extract_strided_slice %1 {offsets = [1, 1, 0, 0], sizes = [1, 1, 32, 128], strides = [1, 1, 1, 1]} : vector<2x2x32x128xf32> to vector<1x1x32x128xf32>
    %226 = vector.shape_cast %225 : vector<1x1x32x128xf32> to vector<32x128xf32>
    %227 = vector.extract_strided_slice %218 {offsets = [0, 0], sizes = [1, 32], strides = [1, 1]} : vector<1x128xf32> to vector<1x32xf32>
    %228 = vector.extract_strided_slice %218 {offsets = [0, 32], sizes = [1, 32], strides = [1, 1]} : vector<1x128xf32> to vector<1x32xf32>
    %cst_66 = arith.constant dense<0.000000e+00> : vector<17xf32>
    %229 = vector.multi_reduction <add>, %118, %cst_66 [1] : vector<17x32xf32> to vector<17xf32>
    %230 = vector.shape_cast %229 : vector<17xf32> to vector<17x1xf32>
    %cst_67 = arith.constant 3.200000e+01 : f32
    %231 = vector.broadcast %cst_67 : f32 to vector<17x1xf32>
    %232 = arith.divf %230, %231 : vector<17x1xf32>
    %233 = vector.broadcast %232 : vector<17x1xf32> to vector<17x32xf32>
    %234 = arith.subf %118, %233 : vector<17x32xf32>
    %235 = arith.mulf %234, %234 : vector<17x32xf32>
    %cst_68 = arith.constant dense<0.000000e+00> : vector<17xf32>
    %236 = vector.multi_reduction <add>, %235, %cst_68 [1] : vector<17x32xf32> to vector<17xf32>
    %237 = vector.shape_cast %236 : vector<17xf32> to vector<17x1xf32>
    %cst_69 = arith.constant 3.200000e+01 : f32
    %238 = vector.broadcast %cst_69 : f32 to vector<17x1xf32>
    %239 = arith.divf %237, %238 : vector<17x1xf32>
    %cst_70 = arith.constant 9.99999974E-6 : f32
    %240 = vector.broadcast %cst_70 : f32 to vector<17x1xf32>
    %241 = arith.addf %239, %240 : vector<17x1xf32>
    %242 = math.rsqrt %241 : vector<17x1xf32>
    %243 = vector.broadcast %242 : vector<17x1xf32> to vector<17x32xf32>
    %244 = arith.mulf %234, %243 : vector<17x32xf32>
    %245 = vector.broadcast %227 : vector<1x32xf32> to vector<17x32xf32>
    %246 = arith.mulf %244, %245 : vector<17x32xf32>
    %247 = vector.broadcast %228 : vector<1x32xf32> to vector<17x32xf32>
    %248 = arith.addf %246, %247 : vector<17x32xf32>
    %cst_71 = arith.constant dense<0.000000e+00> : vector<17x128xf32>
    %249 = tpu.matmul %248, %216, %cst_71 {dimension_numbers = #tpu.dot_dimension_numbers<[1], [0], [0], [1], [0, 0, 1, 1], [], []>} : vector<17x32xf32>, vector<32x128xf32>, vector<17x128xf32> -> vector<17x128xf32>
    %250 = vector.broadcast %219 : vector<1x128xf32> to vector<17x128xf32>
    %251 = arith.addf %249, %250 : vector<17x128xf32>
    %252 = vector.extract_strided_slice %251 {offsets = [0, 0], sizes = [17, 16], strides = [1, 1]} : vector<17x128xf32> to vector<17x16xf32>
    %253 = vector.extract_strided_slice %251 {offsets = [0, 32], sizes = [17, 16], strides = [1, 1]} : vector<17x128xf32> to vector<17x16xf32>
    %254 = vector.extract_strided_slice %251 {offsets = [0, 64], sizes = [17, 16], strides = [1, 1]} : vector<17x128xf32> to vector<17x16xf32>
    "tpu.trace_start"() <{level = 10 : i32, message = "qe,ke->qk"}> : () -> ()
    %cst_72 = arith.constant dense<0.000000e+00> : vector<17x17xf32>
    %255 = tpu.matmul %252, %253, %cst_72 {dimension_numbers = #tpu.dot_dimension_numbers<[1], [1], [0], [0], [0, 0, 1, 0], [], []>} : vector<17x16xf32>, vector<17x16xf32>, vector<17x17xf32> -> vector<17x17xf32>
    "tpu.trace_stop"() : () -> ()
    %256 = arith.addf %255, %8 : vector<17x17xf32>
    %257 = math.exp %256 : vector<17x17xf32>
    %cst_73 = arith.constant dense<0.000000e+00> : vector<17xf32>
    %258 = vector.multi_reduction <add>, %257, %cst_73 [1] : vector<17x17xf32> to vector<17xf32>
    %259 = vector.shape_cast %258 : vector<17xf32> to vector<17x1xf32>
    %260 = tpu.reciprocal %259 {approx = true} : vector<17x1xf32> -> vector<17x1xf32>
    %261 = vector.broadcast %260 : vector<17x1xf32> to vector<17x17xf32>
    %262 = arith.mulf %257, %261 : vector<17x17xf32>
    %cst_74 = arith.constant dense<0.000000e+00> : vector<17x16xf32>
    %263 = tpu.matmul %262, %254, %cst_74 {dimension_numbers = #tpu.dot_dimension_numbers<[1], [0], [0], [1], [0, 0, 1, 1], [], []>} : vector<17x17xf32>, vector<17x16xf32>, vector<17x16xf32> -> vector<17x16xf32>
    %264 = vector.extract_strided_slice %251 {offsets = [0, 16], sizes = [17, 16], strides = [1, 1]} : vector<17x128xf32> to vector<17x16xf32>
    %265 = vector.extract_strided_slice %251 {offsets = [0, 48], sizes = [17, 16], strides = [1, 1]} : vector<17x128xf32> to vector<17x16xf32>
    %266 = vector.extract_strided_slice %251 {offsets = [0, 80], sizes = [17, 16], strides = [1, 1]} : vector<17x128xf32> to vector<17x16xf32>
    "tpu.trace_start"() <{level = 10 : i32, message = "qe,ke->qk"}> : () -> ()
    %cst_75 = arith.constant dense<0.000000e+00> : vector<17x17xf32>
    %267 = tpu.matmul %264, %265, %cst_75 {dimension_numbers = #tpu.dot_dimension_numbers<[1], [1], [0], [0], [0, 0, 1, 0], [], []>} : vector<17x16xf32>, vector<17x16xf32>, vector<17x17xf32> -> vector<17x17xf32>
    "tpu.trace_stop"() : () -> ()
    %268 = arith.addf %267, %8 : vector<17x17xf32>
    %269 = math.exp %268 : vector<17x17xf32>
    %cst_76 = arith.constant dense<0.000000e+00> : vector<17xf32>
    %270 = vector.multi_reduction <add>, %269, %cst_76 [1] : vector<17x17xf32> to vector<17xf32>
    %271 = vector.shape_cast %270 : vector<17xf32> to vector<17x1xf32>
    %272 = tpu.reciprocal %271 {approx = true} : vector<17x1xf32> -> vector<17x1xf32>
    %273 = vector.broadcast %272 : vector<17x1xf32> to vector<17x17xf32>
    %274 = arith.mulf %269, %273 : vector<17x17xf32>
    %cst_77 = arith.constant dense<0.000000e+00> : vector<17x16xf32>
    %275 = tpu.matmul %274, %266, %cst_77 {dimension_numbers = #tpu.dot_dimension_numbers<[1], [0], [0], [1], [0, 0, 1, 1], [], []>} : vector<17x17xf32>, vector<17x16xf32>, vector<17x16xf32> -> vector<17x16xf32>
    %276 = tpu.concatenate %263, %275 in 1 : vector<17x16xf32>, vector<17x16xf32> -> vector<17x32xf32>
    %cst_78 = arith.constant dense<0.000000e+00> : vector<17x32xf32>
    %277 = tpu.matmul %276, %217, %cst_78 {dimension_numbers = #tpu.dot_dimension_numbers<[1], [0], [0], [1], [0, 0, 1, 1], [], []>} : vector<17x32xf32>, vector<32x32xf32>, vector<17x32xf32> -> vector<17x32xf32>
    %278 = arith.addf %118, %277 : vector<17x32xf32>
    %279 = vector.broadcast %220 : vector<1x32xf32> to vector<17x32xf32>
    %280 = arith.addf %278, %279 : vector<17x32xf32>
    %281 = vector.extract_strided_slice %218 {offsets = [0, 64], sizes = [1, 32], strides = [1, 1]} : vector<1x128xf32> to vector<1x32xf32>
    %282 = vector.extract_strided_slice %218 {offsets = [0, 96], sizes = [1, 32], strides = [1, 1]} : vector<1x128xf32> to vector<1x32xf32>
    %cst_79 = arith.constant dense<0.000000e+00> : vector<17xf32>
    %283 = vector.multi_reduction <add>, %280, %cst_79 [1] : vector<17x32xf32> to vector<17xf32>
    %284 = vector.shape_cast %283 : vector<17xf32> to vector<17x1xf32>
    %cst_80 = arith.constant 3.200000e+01 : f32
    %285 = vector.broadcast %cst_80 : f32 to vector<17x1xf32>
    %286 = arith.divf %284, %285 : vector<17x1xf32>
    %287 = vector.broadcast %286 : vector<17x1xf32> to vector<17x32xf32>
    %288 = arith.subf %280, %287 : vector<17x32xf32>
    %289 = arith.mulf %288, %288 : vector<17x32xf32>
    %cst_81 = arith.constant dense<0.000000e+00> : vector<17xf32>
    %290 = vector.multi_reduction <add>, %289, %cst_81 [1] : vector<17x32xf32> to vector<17xf32>
    %291 = vector.shape_cast %290 : vector<17xf32> to vector<17x1xf32>
    %cst_82 = arith.constant 3.200000e+01 : f32
    %292 = vector.broadcast %cst_82 : f32 to vector<17x1xf32>
    %293 = arith.divf %291, %292 : vector<17x1xf32>
    %cst_83 = arith.constant 9.99999974E-6 : f32
    %294 = vector.broadcast %cst_83 : f32 to vector<17x1xf32>
    %295 = arith.addf %293, %294 : vector<17x1xf32>
    %296 = math.rsqrt %295 : vector<17x1xf32>
    %297 = vector.broadcast %296 : vector<17x1xf32> to vector<17x32xf32>
    %298 = arith.mulf %288, %297 : vector<17x32xf32>
    %299 = vector.broadcast %281 : vector<1x32xf32> to vector<17x32xf32>
    %300 = arith.mulf %298, %299 : vector<17x32xf32>
    %301 = vector.broadcast %282 : vector<1x32xf32> to vector<17x32xf32>
    %302 = arith.addf %300, %301 : vector<17x32xf32>
    %cst_84 = arith.constant dense<0.000000e+00> : vector<17x128xf32>
    %303 = tpu.matmul %302, %224, %cst_84 {dimension_numbers = #tpu.dot_dimension_numbers<[1], [0], [0], [1], [0, 0, 1, 1], [], []>} : vector<17x32xf32>, vector<32x128xf32>, vector<17x128xf32> -> vector<17x128xf32>
    %304 = vector.broadcast %221 : vector<1x128xf32> to vector<17x128xf32>
    %305 = arith.addf %303, %304 : vector<17x128xf32>
    %306 = arith.mulf %305, %305 : vector<17x128xf32>
    %307 = arith.mulf %305, %306 : vector<17x128xf32>
    %cst_85 = arith.constant 4.471500e-02 : f32
    %308 = vector.broadcast %cst_85 : f32 to vector<17x128xf32>
    %309 = arith.mulf %308, %307 : vector<17x128xf32>
    %310 = arith.addf %305, %309 : vector<17x128xf32>
    %cst_86 = arith.constant 0.797884583 : f32
    %311 = vector.broadcast %cst_86 : f32 to vector<17x128xf32>
    %312 = arith.mulf %311, %310 : vector<17x128xf32>
    %313 = math.tanh %312 : vector<17x128xf32>
    %cst_87 = arith.constant 1.000000e+00 : f32
    %314 = vector.broadcast %cst_87 : f32 to vector<17x128xf32>
    %315 = arith.addf %314, %313 : vector<17x128xf32>
    %cst_88 = arith.constant 5.000000e-01 : f32
    %316 = vector.broadcast %cst_88 : f32 to vector<17x128xf32>
    %317 = arith.mulf %316, %315 : vector<17x128xf32>
    %318 = arith.mulf %305, %317 : vector<17x128xf32>
    "tpu.trace_start"() <{level = 10 : i32, message = "lf,df->ld"}> : () -> ()
    %cst_89 = arith.constant dense<0.000000e+00> : vector<17x32xf32>
    %319 = tpu.matmul %318, %226, %cst_89 {dimension_numbers = #tpu.dot_dimension_numbers<[1], [1], [0], [0], [0, 0, 1, 0], [], []>} : vector<17x128xf32>, vector<32x128xf32>, vector<17x32xf32> -> vector<17x32xf32>
    "tpu.trace_stop"() : () -> ()
    %320 = arith.addf %280, %319 : vector<17x32xf32>
    %321 = vector.broadcast %222 : vector<1x32xf32> to vector<17x32xf32>
    %322 = arith.addf %320, %321 : vector<17x32xf32>
    %323 = vector.extract_strided_slice %218 {offsets = [0, 0], sizes = [1, 32], strides = [1, 1]} : vector<1x128xf32> to vector<1x32xf32>
    %324 = vector.extract_strided_slice %218 {offsets = [0, 32], sizes = [1, 32], strides = [1, 1]} : vector<1x128xf32> to vector<1x32xf32>
    %cst_90 = arith.constant dense<0.000000e+00> : vector<17xf32>
    %325 = vector.multi_reduction <add>, %214, %cst_90 [1] : vector<17x32xf32> to vector<17xf32>
    %326 = vector.shape_cast %325 : vector<17xf32> to vector<17x1xf32>
    %cst_91 = arith.constant 3.200000e+01 : f32
    %327 = vector.broadcast %cst_91 : f32 to vector<17x1xf32>
    %328 = arith.divf %326, %327 : vector<17x1xf32>
    %329 = vector.broadcast %328 : vector<17x1xf32> to vector<17x32xf32>
    %330 = arith.subf %214, %329 : vector<17x32xf32>
    %331 = arith.mulf %330, %330 : vector<17x32xf32>
    %cst_92 = arith.constant dense<0.000000e+00> : vector<17xf32>
    %332 = vector.multi_reduction <add>, %331, %cst_92 [1] : vector<17x32xf32> to vector<17xf32>
    %333 = vector.shape_cast %332 : vector<17xf32> to vector<17x1xf32>
    %cst_93 = arith.constant 3.200000e+01 : f32
    %334 = vector.broadcast %cst_93 : f32 to vector<17x1xf32>
    %335 = arith.divf %333, %334 : vector<17x1xf32>
    %cst_94 = arith.constant 9.99999974E-6 : f32
    %336 = vector.broadcast %cst_94 : f32 to vector<17x1xf32>
    %337 = arith.addf %335, %336 : vector<17x1xf32>
    %338 = math.rsqrt %337 : vector<17x1xf32>
    %339 = vector.broadcast %338 : vector<17x1xf32> to vector<17x32xf32>
    %340 = arith.mulf %330, %339 : vector<17x32xf32>
    %341 = vector.broadcast %323 : vector<1x32xf32> to vector<17x32xf32>
    %342 = arith.mulf %340, %341 : vector<17x32xf32>
    %343 = vector.broadcast %324 : vector<1x32xf32> to vector<17x32xf32>
    %344 = arith.addf %342, %343 : vector<17x32xf32>
    %cst_95 = arith.constant dense<0.000000e+00> : vector<17x128xf32>
    %345 = tpu.matmul %344, %216, %cst_95 {dimension_numbers = #tpu.dot_dimension_numbers<[1], [0], [0], [1], [0, 0, 1, 1], [], []>} : vector<17x32xf32>, vector<32x128xf32>, vector<17x128xf32> -> vector<17x128xf32>
    %346 = vector.broadcast %219 : vector<1x128xf32> to vector<17x128xf32>
    %347 = arith.addf %345, %346 : vector<17x128xf32>
    %348 = vector.extract_strided_slice %347 {offsets = [0, 0], sizes = [17, 16], strides = [1, 1]} : vector<17x128xf32> to vector<17x16xf32>
    %349 = vector.extract_strided_slice %347 {offsets = [0, 32], sizes = [17, 16], strides = [1, 1]} : vector<17x128xf32> to vector<17x16xf32>
    %350 = vector.extract_strided_slice %347 {offsets = [0, 64], sizes = [17, 16], strides = [1, 1]} : vector<17x128xf32> to vector<17x16xf32>
    "tpu.trace_start"() <{level = 10 : i32, message = "qe,ke->qk"}> : () -> ()
    %cst_96 = arith.constant dense<0.000000e+00> : vector<17x17xf32>
    %351 = tpu.matmul %348, %349, %cst_96 {dimension_numbers = #tpu.dot_dimension_numbers<[1], [1], [0], [0], [0, 0, 1, 0], [], []>} : vector<17x16xf32>, vector<17x16xf32>, vector<17x17xf32> -> vector<17x17xf32>
    "tpu.trace_stop"() : () -> ()
    %352 = arith.addf %351, %10 : vector<17x17xf32>
    %353 = math.exp %352 : vector<17x17xf32>
    %cst_97 = arith.constant dense<0.000000e+00> : vector<17xf32>
    %354 = vector.multi_reduction <add>, %353, %cst_97 [1] : vector<17x17xf32> to vector<17xf32>
    %355 = vector.shape_cast %354 : vector<17xf32> to vector<17x1xf32>
    %356 = tpu.reciprocal %355 {approx = true} : vector<17x1xf32> -> vector<17x1xf32>
    %357 = vector.broadcast %356 : vector<17x1xf32> to vector<17x17xf32>
    %358 = arith.mulf %353, %357 : vector<17x17xf32>
    %cst_98 = arith.constant dense<0.000000e+00> : vector<17x16xf32>
    %359 = tpu.matmul %358, %350, %cst_98 {dimension_numbers = #tpu.dot_dimension_numbers<[1], [0], [0], [1], [0, 0, 1, 1], [], []>} : vector<17x17xf32>, vector<17x16xf32>, vector<17x16xf32> -> vector<17x16xf32>
    %360 = vector.extract_strided_slice %347 {offsets = [0, 16], sizes = [17, 16], strides = [1, 1]} : vector<17x128xf32> to vector<17x16xf32>
    %361 = vector.extract_strided_slice %347 {offsets = [0, 48], sizes = [17, 16], strides = [1, 1]} : vector<17x128xf32> to vector<17x16xf32>
    %362 = vector.extract_strided_slice %347 {offsets = [0, 80], sizes = [17, 16], strides = [1, 1]} : vector<17x128xf32> to vector<17x16xf32>
    "tpu.trace_start"() <{level = 10 : i32, message = "qe,ke->qk"}> : () -> ()
    %cst_99 = arith.constant dense<0.000000e+00> : vector<17x17xf32>
    %363 = tpu.matmul %360, %361, %cst_99 {dimension_numbers = #tpu.dot_dimension_numbers<[1], [1], [0], [0], [0, 0, 1, 0], [], []>} : vector<17x16xf32>, vector<17x16xf32>, vector<17x17xf32> -> vector<17x17xf32>
    "tpu.trace_stop"() : () -> ()
    %364 = arith.addf %363, %10 : vector<17x17xf32>
    %365 = math.exp %364 : vector<17x17xf32>
    %cst_100 = arith.constant dense<0.000000e+00> : vector<17xf32>
    %366 = vector.multi_reduction <add>, %365, %cst_100 [1] : vector<17x17xf32> to vector<17xf32>
    %367 = vector.shape_cast %366 : vector<17xf32> to vector<17x1xf32>
    %368 = tpu.reciprocal %367 {approx = true} : vector<17x1xf32> -> vector<17x1xf32>
    %369 = vector.broadcast %368 : vector<17x1xf32> to vector<17x17xf32>
    %370 = arith.mulf %365, %369 : vector<17x17xf32>
    %cst_101 = arith.constant dense<0.000000e+00> : vector<17x16xf32>
    %371 = tpu.matmul %370, %362, %cst_101 {dimension_numbers = #tpu.dot_dimension_numbers<[1], [0], [0], [1], [0, 0, 1, 1], [], []>} : vector<17x17xf32>, vector<17x16xf32>, vector<17x16xf32> -> vector<17x16xf32>
    %372 = tpu.concatenate %359, %371 in 1 : vector<17x16xf32>, vector<17x16xf32> -> vector<17x32xf32>
    %cst_102 = arith.constant dense<0.000000e+00> : vector<17x32xf32>
    %373 = tpu.matmul %372, %217, %cst_102 {dimension_numbers = #tpu.dot_dimension_numbers<[1], [0], [0], [1], [0, 0, 1, 1], [], []>} : vector<17x32xf32>, vector<32x32xf32>, vector<17x32xf32> -> vector<17x32xf32>
    %374 = arith.addf %214, %373 : vector<17x32xf32>
    %375 = vector.broadcast %220 : vector<1x32xf32> to vector<17x32xf32>
    %376 = arith.addf %374, %375 : vector<17x32xf32>
    %377 = vector.extract_strided_slice %218 {offsets = [0, 64], sizes = [1, 32], strides = [1, 1]} : vector<1x128xf32> to vector<1x32xf32>
    %378 = vector.extract_strided_slice %218 {offsets = [0, 96], sizes = [1, 32], strides = [1, 1]} : vector<1x128xf32> to vector<1x32xf32>
    %cst_103 = arith.constant dense<0.000000e+00> : vector<17xf32>
    %379 = vector.multi_reduction <add>, %376, %cst_103 [1] : vector<17x32xf32> to vector<17xf32>
    %380 = vector.shape_cast %379 : vector<17xf32> to vector<17x1xf32>
    %cst_104 = arith.constant 3.200000e+01 : f32
    %381 = vector.broadcast %cst_104 : f32 to vector<17x1xf32>
    %382 = arith.divf %380, %381 : vector<17x1xf32>
    %383 = vector.broadcast %382 : vector<17x1xf32> to vector<17x32xf32>
    %384 = arith.subf %376, %383 : vector<17x32xf32>
    %385 = arith.mulf %384, %384 : vector<17x32xf32>
    %cst_105 = arith.constant dense<0.000000e+00> : vector<17xf32>
    %386 = vector.multi_reduction <add>, %385, %cst_105 [1] : vector<17x32xf32> to vector<17xf32>
    %387 = vector.shape_cast %386 : vector<17xf32> to vector<17x1xf32>
    %cst_106 = arith.constant 3.200000e+01 : f32
    %388 = vector.broadcast %cst_106 : f32 to vector<17x1xf32>
    %389 = arith.divf %387, %388 : vector<17x1xf32>
    %cst_107 = arith.constant 9.99999974E-6 : f32
    %390 = vector.broadcast %cst_107 : f32 to vector<17x1xf32>
    %391 = arith.addf %389, %390 : vector<17x1xf32>
    %392 = math.rsqrt %391 : vector<17x1xf32>
    %393 = vector.broadcast %392 : vector<17x1xf32> to vector<17x32xf32>
    %394 = arith.mulf %384, %393 : vector<17x32xf32>
    %395 = vector.broadcast %377 : vector<1x32xf32> to vector<17x32xf32>
    %396 = arith.mulf %394, %395 : vector<17x32xf32>
    %397 = vector.broadcast %378 : vector<1x32xf32> to vector<17x32xf32>
    %398 = arith.addf %396, %397 : vector<17x32xf32>
    %cst_108 = arith.constant dense<0.000000e+00> : vector<17x128xf32>
    %399 = tpu.matmul %398, %224, %cst_108 {dimension_numbers = #tpu.dot_dimension_numbers<[1], [0], [0], [1], [0, 0, 1, 1], [], []>} : vector<17x32xf32>, vector<32x128xf32>, vector<17x128xf32> -> vector<17x128xf32>
    %400 = vector.broadcast %221 : vector<1x128xf32> to vector<17x128xf32>
    %401 = arith.addf %399, %400 : vector<17x128xf32>
    %402 = arith.mulf %401, %401 : vector<17x128xf32>
    %403 = arith.mulf %401, %402 : vector<17x128xf32>
    %cst_109 = arith.constant 4.471500e-02 : f32
    %404 = vector.broadcast %cst_109 : f32 to vector<17x128xf32>
    %405 = arith.mulf %404, %403 : vector<17x128xf32>
    %406 = arith.addf %401, %405 : vector<17x128xf32>
    %cst_110 = arith.constant 0.797884583 : f32
    %407 = vector.broadcast %cst_110 : f32 to vector<17x128xf32>
    %408 = arith.mulf %407, %406 : vector<17x128xf32>
    %409 = math.tanh %408 : vector<17x128xf32>
    %cst_111 = arith.constant 1.000000e+00 : f32
    %410 = vector.broadcast %cst_111 : f32 to vector<17x128xf32>
    %411 = arith.addf %410, %409 : vector<17x128xf32>
    %cst_112 = arith.constant 5.000000e-01 : f32
    %412 = vector.broadcast %cst_112 : f32 to vector<17x128xf32>
    %413 = arith.mulf %412, %411 : vector<17x128xf32>
    %414 = arith.mulf %401, %413 : vector<17x128xf32>
    "tpu.trace_start"() <{level = 10 : i32, message = "lf,df->ld"}> : () -> ()
    %cst_113 = arith.constant dense<0.000000e+00> : vector<17x32xf32>
    %415 = tpu.matmul %414, %226, %cst_113 {dimension_numbers = #tpu.dot_dimension_numbers<[1], [1], [0], [0], [0, 0, 1, 0], [], []>} : vector<17x128xf32>, vector<32x128xf32>, vector<17x32xf32> -> vector<17x32xf32>
    "tpu.trace_stop"() : () -> ()
    %416 = arith.addf %376, %415 : vector<17x32xf32>
    %417 = vector.broadcast %222 : vector<1x32xf32> to vector<17x32xf32>
    %418 = arith.addf %416, %417 : vector<17x32xf32>
    %419 = vector.extract_strided_slice %322 {offsets = [0, 0], sizes = [1, 32], strides = [1, 1]} : vector<17x32xf32> to vector<1x32xf32>
    %420 = vector.extract_strided_slice %418 {offsets = [0, 0], sizes = [1, 32], strides = [1, 1]} : vector<17x32xf32> to vector<1x32xf32>
    %421 = tpu.concatenate %419, %420 in 0 : vector<1x32xf32>, vector<1x32xf32> -> vector<2x32xf32>
    %422 = vector.extract_strided_slice %2 {offsets = [8, 0], sizes = [1, 128], strides = [1, 1]} : vector<9x128xf32> to vector<1x128xf32>
    %423 = vector.extract_strided_slice %422 {offsets = [0, 0], sizes = [1, 32], strides = [1, 1]} : vector<1x128xf32> to vector<1x32xf32>
    %424 = vector.extract_strided_slice %422 {offsets = [0, 32], sizes = [1, 32], strides = [1, 1]} : vector<1x128xf32> to vector<1x32xf32>
    %cst_114 = arith.constant dense<0.000000e+00> : vector<2xf32>
    %425 = vector.multi_reduction <add>, %421, %cst_114 [1] : vector<2x32xf32> to vector<2xf32>
    %426 = vector.shape_cast %425 : vector<2xf32> to vector<2x1xf32>
    %cst_115 = arith.constant 3.200000e+01 : f32
    %427 = vector.broadcast %cst_115 : f32 to vector<2x1xf32>
    %428 = arith.divf %426, %427 : vector<2x1xf32>
    %429 = vector.broadcast %428 : vector<2x1xf32> to vector<2x32xf32>
    %430 = arith.subf %421, %429 : vector<2x32xf32>
    %431 = arith.mulf %430, %430 : vector<2x32xf32>
    %cst_116 = arith.constant dense<0.000000e+00> : vector<2xf32>
    %432 = vector.multi_reduction <add>, %431, %cst_116 [1] : vector<2x32xf32> to vector<2xf32>
    %433 = vector.shape_cast %432 : vector<2xf32> to vector<2x1xf32>
    %cst_117 = arith.constant 3.200000e+01 : f32
    %434 = vector.broadcast %cst_117 : f32 to vector<2x1xf32>
    %435 = arith.divf %433, %434 : vector<2x1xf32>
    %cst_118 = arith.constant 9.99999974E-6 : f32
    %436 = vector.broadcast %cst_118 : f32 to vector<2x1xf32>
    %437 = arith.addf %435, %436 : vector<2x1xf32>
    %438 = math.rsqrt %437 : vector<2x1xf32>
    %439 = vector.broadcast %438 : vector<2x1xf32> to vector<2x32xf32>
    %440 = arith.mulf %430, %439 : vector<2x32xf32>
    %441 = vector.broadcast %423 : vector<1x32xf32> to vector<2x32xf32>
    %442 = arith.mulf %440, %441 : vector<2x32xf32>
    %443 = vector.broadcast %424 : vector<1x32xf32> to vector<2x32xf32>
    %444 = arith.addf %442, %443 : vector<2x32xf32>
    %445 = arith.mulf %444, %444 : vector<2x32xf32>
    %cst_119 = arith.constant dense<0.000000e+00> : vector<2xf32>
    %446 = vector.multi_reduction <add>, %445, %cst_119 [1] : vector<2x32xf32> to vector<2xf32>
    %447 = vector.shape_cast %446 : vector<2xf32> to vector<2x1xf32>
    %448 = math.rsqrt %447 : vector<2x1xf32>
    %449 = vector.broadcast %448 : vector<2x1xf32> to vector<2x32xf32>
    %450 = arith.mulf %444, %449 : vector<2x32xf32>
    %451 = vector.extract_strided_slice %0 {offsets = [2, 0, 0], sizes = [1, 32, 128], strides = [1, 1, 1]} : vector<3x32x128xf32> to vector<1x32x128xf32>
    %452 = vector.shape_cast %451 : vector<1x32x128xf32> to vector<32x128xf32>
    %cst_120 = arith.constant dense<0.000000e+00> : vector<2x128xf32>
    %453 = tpu.matmul %450, %452, %cst_120 {dimension_numbers = #tpu.dot_dimension_numbers<[1], [0], [0], [1], [0, 0, 1, 1], [], []>} : vector<2x32xf32>, vector<32x128xf32>, vector<2x128xf32> -> vector<2x128xf32>
    %454 = arith.negf %453 : vector<2x128xf32>
    %455 = math.exp %454 : vector<2x128xf32>
    %cst_121 = arith.constant 1.000000e+00 : f32
    %456 = vector.broadcast %cst_121 : f32 to vector<2x128xf32>
    %457 = arith.addf %456, %455 : vector<2x128xf32>
    %458 = arith.divf %456, %457 : vector<2x128xf32>
    %c0_122 = arith.constant 0 : index
    %c0_123 = arith.constant 0 : index
    %459 = vector.load %arg2[%c0_122, %c0_123] : memref<2x128xf32, #tpu.memory_space<vmem>>, vector<2x128xf32>
    %460 = arith.mulf %458, %459 : vector<2x128xf32>
    %c0_124 = arith.constant 0 : index
    %c0_125 = arith.constant 0 : index
    %461 = vector.load %arg6[%c0_124, %c0_125] : memref<2x128xf32, #tpu.memory_space<vmem>>, vector<2x128xf32>
    tpu.vector_store %arg6[%c0_124, %c0_125], %460 {strides = array<i32>} : memref<2x128xf32, #tpu.memory_space<vmem>>, vector<2x128xf32>,
    return
  }
}

</mosaic_0001>

<bundles_post_ra>
// kernel: tpu_custom_call.1
= control target key start
LH: loop header
LB: loop body
LE: loop exit
PB: predicated region body
PF: predicated region fallthrough
CT: control target
= control target key end

     0   :  { %11 = vsyncpa [#allocation3], 0  ;;  %s6684_s0 = inlined_call_operand.vmem [shape: f32[2,17,32], index: 0, kind: input, shape index: {}]   ;;  %s6685_s1 = inlined_call_operand.vmem [shape: f32[2,17,17], index: 1, kind: input, shape index: {}]   ;;  %s6686_s2 = inlined_call_operand.vmem [shape: f32[2,128], index: 2, kind: input, shape index: {}]   ;;  %s6687_s3 = inlined_call_operand.hbm [shape: f32[3,32,128], index: 3, kind: input, shape index: {}]   ;;  %s6688_s4 = inlined_call_operand.vmem [shape: f32[2,2,32,128], index: 4, kind: input, shape index: {}]   ;;  %s6689_s5 = inlined_call_operand.vmem [shape: f32[9,128], index: 5, kind: input, shape index: {}]   ;;  %s6690_s6 = inlined_call_operand.hbm [shape: f32[2,128], index: 6, kind: output, shape index: {}]  }
   0x1   :  { %12 = vsyncpa [#allocation4], 0  ;;  %s5413_s21 = smov [#allocation2]   ;;  %s5365_s25 = scalar_lea.hbm %s6687_s3, 1536 }
   0x2   :  { %s24_s22 = sshll.u32 %s5413_s21, 4  ;;  %p5366_p0 = scmp.ne.s32.totalorder %s6687_s3, %s5365_s25  ;;  %s25_s22 = int_to_ptr.vmem [resolvable:$true] %s24_s22 }
   0x3   :  { %p5369_p1 = scmp.lt.u32.totalorder %s5365_s25, %s6687_s3 }
   0x5   :  { %p5371_p2 = pnand %p5369_p1, %p5366_p0 }
   0x7   :  { %5374 = shalt.err (!%p5371_p2)
}
   0x8   :  { %s5375_s30 = scalar_lea.vmem %s25_s22, 1536  ;;  %p5380_p4 = scmp.lt.s32.totalorder %s25_s22, %s25_s22 }
   0x9   :  { %p5376_p3 = scmp.ne.s32.totalorder %s25_s22, %s5375_s30  ;;  %p5381_p5 = scmp.lt.s32.totalorder %s5375_s30, %s5375_s30 }
   0xb   :  { %p5382_p6 = por %p5381_p5, %p5380_p4 }
   0xd   :  { %p5383_p7 = pnand %p5382_p6, %p5376_p3 }
   0xf   :  { %5386 = shalt.err (!%p5383_p7)
}
  0x10   :  { %s5414_s7 = smov 128   ;;  %s5415_s8 = smov 8  }
  0x11   :  { %30 = dma.hbm_to_vmem [thread:$0]  %s6687_s3, 1536, %s25_s22, [#allocation3], %s5414_s7, %s5414_s7, %s5415_s8  }
  0x12   :  { %5409 = dma.done.wait [#allocation3], 1536  }
  0x13   :  { %5410 = vsyncadd [#allocation3], 4294965760  ;;  %vm82_vm0 = vcmask 261120   ;;  %vm89_vm1 = vcmask 253952   ;;  %v5477_v0 = vld [vmem:[%s6684_s0] sm:$0xff]  ;;  %v5487_v2 = vld [vmem:[%s6684_s0 + $0x8] sm:$0xff]  ;;  %v124_v21 = vlaneseq }
  0x14   :  { %v5482_v1 = vld [vmem:[%s6684_s0 + $0x10] sm:$0x1]  ;;  %v83_v3 = vsel %vm82_vm0, %v5477_v0, 0.0  ;;  %v86_v5 = vsel %vm82_vm0, %v5487_v2, 0.0  ;;  %v5507_v24 = vld [vmem:[%s6689_s5] sm:$0xff]  ;;  %v5514_v27 = vld [vmem:[#allocation2 + $0x8] sm:$0xff] }
  0x15   :  { %v90_v4 = vsel %vm89_vm1, %v5482_v1, 0.0  ;;  %84 = vadd.xlane.f32.xlu0 %v83_v3  ;;  %v5501_v22 = vshrl.u32 %v124_v21, 7  ;;  %v5512_v26 = vld [vmem:[#allocation2] sm:$0xff]  ;;  %v5516_v28 = vld [vmem:[#allocation2 + $0x10] sm:$0xff]  ;;  %v5416_v29 = vmov 0.0|0.0   ;;  %v5525_v32 = vld [vmem:[#allocation2 + $0x18] sm:$0xff] }
  0x16   :  { %91 = vadd.xlane.f32.xlu1 %v90_v4  ;;  %4905 = vmatprep.subr.bf16.mxu0 %v5416_v29  ;;  %v5101_v30 = vpack.i.bf16 %v5514_v27, %v5512_v26  ;;  %v5523_v31 = vpack.c.bf16 %v5514_v27, %v5512_v26  ;;  %vm5417_vm2 = vmmov 0   ;;  %v5418_v33 = vmov 0.0   ;;  %s5419_s18 = smov 96   ;;  %s5420_s19 = smov 64  }
  0x17   :  { %v126_v23 = vsub.s32 0, %v5501_v22  ;;  %4390 = vmatprep.mubr.msk.f32.mxu0 %vm5417_vm2, %v5418_v33  ;;  %4911 = vmatprep.subr.bf16.mxu1 %v5416_v29  ;;  %v5537_v34 = vpack.c.bf16 %v5525_v32, %v5516_v28  ;;  %v140_v57 = vsub.s32 1, %v5501_v22  ;;  %s5421_s20 = smov 80   ;;  %vm240_vm3 = vcmask 130048   ;;  %s5422_s27 = smov 112  }
  0x18   :  { %4405 = vmatprep.mubr.msk.f32.mxu1 %vm5417_vm2, %v5418_v33  ;;  %4907 = vmatpush3.bf16.msra.mxu0 %v5523_v31  ;;  %vm5588_vm4 = vmpackc.low %vm240_vm3, %vm240_vm3  ;;  %vm373_vm5 = vcmask 1040384   ;;  %vm339_vm6 = vcmask 138240   ;;  %vm346_vm7 = vcmask 131072   ;;  %s5423_s28 = smov 48   ;;  %s5424_s29 = smov 32   ;;  %vm3917_vm8 = vcmask 254976  }
  0x19   :  { %87 = vadd.xlane.f32.xlu0 %v86_v5  ;;  %v5510_v25 = vrot.slane %v5507_v24, %v126_v23  ;;  %4908 = vmatprep.subr.bf16.mxu0 %v5416_v29  ;;  %v5561_v60 = vrot.slane %v5507_v24, %v140_v57  ;;  %s5425_s30 = smov 16  }
  0x1c   :  { %4910 = vmatpush3.bf16.msra.mxu0 %v5537_v34 }
  0x1d   :  { %4915 = vmatprep.subr.bf16.mxu0 %v5416_v29 }
  0xa2   :  { %v85_v6 = vpop.xlane.xlu0 %84 }
  0xa3   :  { %v92_v7 = vpop.xlane.xlu1 %91  ;;  %v94_v8 = vmul.f32 0.03125, %v85_v6 }
  0xa4   :  { %v96_v9 = vmul.f32 0.03125, %v92_v7 }
  0xa5   :  { %v97_v10 = vsub.f32 %v5477_v0, %v94_v8 }
  0xa6   :  { %v99_v11 = vsub.f32 %v5482_v1, %v96_v9  ;;  %v88_v12 = vpop.xlane.xlu0 %87 }
  0xa7   :  { %v95_v13 = vmul.f32 0.03125, %v88_v12  ;;  %v100_v14 = vmul.f32 %v97_v10, %v97_v10 }
  0xa8   :  { %v102_v15 = vmul.f32 %v99_v11, %v99_v11 }
  0xa9   :  { %v98_v16 = vsub.f32 %v5487_v2, %v95_v13  ;;  %v103_v17 = vsel %vm82_vm0, %v100_v14, 0.0 }
  0xaa   :  { %104 = vadd.xlane.f32.xlu1 %v103_v17  ;;  %v109_v18 = vsel %vm89_vm1, %v102_v15, 0.0 }
  0xab   :  { %v101_v19 = vmul.f32 %v98_v16, %v98_v16 }
  0xad   :  { %v106_v20 = vsel %vm82_vm0, %v101_v19, 0.0 }
  0xae   :  { %110 = vadd.xlane.f32.xlu1 %v109_v18  ;;  %107 = vadd.xlane.f32.xlu0 %v106_v20 }
  0xc4   :  { %132 = vrot.lane.b32.xlu0 %v5510_v25, %s5419_s18 }
 0x137   :  { %v105_v35 = vpop.xlane.xlu1 %104 }
 0x138   :  { %v112_v36 = vmul.f32 0.03125, %v105_v35  ;;  %v5618_v35 = vld [vmem:[%s6685_s1] sm:$0xff] }
 0x13a   :  { %v115_v37 = vadd.f32 1e-05, %v112_v36 }
 0x13b   :  { %v111_v38 = vpop.xlane.xlu1 %110  ;;  %v108_v39 = vpop.xlane.xlu0 %107 }
 0x13c   :  { %5181 = vrsqrt.f32 %v115_v37  ;;  %v114_v40 = vmul.f32 0.03125, %v111_v38  ;;  %v113_v41 = vmul.f32 0.03125, %v108_v39  ;;  %v5624_v39 = vld [vmem:[%s6685_s1 + $0x8] sm:$0xff] }
 0x13e   :  { %v117_v42 = vadd.f32 1e-05, %v114_v40  ;;  %v116_v43 = vadd.f32 1e-05, %v113_v41 }
 0x13f   :  { %v5542_v46 = vpop.permute.xlu0 %132 }
 0x140   :  { %5183 = vrsqrt.f32 %v117_v42 }
 0x141   :  { %5185 = vrsqrt.f32 %v116_v43 }
 0x146   :  { %v5182_v44 = vpop.eup %5181 }
 0x147   :  { %v121_v45 = vmul.f32 %v5182_v44, %v97_v10  ;;  %v5630_v44 = vld [vmem:[%s6685_s1 + $0x10] sm:$0x1] }
 0x149   :  { %v128_v47 = vmul.f32 %v5510_v25, %v121_v45 }
 0x14a   :  { %v5184_v48 = vpop.eup %5183 }
 0x14b   :  { %v5186_v49 = vpop.eup %5185  ;;  %v135_v50 = vadd.f32 %v5542_v46, %v128_v47  ;;  %v123_v52 = vmul.f32 %v5184_v48, %v99_v11 }
 0x14c   :  { %v122_v51 = vmul.f32 %v5186_v49, %v98_v16 }
 0x14d   :  { %4391 = vmatmul.mubr.msk.f32.vlgmr.msra.gmra.mrb[0].mxu0 %vm82_vm0, %v135_v50  ;;  %v130_v55 = vmul.f32 %v5510_v25, %v123_v52 }
 0x14e   :  { %4393 = vmatprep.mubr.msk.f32.mxu0 %vm5417_vm2, %v5418_v33  ;;  %v129_v53 = vmul.f32 %v5510_v25, %v122_v51 }
 0x14f   :  { %v137_v56 = vadd.f32 %v5542_v46, %v130_v55 }
 0x150   :  { %v136_v54 = vadd.f32 %v5542_v46, %v129_v53 }
 0x152   :  { %4394 = vmatmul.mubr.msk.f32.gmra.mrb[2].mxu0 %vm82_vm0, %v136_v54 }
 0x153   :  { %4396 = vmatprep.mubr.msk.f32.mxu0 %vm5417_vm2, %v5418_v33 }
 0x156   :  { %4397 = vmatmul.mubr.msk.f32.gmra.mrb[4].mxu0 %vm82_vm0, %v137_v56 }
 0x157   :  { %4420 = vmatprep.mubr.msk.f32.mxu0 %vm5417_vm2, %v5418_v33 }
 0x220   :  { %v217_v58 = vpop.f32.mrb[0].mxu0 }
 0x221   :  { %v4392_v59 = vpop.f32.mrb[1].mxu0  ;;  %v5564_v62 = vadd.f32 %v217_v58, %v5561_v60 }
 0x225   :  { %v222_v61 = vpop.f32.mrb[2].mxu0 }
 0x226   :  { %v5567_v63 = vadd.f32 %v222_v61, %v5561_v60  ;;  %v4395_v3 = vpop.f32.mrb[3].mxu0 }
 0x228   :  { %v5571_v4 = vpack.i.bf16 %v5567_v63, %v5564_v62 }
 0x229   :  { %v227_v5 = vpop.f32.mrb[4].mxu0 }
 0x22a   :  { %5087 = vrot.lane.b32.xlu0 %v5571_v4, %s5420_s19  ;;  %5082 = vrot.lane.b32.xlu1 %v5571_v4, %s5419_s18  ;;  %v4398_v6 = vpop.f32.mrb[5].mxu0  ;;  %v5578_v7 = vadd.f32 %v227_v5, %v5561_v60 }
 0x22e   :  { %238 = vrot.lane.b32.xlu1 %v5578_v7, %s5419_s18 }
 0x232   :  { %5092 = vrot.lane.b32.xlu1 %v5571_v4, %s5421_s20 }
 0x236   :  { %360 = vrot.lane.b32.xlu1 %v5578_v7, %s5420_s19 }
 0x29c   :  { %v5088_v8 = vpop.permute.xlu0 %5087  ;;  %v5083_v9 = vpop.permute.xlu1 %5082 }
 0x29d   :  { %v5090_v10 = vunpack.i.h.bf16 %v5088_v8  ;;  %v5089_v11 = vunpack.i.l.bf16 %v5088_v8  ;;  %v5085_v12 = vunpack.i.h.bf16 %v5083_v9  ;;  %v5084_v13 = vunpack.i.l.bf16 %v5083_v9 }
 0x29f   :  { %v4916_v15 = vpack.c.bf16 %v5090_v10, %v5089_v11  ;;  %v4912_v16 = vpack.c.bf16 %v5085_v12, %v5084_v13 }
 0x2a0   :  { %v239_v17 = vpop.permute.xlu1 %238 }
 0x2a1   :  { %4914 = vmatpush3.bf16.xpose.msk.msra.mxu1 %vm5588_vm4, %v4912_v16  ;;  %4917 = vmatpush3.bf16.msra.mxu0 %v4916_v15 }
 0x2a2   :  { %4403 = vmatprep.subr.mxu1 %v5418_v33  ;;  %4418 = vmatprep.subr.mxu0 %v5418_v33 }
 0x2a4   :  { %v5093_v18 = vpop.permute.xlu1 %5092 }
 0x2a5   :  { %v5095_v19 = vunpack.i.h.bf16 %v5093_v18  ;;  %v5094_v20 = vunpack.i.l.bf16 %v5093_v18 }
 0x2a7   :  { %v4919_v23 = vpack.c.bf16 %v5095_v19, %v5094_v20 }
 0x2a8   :  { %v361_v21 = vpop.permute.xlu1 %360 }
 0x2a9   :  { %4404 = vmatpush3.xpose.msk.msra.mxu1 %vm240_vm3, %v239_v17  ;;  %4419 = vmatpush3.msk.msra.mxu0 %vm373_vm5, %v361_v21 }
 0x2aa   :  { %5063 = vmatprep.subr.bf16.mxu1 %v5416_v29  ;;  %4918 = vmatprep.subr.bf16.mxu0 %v5416_v29 }
 0x2ac   :  { %4406 = vmatmul.mubr.msk.f32.vlgmr.msra.gmra.mrb[0].mxu1 %vm240_vm3, %v5564_v62 }
 0x2ad   :  { %5065 = vmatpush3.bf16.xpose.msk.msra.mxu1 %vm5588_vm4, %v4919_v23  ;;  %4408 = vmatprep.mubr.msk.f32.mxu1 %vm5417_vm2, %v5418_v33 }
 0x2ae   :  { %5064 = vmatprep.subr.mxu1 %v5418_v33 }
 0x2b0   :  { %4409 = vmatmul.mubr.msk.f32.gmra.mrb[2].mxu1 %vm240_vm3, %v5567_v63 }
 0x2b1   :  { %4411 = vmatprep.mubr.msk.f32.mxu1 %vm5417_vm2, %v5418_v33 }
 0x2b4   :  { %4412 = vmatmul.mubr.msk.f32.gmra.mrb[4].mxu1 %vm240_vm3, %v5578_v7 }
 0x2b5   :  { %4438 = vmatprep.mubr.msk.f32.mxu1 %vm5417_vm2, %v5418_v33 }
 0x37f   :  { %v319_v36 = vpop.f32.mrb[0].mxu1 }
 0x380   :  { %v320_v37 = vadd.f32 %v319_v36, %v5618_v35  ;;  %v4407_v38 = vpop.f32.mrb[1].mxu1 }
 0x382   :  { %v333_v40 = vmul.f32 1.442695, %v320_v37 }
 0x383   :  { %v324_v41 = vpop.f32.mrb[2].mxu1 }
 0x384   :  { %5187 = vpow2.f32 %v333_v40  ;;  %v325_v42 = vadd.f32 %v324_v41, %v5624_v39  ;;  %v4410_v43 = vpop.f32.mrb[3].mxu1 }
 0x386   :  { %v335_v45 = vmul.f32 1.442695, %v325_v42 }
 0x387   :  { %v329_v47 = vpop.f32.mrb[4].mxu1 }
 0x388   :  { %5189 = vpow2.f32 %v335_v45  ;;  %v330_v48 = vadd.f32 %v329_v47, %v5630_v44  ;;  %v4413_v49 = vpop.f32.mrb[5].mxu1 }
 0x38a   :  { %v337_v50 = vmul.f32 1.442695, %v330_v48 }
 0x38c   :  { %5191 = vpow2.f32 %v337_v50 }
 0x38e   :  { %v5188_v51 = vpop.eup %5187 }
 0x38f   :  { %v340_v52 = vsel %vm339_vm6, %v5188_v51, 0.0 }
 0x390   :  { %341 = vadd.xlane.f32.xlu1 %v340_v52 }
 0x392   :  { %v5190_v53 = vpop.eup %5189 }
 0x393   :  { %v343_v54 = vsel %vm339_vm6, %v5190_v53, 0.0 }
 0x394   :  { %344 = vadd.xlane.f32.xlu0 %v343_v54 }
 0x396   :  { %v5192_v55 = vpop.eup %5191 }
 0x397   :  { %v347_v56 = vsel %vm346_vm7, %v5192_v55, 0.0 }
 0x398   :  { %348 = vadd.xlane.f32.xlu0 %v347_v56 }
 0x3a1   :  { %466 = vrot.lane.b32.xlu1 %v5578_v7, %s5421_s20 }
 0x3a5   :  { %458 = vrot.lane.b32.xlu1 %v5567_v63, %s5422_s27 }
 0x3ae   :  { %456 = vrot.lane.b32.xlu0 %v5564_v62, %s5422_s27 }
 0x3b2   :  { %460 = vrot.lane.b32.xlu0 %v5578_v7, %s5422_s27 }
 0x41d   :  { %v342_v57 = vpop.xlane.xlu1 %341 }
 0x41e   :  { %5193 = vrcp.f32 %v342_v57 }
 0x421   :  { %v345_v58 = vpop.xlane.xlu0 %344  ;;  %v467_v59 = vpop.permute.xlu1 %466 }
 0x422   :  { %5195 = vrcp.f32 %v345_v58  ;;  %5066 = vmatpush3.xpose.msk.msra.mxu1 %vm240_vm3, %v467_v59 }
 0x423   :  { %4925 = vmatprep.subr.bf16.mxu1 %v5416_v29 }
 0x425   :  { %v349_v61 = vpop.xlane.xlu0 %348  ;;  %v459_v3 = vpop.permute.xlu1 %458 }
 0x426   :  { %5197 = vrcp.f32 %v349_v61  ;;  %4439 = vmatmul.mubr.msk.f32.vlgmr.msra.gmra.mrb[6].mxu1 %vm240_vm3, %v459_v3 }
 0x427   :  { %4441 = vmatprep.mubr.msk.f32.mxu1 %vm5417_vm2, %v5418_v33 }
 0x428   :  { %v5194_v62 = vpop.eup %5193 }
 0x429   :  { %v353_v63 = vmul.f32 %v5194_v62, %v5188_v51  ;;  %v457_v5 = vpop.permute.xlu0 %456 }
 0x42b   :  { %4421 = vmatmul.mubr.msk.f32.vlgmr.msra.gmra.mrb[6].mxu0 %vm339_vm6, %v353_v63 }
 0x42c   :  { %v5196_v6 = vpop.eup %5195  ;;  %4921 = vmatpush3.bf16.xpose.msk.msra.mxu0 %vm5588_vm4, %v4919_v23  ;;  %4423 = vmatprep.mubr.msk.f32.mxu0 %vm5417_vm2, %v5418_v33 }
 0x42d   :  { %v461_v8 = vpop.permute.xlu0 %460  ;;  %v354_v9 = vmul.f32 %v5196_v6, %v5190_v53  ;;  %4433 = vmatprep.subr.mxu0 %v5418_v33 }
 0x42e   :  { %4442 = vmatmul.mubr.msk.f32.gmra.mrb[8].mxu1 %vm240_vm3, %v461_v8 }
 0x42f   :  { %4424 = vmatmul.mubr.msk.f32.gmra.mrb[8].mxu0 %vm339_vm6, %v354_v9  ;;  %4467 = vmatprep.mubr.msk.f32.mxu1 %vm5417_vm2, %v5418_v33 }
 0x430   :  { %v5198_v10 = vpop.eup %5197  ;;  %4426 = vmatprep.mubr.msk.f32.mxu0 %vm5417_vm2, %v5418_v33 }
 0x431   :  { %v355_v11 = vmul.f32 %v5198_v10, %v5192_v55 }
 0x433   :  { %4427 = vmatmul.mubr.msk.f32.gmra.mrb[10].mxu0 %vm339_vm6, %v355_v11 }
 0x434   :  { %4434 = vmatpush3.xpose.msk.msra.mxu0 %vm240_vm3, %v467_v59  ;;  %4435 = vmatprep.mubr.msk.f32.mxu0 %vm5417_vm2, %v5418_v33 }
 0x435   :  { %4922 = vmatprep.subr.bf16.mxu0 %v5416_v29 }
 0x437   :  { %4436 = vmatmul.mubr.msk.f32.vlgmr.msra.gmra.mrb[12].mxu0 %vm240_vm3, %v457_v5 }
 0x438   :  { %4450 = vmatprep.mubr.msk.f32.mxu0 %vm5417_vm2, %v5418_v33 }
 0x4f9   :  { %v551_v12 = vpop.f32.mrb[6].mxu1 }
 0x4fa   :  { %v552_v13 = vadd.f32 %v551_v12, %v5624_v39  ;;  %v4440_v15 = vpop.f32.mrb[7].mxu1 }
 0x4fc   :  { %v562_v16 = vmul.f32 1.442695, %v552_v13 }
 0x4fe   :  { %5199 = vpow2.f32 %v562_v16  ;;  %v5670_v17 = vpop.f32.mrb[6].mxu0 }
 0x4ff   :  { %v4422_v18 = vpop.f32.mrb[7].mxu0 }
 0x501   :  { %v556_v19 = vpop.f32.mrb[8].mxu1 }
 0x502   :  { %v557_v20 = vadd.f32 %v556_v19, %v5630_v44  ;;  %v5673_v21 = vpop.f32.mrb[8].mxu0  ;;  %v4443_v23 = vpop.f32.mrb[9].mxu1 }
 0x503   :  { %v4425_v36 = vpop.f32.mrb[9].mxu0 }
 0x504   :  { %v564_v37 = vmul.f32 1.442695, %v557_v20 }
 0x506   :  { %5201 = vpow2.f32 %v564_v37  ;;  %v5675_v38 = vpop.f32.mrb[10].mxu0 }
 0x507   :  { %v4428_v40 = vpop.f32.mrb[11].mxu0 }
 0x508   :  { %v5200_v41 = vpop.eup %5199 }
 0x509   :  { %v569_v39 = vsel %vm339_vm6, %v5200_v41, 0.0 }
 0x50a   :  { %570 = vadd.xlane.f32.xlu0 %v569_v39  ;;  %v546_v42 = vpop.f32.mrb[12].mxu0 }
 0x50b   :  { %v547_v43 = vadd.f32 %v546_v42, %v5618_v35  ;;  %v4437_v45 = vpop.f32.mrb[13].mxu0  ;;  %v5106_v35 = vpack.i.bf16 %v5525_v32, %v5516_v28 }
 0x50d   :  { %v560_v47 = vmul.f32 1.442695, %v547_v43 }
 0x50f   :  { %5203 = vpow2.f32 %v560_v47 }
 0x510   :  { %v5202_v44 = vpop.eup %5201 }
 0x511   :  { %v572_v48 = vsel %vm346_vm7, %v5202_v44, 0.0 }
 0x512   :  { %573 = vadd.xlane.f32.xlu0 %v572_v48 }
 0x519   :  { %v5204_v49 = vpop.eup %5203 }
 0x51a   :  { %v566_v50 = vsel %vm339_vm6, %v5204_v49, 0.0 }
 0x51b   :  { %567 = vadd.xlane.f32.xlu1 %v566_v50  ;;  %v5760_v50 = vld [vmem:[%s6684_s0 + $0x18] sm:$0xff] }
 0x528   :  { %5097 = vrot.lane.b32.xlu0 %v5571_v4, %s5423_s28 }
 0x52c   :  { %585 = vrot.lane.b32.xlu1 %v5578_v7, %s5423_s28 }
 0x530   :  { %5102 = vrot.lane.b32.xlu1 %v5101_v30, %s5424_s29 }
 0x534   :  { %5107 = vrot.lane.b32.xlu1 %v5106_v35, %s5424_s29 }
 0x597   :  { %v571_v51 = vpop.xlane.xlu0 %570 }
 0x59f   :  { %v574_v52 = vpop.xlane.xlu0 %573 }
 0x5a3   :  { %v5098_v53 = vpop.permute.xlu0 %5097 }
 0x5a4   :  { %v5100_v54 = vunpack.i.h.bf16 %v5098_v53  ;;  %v5099_v55 = vunpack.i.l.bf16 %v5098_v53 }
 0x5a6   :  { %v4923_v4 = vpack.c.bf16 %v5100_v54, %v5099_v55 }
 0x5a8   :  { %4924 = vmatpush3.bf16.msra.mxu0 %v4923_v4  ;;  %v568_v56 = vpop.xlane.xlu1 %567 }
 0x5a9   :  { %5205 = vrcp.f32 %v568_v56  ;;  %4448 = vmatprep.subr.mxu0 %v5418_v33 }
 0x5aa   :  { %5207 = vrcp.f32 %v571_v51  ;;  %v5769_v51 = vld [vmem:[%s6684_s0 + $0x20] sm:$0xff] }
 0x5ab   :  { %5209 = vrcp.f32 %v574_v52  ;;  %v1074_v52 = vsel %vm82_vm0, %v5769_v51, 0.0 }
 0x5ac   :  { %v586_v7 = vpop.permute.xlu1 %585 }
 0x5ad   :  { %4449 = vmatpush3.msk.msra.mxu0 %vm373_vm5, %v586_v7 }
 0x5ae   :  { %4931 = vmatprep.subr.bf16.mxu0 %v5416_v29 }
 0x5b0   :  { %v5103_v58 = vpop.permute.xlu1 %5102 }
 0x5b1   :  { %v5105_v59 = vunpack.i.h.bf16 %v5103_v58  ;;  %v5104_v61 = vunpack.i.l.bf16 %v5103_v58 }
 0x5b3   :  { %v5206_v26 = vpop.eup %5205  ;;  %v5704_v3 = vpack.c.bf16 %v5105_v59, %v5104_v61 }
 0x5b4   :  { %v578_v27 = vmul.f32 %v5206_v26, %v5204_v49  ;;  %v5208_v28 = vpop.eup %5207  ;;  %v5108_v62 = vpop.permute.xlu1 %5107 }
 0x5b5   :  { %v579_v30 = vmul.f32 %v5208_v28, %v5200_v41  ;;  %v5210_v32 = vpop.eup %5209  ;;  %v5110_v63 = vunpack.i.h.bf16 %v5108_v62  ;;  %v5109_v5 = vunpack.i.l.bf16 %v5108_v62  ;;  %4927 = vmatpush3.bf16.msra.mxu1 %v5704_v3 }
 0x5b6   :  { %4451 = vmatmul.mubr.msk.f32.vlgmr.msra.gmra.mrb[14].mxu0 %vm339_vm6, %v578_v27  ;;  %v580_v57 = vmul.f32 %v5210_v32, %v5202_v44  ;;  %4928 = vmatprep.subr.bf16.mxu1 %v5416_v29 }
 0x5b7   :  { %4453 = vmatprep.mubr.msk.f32.mxu0 %vm5417_vm2, %v5418_v33  ;;  %v5708_v6 = vpack.c.bf16 %v5110_v63, %v5109_v5 }
 0x5b9   :  { %4930 = vmatpush3.bf16.msra.mxu1 %v5708_v6 }
 0x5ba   :  { %4454 = vmatmul.mubr.msk.f32.gmra.mrb[16].mxu0 %vm339_vm6, %v579_v30  ;;  %4937 = vmatprep.subr.bf16.mxu1 %v5416_v29 }
 0x5bb   :  { %4456 = vmatprep.mubr.msk.f32.mxu0 %vm5417_vm2, %v5418_v33 }
 0x5be   :  { %4457 = vmatmul.mubr.msk.f32.gmra.mrb[18].mxu0 %vm339_vm6, %v580_v57 }
 0x5bf   :  { %4484 = vmatprep.mubr.msk.f32.mxu0 %vm5417_vm2, %v5418_v33 }
 0x689   :  { %v666_v8 = vpop.f32.mrb[14].mxu0 }
 0x68a   :  { %683 = vrot.lane.b32.xlu0 %v666_v8, %s5425_s30  ;;  %v4452_v9 = vpop.f32.mrb[15].mxu0 }
 0x68d   :  { %v671_v10 = vpop.f32.mrb[16].mxu0 }
 0x68e   :  { %685 = vrot.lane.b32.xlu1 %v671_v10, %s5425_s30  ;;  %v4455_v11 = vpop.f32.mrb[17].mxu0 }
 0x691   :  { %v676_v12 = vpop.f32.mrb[18].mxu0 }
 0x692   :  { %687 = vrot.lane.b32.xlu0 %v676_v12, %s5425_s30  ;;  %v4458_v13 = vpop.f32.mrb[19].mxu0  ;;  %804 = vrot.lane.b32.xlu1 %v5561_v60, %s5424_s29 }
 0x6fc   :  { %v684_v15 = vpop.permute.xlu0 %683 }
 0x6fd   :  { %v692_v16 = vsel %vm240_vm3, %v5670_v17, %v684_v15 }
 0x6fe   :  { %4468 = vmatmul.mubr.msk.f32.vlgmr.msra.gmra.mrb[10].mxu1 %vm82_vm0, %v692_v16 }
 0x6ff   :  { %4470 = vmatprep.mubr.msk.f32.mxu1 %vm5417_vm2, %v5418_v33 }
 0x700   :  { %v686_v18 = vpop.permute.xlu1 %685 }
 0x701   :  { %v693_v19 = vsel %vm240_vm3, %v5673_v21, %v686_v18 }
 0x702   :  { %4471 = vmatmul.mubr.msk.f32.gmra.mrb[12].mxu1 %vm82_vm0, %v693_v19 }
 0x703   :  { %4473 = vmatprep.mubr.msk.f32.mxu1 %vm5417_vm2, %v5418_v33 }
 0x704   :  { %v688_v20 = vpop.permute.xlu0 %687  ;;  %v5732_v36 = vpop.permute.xlu1 %804 }
 0x705   :  { %v694_v23 = vsel %vm240_vm3, %v5675_v38, %v688_v20 }
 0x706   :  { %4474 = vmatmul.mubr.msk.f32.gmra.mrb[14].mxu1 %vm82_vm0, %v694_v23 }
 0x707   :  { %4501 = vmatprep.mubr.msk.f32.mxu1 %vm5417_vm2, %v5418_v33 }
 0x7d1   :  { %v786_v17 = vpop.f32.mrb[10].mxu1 }
 0x7d2   :  { %v800_v37 = vadd.f32 %v786_v17, %v5477_v0  ;;  %v4469_v21 = vpop.f32.mrb[11].mxu1  ;;  %v5747_v0 = vld [vmem:[%s6684_s0 + $0x28] sm:$0x1]  ;;  %v50_v17 = vld [vmem:[%s6688_s4] sm:$0xff] }
 0x7d3   :  { %v1077_v49 = vsel %vm89_vm1, %v5747_v0, 0.0 }
 0x7d4   :  { %v5736_v40 = vadd.f32 %v5732_v36, %v800_v37  ;;  %v51_v37 = vld [vmem:[%s6688_s4 + $0x8] sm:$0xff] }
 0x7d5   :  { %v791_v41 = vpop.f32.mrb[12].mxu1  ;;  %v5807_v21 = vpack.c.bf16 %v51_v37, %v50_v17 }
 0x7d6   :  { %v801_v39 = vadd.f32 %v791_v41, %v5487_v2  ;;  %v4472_v42 = vpop.f32.mrb[13].mxu1  ;;  %v810_v38 = vsel %vm82_vm0, %v5736_v40, 0.0  ;;  %v52_v41 = vld [vmem:[%s6688_s4 + $0x10] sm:$0xff] }
 0x7d7   :  { %811 = vadd.xlane.f32.xlu0 %v810_v38  ;;  %4933 = vmatpush3.bf16.msra.mxu0 %v5807_v21 }
 0x7d8   :  { %v5742_v43 = vadd.f32 %v5732_v36, %v801_v39  ;;  %4934 = vmatprep.subr.bf16.mxu0 %v5416_v29  ;;  %v53_v39 = vld [vmem:[%s6688_s4 + $0x18] sm:$0xff] }
 0x7d9   :  { %v796_v45 = vpop.f32.mrb[14].mxu1  ;;  %v5817_v42 = vpack.c.bf16 %v53_v39, %v52_v41 }
 0x7da   :  { %v802_v47 = vadd.f32 %v796_v45, %v5482_v1  ;;  %v4475_v44 = vpop.f32.mrb[15].mxu1  ;;  %v813_v2 = vsel %vm82_vm0, %v5742_v43, 0.0  ;;  %v1071_v1 = vsel %vm82_vm0, %v5760_v50, 0.0 }
 0x7db   :  { %814 = vadd.xlane.f32.xlu1 %v813_v2  ;;  %4936 = vmatpush3.bf16.msra.mxu0 %v5817_v42 }
 0x7dc   :  { %v5753_v48 = vadd.f32 %v5732_v36, %v802_v47  ;;  %4943 = vmatprep.subr.bf16.mxu0 %v5416_v29 }
 0x7de   :  { %v816_v35 = vsel %vm89_vm1, %v5753_v48, 0.0 }
 0x7df   :  { %817 = vadd.xlane.f32.xlu0 %v816_v35  ;;  %1078 = vadd.xlane.f32.xlu1 %v1077_v49 }
 0x7e3   :  { %1072 = vadd.xlane.f32.xlu0 %v1071_v1 }
 0x7e7   :  { %1075 = vadd.xlane.f32.xlu0 %v1074_v52 }
 0x864   :  { %v812_v53 = vpop.xlane.xlu0 %811 }
 0x865   :  { %v819_v28 = vmul.f32 0.03125, %v812_v53 }
 0x867   :  { %v822_v62 = vsub.f32 %v5736_v40, %v819_v28 }
 0x868   :  { %v815_v54 = vpop.xlane.xlu1 %814 }
 0x869   :  { %v820_v30 = vmul.f32 0.03125, %v815_v54  ;;  %v825_v16 = vmul.f32 %v822_v62, %v822_v62 }
 0x86b   :  { %v823_v63 = vsub.f32 %v5742_v43, %v820_v30  ;;  %v828_v19 = vsel %vm82_vm0, %v825_v16, 0.0 }
 0x86c   :  { %v818_v55 = vpop.xlane.xlu0 %817  ;;  %v1079_v4 = vpop.xlane.xlu1 %1078 }
 0x86d   :  { %v1082_v56 = vmul.f32 0.03125, %v1079_v4  ;;  %v821_v5 = vmul.f32 0.03125, %v818_v55  ;;  %v826_v15 = vmul.f32 %v823_v63, %v823_v63 }
 0x86f   :  { %v5774_v27 = vsub.f32 %v5747_v0, %v1082_v56  ;;  %v824_v12 = vsub.f32 %v5753_v48, %v821_v5  ;;  %v831_v18 = vsel %vm82_vm0, %v826_v15, 0.0 }
 0x870   :  { %v1073_v7 = vpop.xlane.xlu0 %1072 }
 0x871   :  { %v1080_v26 = vmul.f32 0.03125, %v1073_v7  ;;  %v1088_v61 = vmul.f32 %v5774_v27, %v5774_v27  ;;  %v827_v20 = vmul.f32 %v824_v12, %v824_v12 }
 0x873   :  { %v5777_v32 = vsub.f32 %v5760_v50, %v1080_v26  ;;  %v1095_v10 = vsel %vm89_vm1, %v1088_v61, 0.0  ;;  %v834_v23 = vsel %vm89_vm1, %v827_v20, 0.0 }
 0x874   :  { %v1076_v57 = vpop.xlane.xlu0 %1075 }
 0x875   :  { %v1081_v58 = vmul.f32 0.03125, %v1076_v57  ;;  %v1086_v59 = vmul.f32 %v5777_v32, %v5777_v32 }
 0x877   :  { %v5786_v8 = vsub.f32 %v5769_v51, %v1081_v58  ;;  %v1089_v9 = vsel %vm82_vm0, %v1086_v59, 0.0 }
 0x878   :  { %1090 = vadd.xlane.f32.xlu1 %v1089_v9 }
 0x879   :  { %v1087_v11 = vmul.f32 %v5786_v8, %v5786_v8 }
 0x87b   :  { %v1092_v13 = vsel %vm82_vm0, %v1087_v11, 0.0 }
 0x87c   :  { %1096 = vadd.xlane.f32.xlu1 %v1095_v10  ;;  %1093 = vadd.xlane.f32.xlu0 %v1092_v13 }
 0x880   :  { %832 = vadd.xlane.f32.xlu1 %v831_v18  ;;  %829 = vadd.xlane.f32.xlu0 %v828_v19 }
 0x884   :  { %835 = vadd.xlane.f32.xlu0 %v834_v23 }
 0x891   :  { %855 = vrot.lane.b32.xlu1 %v5510_v25, %s5424_s29 }
 0x89a   :  { %849 = vrot.lane.b32.xlu0 %v5510_v25, %s5420_s19 }
 0x905   :  { %v1091_v38 = vpop.xlane.xlu1 %1090 }
 0x906   :  { %v1098_v53 = vmul.f32 0.03125, %v1091_v38 }
 0x908   :  { %v1101_v56 = vadd.f32 1e-05, %v1098_v53 }
 0x909   :  { %v1097_v45 = vpop.xlane.xlu1 %1096  ;;  %v1094_v47 = vpop.xlane.xlu0 %1093 }
 0x90a   :  { %v1099_v7 = vmul.f32 0.03125, %v1094_v47  ;;  %v1100_v26 = vmul.f32 0.03125, %v1097_v45  ;;  %v57_v45 = vld [vmem:[%s6688_s4 + $0x38] sm:$0xff] }
 0x90c   :  { %v1102_v28 = vadd.f32 1e-05, %v1099_v7  ;;  %v1103_v58 = vadd.f32 1e-05, %v1100_v26 }
 0x90d   :  { %v833_v44 = vpop.xlane.xlu1 %832  ;;  %v830_v2 = vpop.xlane.xlu0 %829 }
 0x90e   :  { %v838_v49 = vmul.f32 0.03125, %v833_v44  ;;  %v837_v35 = vmul.f32 0.03125, %v830_v2  ;;  %v863_v44 = vsub.s32 2, %v5501_v22 }
 0x910   :  { %v841_v1 = vadd.f32 1e-05, %v838_v49  ;;  %v840_v52 = vadd.f32 1e-05, %v837_v35  ;;  %v5884_v2 = vrot.slane %v5507_v24, %v863_v44 }
 0x911   :  { %v836_v54 = vpop.xlane.xlu0 %835  ;;  %v5823_v9 = vpop.permute.xlu1 %855 }
 0x912   :  { %5211 = vrsqrt.f32 %v841_v1  ;;  %v839_v55 = vmul.f32 0.03125, %v836_v54 }
 0x913   :  { %5213 = vrsqrt.f32 %v840_v52 }
 0x914   :  { %v842_v4 = vadd.f32 1e-05, %v839_v55 }
 0x915   :  { %v5821_v59 = vpop.permute.xlu0 %849 }
 0x916   :  { %5215 = vrsqrt.f32 %v842_v4 }
 0x917   :  { %5217 = vrsqrt.f32 %v1101_v56 }
 0x918   :  { %5219 = vrsqrt.f32 %v1102_v28 }
 0x919   :  { %5221 = vrsqrt.f32 %v1103_v58 }
 0x91c   :  { %v5212_v30 = vpop.eup %5211 }
 0x91d   :  { %v5214_v57 = vpop.eup %5213  ;;  %v847_v5 = vmul.f32 %v5212_v30, %v823_v63 }
 0x91e   :  { %v846_v61 = vmul.f32 %v5214_v57, %v822_v62 }
 0x91f   :  { %v853_v15 = vmul.f32 %v5821_v59, %v847_v5 }
 0x920   :  { %v5216_v10 = vpop.eup %5215  ;;  %v852_v11 = vmul.f32 %v5821_v59, %v846_v61 }
 0x921   :  { %v848_v16 = vmul.f32 %v5216_v10, %v824_v12  ;;  %v5218_v18 = vpop.eup %5217  ;;  %v859_v63 = vadd.f32 %v5823_v9, %v853_v15 }
 0x922   :  { %v858_v13 = vadd.f32 %v5823_v9, %v852_v11  ;;  %v1107_v62 = vmul.f32 %v5218_v18, %v5777_v32  ;;  %v5220_v20 = vpop.eup %5219 }
 0x923   :  { %v854_v19 = vmul.f32 %v5821_v59, %v848_v16  ;;  %v1108_v32 = vmul.f32 %v5220_v20, %v5786_v8  ;;  %v5222_v23 = vpop.eup %5221 }
 0x924   :  { %4485 = vmatmul.mubr.msk.f32.vlgmr.msra.gmra.mrb[20].mxu0 %vm82_vm0, %v858_v13  ;;  %v1110_v12 = vmul.f32 %v1107_v62, %v5510_v25 }
 0x925   :  { %4487 = vmatprep.mubr.msk.f32.mxu0 %vm5417_vm2, %v5418_v33  ;;  %4945 = vmatpush3.bf16.msra.mxu0 %v5523_v31  ;;  %v860_v31 = vadd.f32 %v5823_v9, %v854_v19  ;;  %v1111_v37 = vmul.f32 %v1108_v32, %v5510_v25 }
 0x926   :  { %4946 = vmatprep.subr.bf16.mxu0 %v5416_v29  ;;  %v1113_v17 = vadd.f32 %v1110_v12, %v5542_v46 }
 0x927   :  { %v1114_v8 = vadd.f32 %v1111_v37, %v5542_v46 }
 0x928   :  { %4488 = vmatmul.mubr.msk.f32.gmra.mrb[22].mxu0 %vm82_vm0, %v859_v63 }
 0x929   :  { %4490 = vmatprep.mubr.msk.f32.mxu0 %vm5417_vm2, %v5418_v33  ;;  %4948 = vmatpush3.bf16.msra.mxu0 %v5537_v34  ;;  %v1109_v34 = vmul.f32 %v5222_v23, %v5774_v27  ;;  %v54_v27 = vld [vmem:[%s6688_s4 + $0x20] sm:$0xff] }
 0x92a   :  { %4953 = vmatprep.subr.bf16.mxu0 %v5416_v29 }
 0x92b   :  { %v1112_v41 = vmul.f32 %v1109_v34, %v5510_v25  ;;  %v55_v25 = vld [vmem:[%s6688_s4 + $0x28] sm:$0xff] }
 0x92c   :  { %4491 = vmatmul.mubr.msk.f32.gmra.mrb[24].mxu0 %vm82_vm0, %v860_v31  ;;  %v5868_v38 = vpack.c.bf16 %v55_v25, %v54_v27 }
 0x92d   :  { %4518 = vmatprep.mubr.msk.f32.mxu0 %vm5417_vm2, %v5418_v33  ;;  %v1115_v39 = vadd.f32 %v1112_v41, %v5542_v46  ;;  %v56_v46 = vld [vmem:[%s6688_s4 + $0x30] sm:$0xff] }
 0x92e   :  { %4939 = vmatpush3.bf16.xpose.msra.mxu1 %v5868_v38  ;;  %v5878_v47 = vpack.c.bf16 %v57_v45, %v56_v46 }
 0x92f   :  { %4940 = vmatprep.subr.bf16.mxu1 %v5416_v29 }
 0x930   :  { %4519 = vmatmul.mubr.msk.f32.vlgmr.msra.gmra.mrb[26].mxu0 %vm82_vm0, %v1113_v17 }
 0x931   :  { %4521 = vmatprep.mubr.msk.f32.mxu0 %vm5417_vm2, %v5418_v33 }
 0x934   :  { %4522 = vmatmul.mubr.msk.f32.gmra.mrb[28].mxu0 %vm82_vm0, %v1114_v8 }
 0x935   :  { %4524 = vmatprep.mubr.msk.f32.mxu0 %vm5417_vm2, %v5418_v33 }
 0x936   :  { %4942 = vmatpush3.bf16.xpose.msra.mxu1 %v5878_v47 }
 0x937   :  { %4949 = vmatprep.subr.bf16.mxu1 %v5416_v29 }
 0x938   :  { %4525 = vmatmul.mubr.msk.f32.gmra.mrb[30].mxu0 %vm82_vm0, %v1115_v39 }
 0x939   :  { %4548 = vmatprep.mubr.msk.f32.mxu0 %vm5417_vm2, %v5418_v33 }
 0x9f7   :  { %v940_v49 = vpop.f32.mrb[20].mxu0 }
 0x9f8   :  { %v941_v35 = vadd.f32 %v940_v49, %v5884_v2  ;;  %v4486_v1 = vpop.f32.mrb[21].mxu0 }
 0x9fa   :  { %v954_v52 = vmul.f32 %v941_v35, %v941_v35 }
 0x9fb   :  { %v945_v53 = vpop.f32.mrb[22].mxu0 }
 0x9fc   :  { %v957_v54 = vmul.f32 %v954_v52, %v941_v35  ;;  %v946_v55 = vadd.f32 %v945_v53, %v5884_v2  ;;  %v4489_v4 = vpop.f32.mrb[23].mxu0 }
 0x9fe   :  { %v960_v56 = vmul.f32 0.044715, %v957_v54  ;;  %v955_v7 = vmul.f32 %v946_v55, %v946_v55 }
 0x9ff   :  { %v950_v26 = vpop.f32.mrb[24].mxu0 }
 0xa00   :  { %v963_v28 = vadd.f32 %v960_v56, %v941_v35  ;;  %v958_v30 = vmul.f32 %v955_v7, %v946_v55  ;;  %v951_v57 = vadd.f32 %v950_v26, %v5884_v2  ;;  %v4492_v58 = vpop.f32.mrb[25].mxu0 }
 0xa02   :  { %v966_v24 = vmul.f32 0.7978846, %v963_v28  ;;  %v961_v61 = vmul.f32 0.044715, %v958_v30  ;;  %v956_v5 = vmul.f32 %v951_v57, %v951_v57 }
 0xa03   :  { %v1191_v10 = vpop.f32.mrb[26].mxu0 }
 0xa04   :  { %5223 = vtanh.f32 %v966_v24  ;;  %v964_v11 = vadd.f32 %v961_v61, %v946_v55  ;;  %v959_v13 = vmul.f32 %v956_v5, %v951_v57  ;;  %v4520_v15 = vpop.f32.mrb[27].mxu0  ;;  %v1192_v19 = vadd.f32 %v1191_v10, %v5561_v60 }
 0xa06   :  { %v967_v16 = vmul.f32 0.7978846, %v964_v11  ;;  %v962_v18 = vmul.f32 0.044715, %v959_v13 }
 0xa07   :  { %v1196_v62 = vpop.f32.mrb[28].mxu0 }
 0xa08   :  { %v965_v63 = vadd.f32 %v962_v18, %v951_v57  ;;  %v5891_v20 = vadd.f32 %v1196_v62, %v5561_v60  ;;  %v4523_v12 = vpop.f32.mrb[29].mxu0  ;;  %5225 = vtanh.f32 %v967_v16 }
 0xa09   :  { %v4048_v12 = vld [vmem:[%s6685_s1 + $0x20] sm:$0xff] }
 0xa0a   :  { %v968_v31 = vmul.f32 0.7978846, %v965_v63  ;;  %v5894_v32 = vpack.i.bf16 %v5891_v20, %v1192_v19 }
 0xa0b   :  { %v1201_v23 = vpop.f32.mrb[30].mxu0 }
 0xa0c   :  { %5117 = vrot.lane.b32.xlu0 %v5894_v32, %s5421_s20  ;;  %5112 = vrot.lane.b32.xlu1 %v5894_v32, %s5419_s18  ;;  %v4526_v17 = vpop.f32.mrb[31].mxu0  ;;  %5227 = vtanh.f32 %v968_v31  ;;  %v5901_v34 = vadd.f32 %v1201_v23, %v5561_v60 }
 0xa0e   :  { %v5224_v37 = vpop.eup %5223 }
 0xa0f   :  { %v972_v8 = vadd.f32 1.0, %v5224_v37 }
 0xa10   :  { %1426 = vrot.lane.b32.xlu0 %v1192_v19, %s5422_s27  ;;  %1212 = vrot.lane.b32.xlu1 %v5901_v34, %s5419_s18 }
 0xa11   :  { %v975_v41 = vmul.f32 0.5, %v972_v8  ;;  %v4049_v8 = vld [vmem:[%s6685_s1 + $0x28] sm:$0x1] }
 0xa12   :  { %v5226_v39 = vpop.eup %5225 }
 0xa13   :  { %v978_v27 = vmul.f32 %v975_v41, %v941_v35  ;;  %v973_v25 = vadd.f32 1.0, %v5226_v39 }
 0xa14   :  { %1430 = vrot.lane.b32.xlu0 %v5901_v34, %s5422_s27  ;;  %1436 = vrot.lane.b32.xlu1 %v5901_v34, %s5421_s20 }
 0xa15   :  { %4502 = vmatmul.mubr.f32.vlgmr.msra.gmra.mrb[16].mxu1 %v978_v27  ;;  %v976_v46 = vmul.f32 0.5, %v973_v25 }
 0xa16   :  { %v5228_v60 = vpop.eup %5227  ;;  %4504 = vmatprep.mubr.msk.f32.mxu1 %vm5417_vm2, %v5418_v33 }
 0xa17   :  { %v979_v45 = vmul.f32 %v976_v46, %v946_v55  ;;  %v974_v44 = vadd.f32 1.0, %v5228_v60 }
 0xa18   :  { %5122 = vrot.lane.b32.xlu0 %v5894_v32, %s5420_s19  ;;  %1428 = vrot.lane.b32.xlu1 %v5891_v20, %s5422_s27 }
 0xa19   :  { %4505 = vmatmul.mubr.f32.gmra.mrb[18].mxu1 %v979_v45  ;;  %v977_v49 = vmul.f32 0.5, %v974_v44 }
 0xa1a   :  { %4507 = vmatprep.mubr.msk.f32.mxu1 %vm5417_vm2, %v5418_v33 }
 0xa1b   :  { %v980_v35 = vmul.f32 %v977_v49, %v951_v57 }
 0xa1c   :  { %1331 = vrot.lane.b32.xlu1 %v5901_v34, %s5420_s19 }
 0xa1d   :  { %4508 = vmatmul.mubr.f32.gmra.mrb[20].mxu1 %v980_v35 }
 0xa1e   :  { %4533 = vmatprep.mubr.msk.f32.mxu1 %vm5417_vm2, %v5418_v33 }
 0xa7e   :  { %v5118_v1 = vpop.permute.xlu0 %5117  ;;  %v5113_v52 = vpop.permute.xlu1 %5112 }
 0xa7f   :  { %v5115_v53 = vunpack.i.h.bf16 %v5113_v52  ;;  %v5114_v54 = vunpack.i.l.bf16 %v5113_v52  ;;  %v5120_v28 = vunpack.i.h.bf16 %v5118_v1  ;;  %v5119_v30 = vunpack.i.l.bf16 %v5118_v1 }
 0xa81   :  { %v4950_v55 = vpack.c.bf16 %v5115_v53, %v5114_v54  ;;  %v4957_v5 = vpack.c.bf16 %v5120_v28, %v5119_v30 }
 0xa82   :  { %v1427_v4 = vpop.permute.xlu0 %1426  ;;  %v1213_v56 = vpop.permute.xlu1 %1212 }
 0xa83   :  { %4952 = vmatpush3.bf16.xpose.msk.msra.mxu1 %vm5588_vm4, %v4950_v55 }
 0xa84   :  { %4531 = vmatprep.subr.mxu1 %v5418_v33 }
 0xa86   :  { %v1431_v7 = vpop.permute.xlu0 %1430  ;;  %v1437_v26 = vpop.permute.xlu1 %1436 }
 0xa8a   :  { %v5123_v57 = vpop.permute.xlu0 %5122  ;;  %v1429_v61 = vpop.permute.xlu1 %1428 }
 0xa8b   :  { %v5125_v58 = vunpack.i.h.bf16 %v5123_v57  ;;  %v5124_v24 = vunpack.i.l.bf16 %v5123_v57  ;;  %4532 = vmatpush3.xpose.msk.msra.mxu1 %vm240_vm3, %v1213_v56 }
 0xa8c   :  { %4956 = vmatprep.subr.bf16.mxu1 %v5416_v29 }
 0xa8d   :  { %v4954_v10 = vpack.c.bf16 %v5125_v58, %v5124_v24 }
 0xa8e   :  { %4534 = vmatmul.mubr.msk.f32.vlgmr.msra.gmra.mrb[22].mxu1 %vm240_vm3, %v1192_v19  ;;  %v1332_v11 = vpop.permute.xlu1 %1331 }
 0xa8f   :  { %4955 = vmatpush3.bf16.msra.mxu0 %v4954_v10  ;;  %4959 = vmatpush3.bf16.xpose.msk.msra.mxu1 %vm5588_vm4, %v4957_v5 }
 0xa90   :  { %4536 = vmatprep.mubr.msk.f32.mxu1 %vm5417_vm2, %v5418_v33  ;;  %4546 = vmatprep.subr.mxu0 %v5418_v33 }
 0xa91   :  { %4561 = vmatprep.subr.mxu1 %v5418_v33 }
 0xa92   :  { %4537 = vmatmul.mubr.msk.f32.gmra.mrb[24].mxu1 %vm240_vm3, %v5891_v20 }
 0xa93   :  { %4547 = vmatpush3.msk.msra.mxu0 %vm373_vm5, %v1332_v11  ;;  %4539 = vmatprep.mubr.msk.f32.mxu1 %vm5417_vm2, %v5418_v33 }
 0xa94   :  { %4960 = vmatprep.subr.bf16.mxu0 %v5416_v29 }
 0xa96   :  { %4540 = vmatmul.mubr.msk.f32.gmra.mrb[26].mxu1 %vm240_vm3, %v5901_v34 }
 0xa97   :  { %4562 = vmatpush3.xpose.msk.msra.mxu1 %vm240_vm3, %v1437_v26  ;;  %4563 = vmatprep.mubr.msk.f32.mxu1 %vm5417_vm2, %v5418_v33 }
 0xa98   :  { %4963 = vmatprep.subr.bf16.mxu1 %v5416_v29 }
 0xa9a   :  { %4564 = vmatmul.mubr.msk.f32.vlgmr.msra.gmra.mrb[28].mxu1 %vm240_vm3, %v1427_v4 }
 0xa9b   :  { %4965 = vmatpush3.bf16.msra.mxu1 %v5704_v3  ;;  %4566 = vmatprep.mubr.msk.f32.mxu1 %vm5417_vm2, %v5418_v33 }
 0xa9c   :  { %4966 = vmatprep.subr.bf16.mxu1 %v5416_v29 }
 0xa9e   :  { %4567 = vmatmul.mubr.msk.f32.gmra.mrb[30].mxu1 %vm240_vm3, %v1429_v61 }
 0xa9f   :  { %4968 = vmatpush3.bf16.msra.mxu1 %v5708_v6  ;;  %4569 = vmatprep.mubr.msk.f32.mxu1 %vm5417_vm2, %v5418_v33  ;;  %v4047_v6 = vld [vmem:[%s6685_s1 + $0x18] sm:$0xff] }
 0xaa0   :  { %4975 = vmatprep.subr.bf16.mxu1 %v5416_v29 }
 0xaa2   :  { %4570 = vmatmul.mubr.msk.f32.gmra.mrb[32].mxu1 %vm240_vm3, %v1431_v7 }
 0xaa3   :  { %4595 = vmatprep.mubr.msk.f32.mxu1 %vm5417_vm2, %v5418_v33 }
 0xae8   :  { %v5959_v3 = vpop.f32.mrb[16].mxu1 }
 0xae9   :  { %v4503_v13 = vpop.f32.mrb[17].mxu1 }
 0xaec   :  { %v5961_v15 = vpop.f32.mrb[18].mxu1 }
 0xaed   :  { %v4506_v16 = vpop.f32.mrb[19].mxu1 }
 0xaf0   :  { %v5963_v18 = vpop.f32.mrb[20].mxu1 }
 0xaf1   :  { %v4509_v62 = vpop.f32.mrb[21].mxu1 }
 0xb61   :  { %v1292_v63 = vpop.f32.mrb[22].mxu1 }
 0xb62   :  { %v1293_v19 = vadd.f32 %v4047_v6, %v1292_v63  ;;  %v4535_v20 = vpop.f32.mrb[23].mxu1 }
 0xb64   :  { %v1306_v31 = vmul.f32 1.442695, %v1293_v19 }
 0xb65   :  { %v1297_v23 = vpop.f32.mrb[24].mxu1 }
 0xb66   :  { %5229 = vpow2.f32 %v1306_v31  ;;  %v1298_v17 = vadd.f32 %v4048_v12, %v1297_v23  ;;  %v4538_v37 = vpop.f32.mrb[25].mxu1 }
 0xb68   :  { %v1308_v41 = vmul.f32 1.442695, %v1298_v17 }
 0xb69   :  { %v1302_v39 = vpop.f32.mrb[26].mxu1 }
 0xb6a   :  { %5231 = vpow2.f32 %v1308_v41  ;;  %v1303_v27 = vadd.f32 %v4049_v8, %v1302_v39  ;;  %v4541_v25 = vpop.f32.mrb[27].mxu1 }
 0xb6c   :  { %v1310_v46 = vmul.f32 1.442695, %v1303_v27 }
 0xb6d   :  { %v1516_v60 = vpop.f32.mrb[28].mxu1 }
 0xb6e   :  { %5233 = vpow2.f32 %v1310_v46  ;;  %v1517_v45 = vadd.f32 %v4047_v6, %v1516_v60  ;;  %v4565_v44 = vpop.f32.mrb[29].mxu1 }
 0xb70   :  { %v5230_v49 = vpop.eup %5229  ;;  %v1530_v35 = vmul.f32 1.442695, %v1517_v45 }
 0xb71   :  { %v1521_v1 = vpop.f32.mrb[30].mxu1  ;;  %v1312_v52 = vsel %vm339_vm6, %v5230_v49, 0.0 }
 0xb72   :  { %5235 = vpow2.f32 %v1530_v35  ;;  %v1522_v53 = vadd.f32 %v4048_v12, %v1521_v1  ;;  %1313 = vadd.xlane.f32.xlu1 %v1312_v52  ;;  %v4568_v54 = vpop.f32.mrb[31].mxu1 }
 0xb74   :  { %v5232_v55 = vpop.eup %5231  ;;  %v1532_v4 = vmul.f32 1.442695, %v1522_v53 }
 0xb75   :  { %v1526_v56 = vpop.f32.mrb[32].mxu1  ;;  %v1315_v7 = vsel %vm339_vm6, %v5232_v55, 0.0 }
 0xb76   :  { %5237 = vpow2.f32 %v1532_v4  ;;  %v1527_v26 = vadd.f32 %v4049_v8, %v1526_v56  ;;  %1316 = vadd.xlane.f32.xlu0 %v1315_v7  ;;  %v4571_v28 = vpop.f32.mrb[33].mxu1 }
 0xb78   :  { %v5234_v30 = vpop.eup %5233  ;;  %v1534_v57 = vmul.f32 1.442695, %v1527_v26 }
 0xb79   :  { %v1318_v58 = vsel %vm346_vm7, %v5234_v30, 0.0 }
 0xb7a   :  { %5239 = vpow2.f32 %v1534_v57  ;;  %1319 = vadd.xlane.f32.xlu0 %v1318_v58 }
 0xb7c   :  { %v5236_v24 = vpop.eup %5235 }
 0xb7d   :  { %v1536_v61 = vsel %vm339_vm6, %v5236_v24, 0.0 }
 0xb7e   :  { %1537 = vadd.xlane.f32.xlu0 %v1536_v61 }
 0xb80   :  { %v5238_v5 = vpop.eup %5237 }
 0xb81   :  { %v1539_v10 = vsel %vm339_vm6, %v5238_v5, 0.0 }
 0xb82   :  { %1540 = vadd.xlane.f32.xlu1 %v1539_v10 }
 0xb84   :  { %v5240_v11 = vpop.eup %5239 }
 0xb85   :  { %v1542_v13 = vsel %vm346_vm7, %v5240_v11, 0.0 }
 0xb86   :  { %1543 = vadd.xlane.f32.xlu1 %v1542_v13 }
 0xb94   :  { %1555 = vrot.lane.b32.xlu0 %v5901_v34, %s5423_s28 }
 0xb97   :  { %5127 = vrot.lane.b32.xlu1 %v5894_v32, %s5423_s28 }
 0xbff   :  { %v1314_v16 = vpop.xlane.xlu1 %1313 }
 0xc00   :  { %5241 = vrcp.f32 %v1314_v16 }
 0xc03   :  { %v1317_v62 = vpop.xlane.xlu0 %1316 }
 0xc04   :  { %5243 = vrcp.f32 %v1317_v62  ;;  %v1063_v62 = vadd.f32 %v5963_v18, %v5753_v48  ;;  %v1061_v48 = vadd.f32 %v5959_v3, %v5736_v40 }
 0xc07   :  { %v1320_v6 = vpop.xlane.xlu0 %1319 }
 0xc08   :  { %5245 = vrcp.f32 %v1320_v6 }
 0xc0a   :  { %v5242_v63 = vpop.eup %5241 }
 0xc0b   :  { %v1324_v19 = vmul.f32 %v5242_v63, %v5230_v49  ;;  %v1538_v12 = vpop.xlane.xlu0 %1537 }
 0xc0c   :  { %5247 = vrcp.f32 %v1538_v12 }
 0xc0d   :  { %4549 = vmatmul.mubr.msk.f32.vlgmr.msra.gmra.mrb[32].mxu0 %vm339_vm6, %v1324_v19 }
 0xc0e   :  { %v5244_v20 = vpop.eup %5243  ;;  %4551 = vmatprep.mubr.msk.f32.mxu0 %vm5417_vm2, %v5418_v33 }
 0xc0f   :  { %v1541_v31 = vpop.xlane.xlu1 %1540  ;;  %v1325_v34 = vmul.f32 %v5244_v20, %v5232_v55  ;;  %v1556_v46 = vpop.permute.xlu0 %1555 }
 0xc10   :  { %5249 = vrcp.f32 %v1541_v31 }
 0xc11   :  { %4552 = vmatmul.mubr.msk.f32.gmra.mrb[34].mxu0 %vm339_vm6, %v1325_v34 }
 0xc12   :  { %v5246_v32 = vpop.eup %5245  ;;  %4554 = vmatprep.mubr.msk.f32.mxu0 %vm5417_vm2, %v5418_v33 }
 0xc13   :  { %v1544_v23 = vpop.xlane.xlu1 %1543  ;;  %v1326_v17 = vmul.f32 %v5246_v32, %v5234_v30 }
 0xc14   :  { %5251 = vrcp.f32 %v1544_v23 }
 0xc15   :  { %4555 = vmatmul.mubr.msk.f32.gmra.mrb[36].mxu0 %vm339_vm6, %v1326_v17  ;;  %v1062_v17 = vadd.f32 %v5961_v15, %v5742_v43 }
 0xc16   :  { %4578 = vmatprep.mubr.msk.f32.mxu0 %vm5417_vm2, %v5418_v33  ;;  %v5248_v27 = vpop.eup %5247 }
 0xc17   :  { %v5128_v37 = vpop.permute.xlu1 %5127  ;;  %v1548_v25 = vmul.f32 %v5248_v27, %v5236_v24 }
 0xc18   :  { %v5130_v8 = vunpack.i.h.bf16 %v5128_v37  ;;  %v5129_v41 = vunpack.i.l.bf16 %v5128_v37 }
 0xc1a   :  { %v4961_v39 = vpack.c.bf16 %v5130_v8, %v5129_v41  ;;  %v5250_v60 = vpop.eup %5249 }
 0xc1b   :  { %v1549_v45 = vmul.f32 %v5250_v60, %v5238_v5 }
 0xc1c   :  { %4962 = vmatpush3.bf16.msra.mxu0 %v4961_v39 }
 0xc1d   :  { %4576 = vmatprep.subr.mxu0 %v5418_v33 }
 0xc1e   :  { %v5252_v44 = vpop.eup %5251 }
 0xc1f   :  { %v1550_v49 = vmul.f32 %v5252_v44, %v5240_v11  ;;  %v1066_v11 = vsub.s32 3, %v5501_v22 }
 0xc20   :  { %4577 = vmatpush3.msk.msra.mxu0 %vm373_vm5, %v1556_v46 }
 0xc21   :  { %4579 = vmatmul.mubr.msk.f32.vlgmr.msra.gmra.mrb[38].mxu0 %vm339_vm6, %v1548_v25  ;;  %4969 = vmatprep.subr.bf16.mxu0 %v5416_v29 }
 0xc22   :  { %4581 = vmatprep.mubr.msk.f32.mxu0 %vm5417_vm2, %v5418_v33  ;;  %4971 = vmatpush3.bf16.msra.mxu0 %v5807_v21 }
 0xc23   :  { %4972 = vmatprep.subr.bf16.mxu0 %v5416_v29 }
 0xc25   :  { %4582 = vmatmul.mubr.msk.f32.gmra.mrb[40].mxu0 %vm339_vm6, %v1549_v45 }
 0xc26   :  { %4584 = vmatprep.mubr.msk.f32.mxu0 %vm5417_vm2, %v5418_v33  ;;  %4974 = vmatpush3.bf16.msra.mxu0 %v5817_v42 }
 0xc27   :  { %4981 = vmatprep.subr.bf16.mxu0 %v5416_v29 }
 0xc29   :  { %4585 = vmatmul.mubr.msk.f32.gmra.mrb[42].mxu0 %vm339_vm6, %v1550_v49 }
 0xc2a   :  { %4612 = vmatprep.mubr.msk.f32.mxu0 %vm5417_vm2, %v5418_v33 }
 0xce0   :  { %v1412_v21 = vpop.f32.mrb[32].mxu0 }
 0xce1   :  { %v4550_v35 = vpop.f32.mrb[33].mxu0 }
 0xce4   :  { %v1417_v1 = vpop.f32.mrb[34].mxu0 }
 0xce5   :  { %v4553_v52 = vpop.f32.mrb[35].mxu0 }
 0xce8   :  { %v1422_v53 = vpop.f32.mrb[36].mxu0 }
 0xce9   :  { %v4556_v54 = vpop.f32.mrb[37].mxu0 }
 0xcf4   :  { %v1636_v55 = vpop.f32.mrb[38].mxu0 }
 0xcf5   :  { %1653 = vrot.lane.b32.xlu1 %v1636_v55, %s5425_s30  ;;  %v4580_v4 = vpop.f32.mrb[39].mxu0 }
 0xcf8   :  { %v1641_v56 = vpop.f32.mrb[40].mxu0 }
 0xcf9   :  { %1655 = vrot.lane.b32.xlu0 %v1641_v56, %s5425_s30  ;;  %v4583_v42 = vpop.f32.mrb[41].mxu0 }
 0xcfc   :  { %v1646_v7 = vpop.f32.mrb[42].mxu0 }
 0xcfd   :  { %1657 = vrot.lane.b32.xlu1 %v1646_v7, %s5425_s30  ;;  %v4586_v26 = vpop.f32.mrb[43].mxu0 }
 0xd67   :  { %v1654_v28 = vpop.permute.xlu1 %1653 }
 0xd68   :  { %v1662_v30 = vsel %vm240_vm3, %v1412_v21, %v1654_v28 }
 0xd69   :  { %4596 = vmatmul.mubr.msk.f32.vlgmr.msra.gmra.mrb[34].mxu1 %vm82_vm0, %v1662_v30 }
 0xd6a   :  { %4598 = vmatprep.mubr.msk.f32.mxu1 %vm5417_vm2, %v5418_v33  ;;  %4977 = vmatpush3.bf16.xpose.msra.mxu1 %v5868_v38 }
 0xd6b   :  { %v1656_v57 = vpop.permute.xlu0 %1655  ;;  %4978 = vmatprep.subr.bf16.mxu1 %v5416_v29 }
 0xd6c   :  { %v1663_v58 = vsel %vm240_vm3, %v1417_v1, %v1656_v57 }
 0xd6d   :  { %4599 = vmatmul.mubr.msk.f32.gmra.mrb[36].mxu1 %vm82_vm0, %v1663_v58 }
 0xd6e   :  { %4601 = vmatprep.mubr.msk.f32.mxu1 %vm5417_vm2, %v5418_v33 }
 0xd6f   :  { %v1658_v24 = vpop.permute.xlu1 %1657 }
 0xd70   :  { %v1664_v61 = vsel %vm240_vm3, %v1422_v53, %v1658_v24 }
 0xd71   :  { %4602 = vmatmul.mubr.msk.f32.gmra.mrb[38].mxu1 %vm82_vm0, %v1664_v61 }
 0xd72   :  { %4980 = vmatpush3.bf16.xpose.msra.mxu1 %v5878_v47  ;;  %4629 = vmatprep.mubr.msk.f32.mxu1 %vm5417_vm2, %v5418_v33 }
 0xd73   :  { %4991 = vmatprep.subr.bf16.mxu1 %v5416_v29 }
 0xe3c   :  { %v1740_v38 = vpop.f32.mrb[34].mxu1 }
 0xe3d   :  { %v1754_v5 = vadd.f32 %v5760_v50, %v1740_v38  ;;  %v4597_v10 = vpop.f32.mrb[35].mxu1  ;;  %v6041_v50 = vld [vmem:[%s6689_s5] sm:$0xff]  ;;  %v2048_v38 = vsub.s32 4, %v5501_v22 }
 0xe3e   :  { %v6044_v19 = vrot.slane %v6041_v50, %v1066_v11 }
 0xe3f   :  { %v6031_v13 = vadd.f32 %v1754_v5, %v5732_v36  ;;  %v6110_v5 = vrot.slane %v6041_v50, %v2048_v38 }
 0xe40   :  { %v1745_v16 = vpop.f32.mrb[36].mxu1  ;;  %v6061_v23 = vadd.f32 %v6044_v19, %v1061_v48  ;;  %v6070_v3 = vadd.f32 %v6044_v19, %v1062_v17 }
 0xe41   :  { %v1755_v47 = vadd.f32 %v5769_v51, %v1745_v16  ;;  %v4600_v6 = vpop.f32.mrb[37].mxu1  ;;  %v1760_v63 = vsel %vm82_vm0, %v6031_v13, 0.0  ;;  %v6052_v51 = vadd.f32 %v6044_v19, %v1063_v62 }
 0xe42   :  { %1761 = vadd.xlane.f32.xlu0 %v1760_v63  ;;  %v2010_v37 = vsel %vm82_vm0, %v6070_v3, 0.0 }
 0xe43   :  { %v6047_v20 = vadd.f32 %v1755_v47, %v5732_v36  ;;  %v2013_v40 = vsel %vm89_vm1, %v6052_v51, 0.0 }
 0xe44   :  { %v1750_v12 = vpop.f32.mrb[38].mxu1 }
 0xe45   :  { %v1756_v18 = vadd.f32 %v5747_v0, %v1750_v12  ;;  %v4603_v31 = vpop.f32.mrb[39].mxu1  ;;  %v1763_v34 = vsel %vm82_vm0, %v6047_v20, 0.0 }
 0xe46   :  { %1764 = vadd.xlane.f32.xlu1 %v1763_v34 }
 0xe47   :  { %v6058_v32 = vadd.f32 %v1756_v18, %v5732_v36  ;;  %v2007_v36 = vsel %vm82_vm0, %v6061_v23, 0.0 }
 0xe49   :  { %v1766_v0 = vsel %vm89_vm1, %v6058_v32, 0.0 }
 0xe4a   :  { %2014 = vadd.xlane.f32.xlu1 %v2013_v40  ;;  %1767 = vadd.xlane.f32.xlu0 %v1766_v0 }
 0xe4e   :  { %2008 = vadd.xlane.f32.xlu0 %v2007_v36 }
 0xe52   :  { %2011 = vadd.xlane.f32.xlu0 %v2010_v37  ;;  %v6114_v37 = vld [vmem:[#allocation2 + $0x20] sm:$0xff] }
 0xecf   :  { %v1762_v43 = vpop.xlane.xlu0 %1761 }
 0xed0   :  { %v1769_v15 = vmul.f32 0.03125, %v1762_v43  ;;  %v6116_v43 = vld [vmem:[#allocation2 + $0x28] sm:$0xff] }
 0xed2   :  { %v1772_v8 = vsub.f32 %v6031_v13, %v1769_v15 }
 0xed3   :  { %v1765_v41 = vpop.xlane.xlu1 %1764 }
 0xed4   :  { %v1770_v39 = vmul.f32 0.03125, %v1765_v41  ;;  %v1775_v27 = vmul.f32 %v1772_v8, %v1772_v8 }
 0xed6   :  { %v6078_v25 = vsub.f32 %v6047_v20, %v1770_v39  ;;  %v1778_v46 = vsel %vm82_vm0, %v1775_v27, 0.0 }
 0xed7   :  { %1779 = vadd.xlane.f32.xlu0 %v1778_v46  ;;  %v1768_v60 = vpop.xlane.xlu0 %1767  ;;  %v2015_v45 = vpop.xlane.xlu1 %2014 }
 0xed8   :  { %v1771_v44 = vmul.f32 0.03125, %v1768_v60  ;;  %v1776_v49 = vmul.f32 %v6078_v25, %v6078_v25  ;;  %v2018_v35 = vmul.f32 0.03125, %v2015_v45  ;;  %v6121_v45 = vpack.c.bf16 %v6116_v43, %v6114_v37 }
 0xeda   :  { %v6084_v21 = vsub.f32 %v6058_v32, %v1771_v44  ;;  %v1781_v1 = vsel %vm82_vm0, %v1776_v49, 0.0  ;;  %v6090_v55 = vsub.f32 %v6052_v51, %v2018_v35  ;;  %v6125_v49 = vld [vmem:[#allocation2 + $0x30] sm:$0xff]  ;;  %v6127_v35 = vld [vmem:[#allocation2 + $0x38] sm:$0xff] }
 0xedb   :  { %v2009_v52 = vpop.xlane.xlu0 %2008  ;;  %1782 = vadd.xlane.f32.xlu1 %v1781_v1 }
 0xedc   :  { %v2016_v53 = vmul.f32 0.03125, %v2009_v52  ;;  %v1777_v54 = vmul.f32 %v6084_v21, %v6084_v21  ;;  %v2024_v57 = vmul.f32 %v6090_v55, %v6090_v55 }
 0xede   :  { %v6093_v4 = vsub.f32 %v6061_v23, %v2016_v53  ;;  %v1784_v56 = vsel %vm89_vm1, %v1777_v54, 0.0  ;;  %v2031_v61 = vsel %vm89_vm1, %v2024_v57, 0.0  ;;  %v6136_v53 = vpack.c.bf16 %v6127_v35, %v6125_v49 }
 0xedf   :  { %1785 = vadd.xlane.f32.xlu0 %v1784_v56  ;;  %v2012_v42 = vpop.xlane.xlu0 %2011 }
 0xee0   :  { %v2017_v7 = vmul.f32 0.03125, %v2012_v42  ;;  %v2022_v26 = vmul.f32 %v6093_v4, %v6093_v4 }
 0xee2   :  { %v6099_v28 = vsub.f32 %v6070_v3, %v2017_v7  ;;  %v2025_v30 = vsel %vm82_vm0, %v2022_v26, 0.0 }
 0xee3   :  { %2026 = vadd.xlane.f32.xlu1 %v2025_v30 }
 0xee4   :  { %v2023_v58 = vmul.f32 %v6099_v28, %v6099_v28 }
 0xee6   :  { %v2028_v24 = vsel %vm82_vm0, %v2023_v58, 0.0 }
 0xee7   :  { %2029 = vadd.xlane.f32.xlu0 %v2028_v24  ;;  %2032 = vadd.xlane.f32.xlu1 %v2031_v61 }
 0xefd   :  { %2054 = vrot.lane.b32.xlu0 %v6110_v5, %s5419_s18 }
 0xf64   :  { %v1780_v10 = vpop.xlane.xlu0 %1779 }
 0xf65   :  { %v1787_v11 = vmul.f32 0.03125, %v1780_v10 }
 0xf67   :  { %v1790_v16 = vadd.f32 1e-05, %v1787_v11 }
 0xf68   :  { %v1783_v62 = vpop.xlane.xlu1 %1782 }
 0xf69   :  { %5253 = vrsqrt.f32 %v1790_v16  ;;  %v1788_v47 = vmul.f32 0.03125, %v1783_v62 }
 0xf6b   :  { %v1791_v6 = vadd.f32 1e-05, %v1788_v47 }
 0xf6c   :  { %v1786_v63 = vpop.xlane.xlu0 %1785 }
 0xf6d   :  { %5255 = vrsqrt.f32 %v1791_v6  ;;  %v1789_v12 = vmul.f32 0.03125, %v1786_v63 }
 0xf6f   :  { %v1792_v48 = vadd.f32 1e-05, %v1789_v12 }
 0xf70   :  { %v2027_v18 = vpop.xlane.xlu1 %2026 }
 0xf71   :  { %5257 = vrsqrt.f32 %v1792_v48  ;;  %v2034_v31 = vmul.f32 0.03125, %v2027_v18 }
 0xf73   :  { %v5254_v34 = vpop.eup %5253  ;;  %v2037_v17 = vadd.f32 1e-05, %v2034_v31 }
 0xf74   :  { %v1796_v40 = vmul.f32 %v5254_v34, %v1772_v8  ;;  %v2030_v0 = vpop.xlane.xlu0 %2029  ;;  %v2033_v36 = vpop.xlane.xlu1 %2032 }
 0xf75   :  { %5259 = vrsqrt.f32 %v2037_v17  ;;  %v2035_v15 = vmul.f32 0.03125, %v2030_v0  ;;  %v2036_v41 = vmul.f32 0.03125, %v2033_v36  ;;  %v2062_v0 = vsub.s32 5, %v5501_v22 }
 0xf76   :  { %v1799_v39 = vmul.f32 %v1796_v40, %v5821_v59 }
 0xf77   :  { %v5256_v27 = vpop.eup %5255  ;;  %v2038_v46 = vadd.f32 1e-05, %v2035_v15  ;;  %v2039_v60 = vadd.f32 1e-05, %v2036_v41 }
 0xf78   :  { %v1802_v8 = vadd.f32 %v1799_v39, %v5823_v9  ;;  %v1797_v44 = vmul.f32 %v5256_v27, %v6078_v25  ;;  %v6149_v30 = vpop.permute.xlu0 %2054 }
 0xf79   :  { %5261 = vrsqrt.f32 %v2038_v46 }
 0xf7a   :  { %5263 = vrsqrt.f32 %v2039_v60  ;;  %4613 = vmatmul.mubr.msk.f32.vlgmr.msra.gmra.mrb[44].mxu0 %vm82_vm0, %v1802_v8  ;;  %v1800_v1 = vmul.f32 %v1797_v44, %v5821_v59  ;;  %v6176_v60 = vrot.slane %v6041_v50, %v2062_v0 }
 0xf7b   :  { %v5258_v52 = vpop.eup %5257  ;;  %4615 = vmatprep.mubr.msk.f32.mxu0 %vm5417_vm2, %v5418_v33  ;;  %4983 = vmatpush3.bf16.msra.mxu0 %v6121_v45 }
 0xf7c   :  { %v1803_v25 = vadd.f32 %v1800_v1, %v5823_v9  ;;  %v1798_v54 = vmul.f32 %v5258_v52, %v6084_v21  ;;  %4984 = vmatprep.subr.bf16.mxu0 %v5416_v29 }
 0xf7e   :  { %4616 = vmatmul.mubr.msk.f32.gmra.mrb[46].mxu0 %vm82_vm0, %v1803_v25  ;;  %v1801_v56 = vmul.f32 %v1798_v54, %v5821_v59 }
 0xf7f   :  { %v5260_v42 = vpop.eup %5259  ;;  %4618 = vmatprep.mubr.msk.f32.mxu0 %vm5417_vm2, %v5418_v33  ;;  %4986 = vmatpush3.bf16.msra.mxu0 %v6136_v53 }
 0xf80   :  { %v2043_v7 = vmul.f32 %v5260_v42, %v6093_v4  ;;  %v1804_v26 = vadd.f32 %v1801_v56, %v5823_v9  ;;  %4987 = vmatprep.subr.bf16.mxu0 %v5416_v29 }
 0xf82   :  { %4619 = vmatmul.mubr.msk.f32.gmra.mrb[48].mxu0 %vm82_vm0, %v1804_v26  ;;  %v2050_v21 = vmul.f32 %v6110_v5, %v2043_v7 }
 0xf83   :  { %v5262_v57 = vpop.eup %5261  ;;  %4646 = vmatprep.mubr.msk.f32.mxu0 %vm5417_vm2, %v5418_v33 }
 0xf84   :  { %v5264_v59 = vpop.eup %5263  ;;  %v2057_v58 = vadd.f32 %v6149_v30, %v2050_v21  ;;  %v2044_v24 = vmul.f32 %v5262_v57, %v6099_v28 }
 0xf85   :  { %v2045_v4 = vmul.f32 %v5264_v59, %v6090_v55 }
 0xf86   :  { %4647 = vmatmul.mubr.msk.f32.vlgmr.msra.gmra.mrb[50].mxu0 %vm82_vm0, %v2057_v58  ;;  %v2051_v9 = vmul.f32 %v6110_v5, %v2044_v24 }
 0xf87   :  { %4649 = vmatprep.mubr.msk.f32.mxu0 %vm5417_vm2, %v5418_v33  ;;  %v2052_v38 = vmul.f32 %v6110_v5, %v2045_v4 }
 0xf88   :  { %v2058_v61 = vadd.f32 %v6149_v30, %v2051_v9 }
 0xf89   :  { %v2059_v28 = vadd.f32 %v6149_v30, %v2052_v38 }
 0xf8a   :  { %4650 = vmatmul.mubr.msk.f32.gmra.mrb[52].mxu0 %vm82_vm0, %v2058_v61 }
 0xf8b   :  { %4652 = vmatprep.mubr.msk.f32.mxu0 %vm5417_vm2, %v5418_v33 }
 0xf8e   :  { %4653 = vmatmul.mubr.msk.f32.gmra.mrb[54].mxu0 %vm82_vm0, %v2059_v28 }
 0xf8f   :  { %4661 = vmatprep.mubr.msk.f32.mxu0 %vm5417_vm2, %v5418_v33 }
0x104d   :  { %v1880_v55 = vpop.f32.mrb[44].mxu0 }
0x104e   :  { %v1881_v10 = vadd.f32 %v1880_v55, %v5884_v2  ;;  %v4614_v11 = vpop.f32.mrb[45].mxu0 }
0x1050   :  { %v1894_v16 = vmul.f32 %v1881_v10, %v1881_v10 }
0x1051   :  { %v1885_v62 = vpop.f32.mrb[46].mxu0 }
0x1052   :  { %v1897_v47 = vmul.f32 %v1894_v16, %v1881_v10  ;;  %v1886_v6 = vadd.f32 %v1885_v62, %v5884_v2  ;;  %v4617_v63 = vpop.f32.mrb[47].mxu0 }
0x1054   :  { %v1900_v12 = vmul.f32 0.044715, %v1897_v47  ;;  %v1895_v48 = vmul.f32 %v1886_v6, %v1886_v6 }
0x1055   :  { %v1890_v18 = vpop.f32.mrb[48].mxu0 }
0x1056   :  { %v1903_v31 = vadd.f32 %v1900_v12, %v1881_v10  ;;  %v1898_v34 = vmul.f32 %v1895_v48, %v1886_v6  ;;  %v1891_v17 = vadd.f32 %v1890_v18, %v5884_v2  ;;  %v4620_v40 = vpop.f32.mrb[49].mxu0 }
0x1058   :  { %v1906_v36 = vmul.f32 0.7978846, %v1903_v31  ;;  %v1901_v15 = vmul.f32 0.044715, %v1898_v34  ;;  %v1896_v41 = vmul.f32 %v1891_v17, %v1891_v17 }
0x1059   :  { %v2139_v39 = vpop.f32.mrb[50].mxu0 }
0x105a   :  { %5265 = vtanh.f32 %v1906_v36  ;;  %v1904_v27 = vadd.f32 %v1901_v15, %v1886_v6  ;;  %v1899_v46 = vmul.f32 %v1896_v41, %v1891_v17  ;;  %v4648_v8 = vpop.f32.mrb[51].mxu0  ;;  %v2140_v2 = vadd.f32 %v2139_v39, %v6176_v60 }
0x105c   :  { %v1907_v44 = vmul.f32 0.7978846, %v1904_v27  ;;  %v1902_v1 = vmul.f32 0.044715, %v1899_v46 }
0x105d   :  { %v2144_v52 = vpop.f32.mrb[52].mxu0 }
0x105e   :  { %v1905_v25 = vadd.f32 %v1902_v1, %v1891_v17  ;;  %v2145_v54 = vadd.f32 %v2144_v52, %v6176_v60  ;;  %v4651_v56 = vpop.f32.mrb[53].mxu0  ;;  %5267 = vtanh.f32 %v1907_v44 }
0x1060   :  { %v1908_v42 = vmul.f32 0.7978846, %v1905_v25  ;;  %v6180_v7 = vpack.i.bf16 %v2145_v54, %v2140_v2 }
0x1061   :  { %v2149_v26 = vpop.f32.mrb[54].mxu0 }
0x1062   :  { %v6183_v21 = vadd.f32 %v2149_v26, %v6176_v60  ;;  %5132 = vrot.lane.b32.xlu1 %v6180_v7, %s5419_s18  ;;  %v4654_v50 = vpop.f32.mrb[55].mxu0  ;;  %5269 = vtanh.f32 %v1908_v42 }
0x1063   :  { %v5359_v50 = vld [vmem:[%s6685_s1 + $0x8] sm:$0xff] }
0x1064   :  { %v5266_v57 = vpop.eup %5265  ;;  %2384 = vrot.lane.b32.xlu0 %v6183_v21, %s5421_s20 }
0x1065   :  { %v1912_v59 = vadd.f32 1.0, %v5266_v57 }
0x1066   :  { %2160 = vrot.lane.b32.xlu1 %v6183_v21, %s5419_s18 }
0x1067   :  { %v1915_v58 = vmul.f32 0.5, %v1912_v59 }
0x1068   :  { %v5268_v24 = vpop.eup %5267  ;;  %2376 = vrot.lane.b32.xlu0 %v2145_v54, %s5422_s27 }
0x1069   :  { %v1918_v4 = vmul.f32 %v1915_v58, %v1881_v10  ;;  %v1913_v9 = vadd.f32 1.0, %v5268_v24 }
0x106a   :  { %5137 = vrot.lane.b32.xlu1 %v6180_v7, %s5421_s20 }
0x106b   :  { %4630 = vmatmul.mubr.f32.vlgmr.msra.gmra.mrb[40].mxu1 %v1918_v4  ;;  %v1916_v61 = vmul.f32 0.5, %v1913_v9  ;;  %v5360_v4 = vld [vmem:[%s6685_s1 + $0x10] sm:$0x1] }
0x106c   :  { %v5270_v38 = vpop.eup %5269  ;;  %4632 = vmatprep.mubr.msk.f32.mxu1 %vm5417_vm2, %v5418_v33 }
0x106d   :  { %v1919_v28 = vmul.f32 %v1916_v61, %v1886_v6  ;;  %v1914_v55 = vadd.f32 1.0, %v5270_v38 }
0x106e   :  { %2374 = vrot.lane.b32.xlu1 %v2140_v2, %s5422_s27 }
0x106f   :  { %4633 = vmatmul.mubr.f32.gmra.mrb[42].mxu1 %v1919_v28  ;;  %v1917_v11 = vmul.f32 0.5, %v1914_v55 }
0x1070   :  { %4635 = vmatprep.mubr.msk.f32.mxu1 %vm5417_vm2, %v5418_v33 }
0x1071   :  { %v1920_v10 = vmul.f32 %v1917_v11, %v1891_v17 }
0x1072   :  { %2378 = vrot.lane.b32.xlu1 %v6183_v21, %s5422_s27 }
0x1073   :  { %4636 = vmatmul.mubr.f32.gmra.mrb[44].mxu1 %v1920_v10 }
0x1074   :  { %4676 = vmatprep.mubr.msk.f32.mxu1 %vm5417_vm2, %v5418_v33 }
0x1076   :  { %5142 = vrot.lane.b32.xlu1 %v6180_v7, %s5420_s19 }
0x10d4   :  { %v5133_v16 = vpop.permute.xlu1 %5132 }
0x10d5   :  { %v5135_v62 = vunpack.i.h.bf16 %v5133_v16  ;;  %v5134_v47 = vunpack.i.l.bf16 %v5133_v16 }
0x10d6   :  { %v2385_v41 = vpop.permute.xlu0 %2384 }
0x10d7   :  { %v4988_v6 = vpack.c.bf16 %v5135_v62, %v5134_v47 }
0x10d8   :  { %v2161_v63 = vpop.permute.xlu1 %2160 }
0x10d9   :  { %4990 = vmatpush3.bf16.xpose.msk.msra.mxu0 %vm5588_vm4, %v4988_v6 }
0x10da   :  { %4659 = vmatprep.subr.mxu0 %v5418_v33  ;;  %v2377_v39 = vpop.permute.xlu0 %2376 }
0x10dc   :  { %v5138_v12 = vpop.permute.xlu1 %5137 }
0x10dd   :  { %v5140_v48 = vunpack.i.h.bf16 %v5138_v12  ;;  %v5139_v18 = vunpack.i.l.bf16 %v5138_v12 }
0x10df   :  { %v4995_v34 = vpack.c.bf16 %v5140_v48, %v5139_v18 }
0x10e0   :  { %v2375_v31 = vpop.permute.xlu1 %2374 }
0x10e1   :  { %4660 = vmatpush3.xpose.msk.msra.mxu0 %vm240_vm3, %v2161_v63 }
0x10e2   :  { %4994 = vmatprep.subr.bf16.mxu0 %v5416_v29 }
0x10e4   :  { %4662 = vmatmul.mubr.msk.f32.vlgmr.msra.gmra.mrb[56].mxu0 %vm240_vm3, %v2140_v2  ;;  %v2379_v17 = vpop.permute.xlu1 %2378  ;;  %v5358_v2 = vld [vmem:[%s6685_s1] sm:$0xff] }
0x10e5   :  { %4997 = vmatpush3.bf16.xpose.msk.msra.mxu0 %vm5588_vm4, %v4995_v34  ;;  %4664 = vmatprep.mubr.msk.f32.mxu0 %vm5417_vm2, %v5418_v33 }
0x10e6   :  { %4689 = vmatprep.subr.mxu0 %v5418_v33 }
0x10e8   :  { %4665 = vmatmul.mubr.msk.f32.gmra.mrb[58].mxu0 %vm240_vm3, %v2145_v54  ;;  %v5143_v40 = vpop.permute.xlu1 %5142 }
0x10e9   :  { %v5145_v0 = vunpack.i.h.bf16 %v5143_v40  ;;  %v5144_v36 = vunpack.i.l.bf16 %v5143_v40  ;;  %4667 = vmatprep.mubr.msk.f32.mxu0 %vm5417_vm2, %v5418_v33 }
0x10eb   :  { %v4992_v15 = vpack.c.bf16 %v5145_v0, %v5144_v36 }
0x10ec   :  { %4668 = vmatmul.mubr.msk.f32.gmra.mrb[60].mxu0 %vm240_vm3, %v6183_v21 }
0x10ed   :  { %4993 = vmatpush3.bf16.msra.mxu1 %v4992_v15  ;;  %4690 = vmatpush3.xpose.msk.msra.mxu0 %vm240_vm3, %v2385_v41 }
0x10ee   :  { %4691 = vmatprep.mubr.msk.f32.mxu0 %vm5417_vm2, %v5418_v33  ;;  %4674 = vmatprep.subr.mxu1 %v5418_v33 }
0x10ef   :  { %5001 = vmatprep.subr.bf16.mxu0 %v5416_v29 }
0x10f0   :  { %4692 = vmatmul.mubr.msk.f32.vlgmr.msra.gmra.mrb[62].mxu0 %vm240_vm3, %v2375_v31 }
0x10f1   :  { %4694 = vmatprep.mubr.msk.f32.mxu0 %vm5417_vm2, %v5418_v33 }
0x10f4   :  { %4695 = vmatmul.mubr.msk.f32.gmra.mrb[64].mxu0 %vm240_vm3, %v2377_v39 }
0x10f5   :  { %4697 = vmatprep.mubr.msk.f32.mxu0 %vm5417_vm2, %v5418_v33 }
0x10f8   :  { %4698 = vmatmul.mubr.msk.f32.gmra.mrb[66].mxu0 %vm240_vm3, %v2379_v17 }
0x10f9   :  { %4723 = vmatprep.mubr.msk.f32.mxu0 %vm5417_vm2, %v5418_v33 }
0x113e   :  { %v6235_v27 = vpop.f32.mrb[40].mxu1 }
0x113f   :  { %v4631_v46 = vpop.f32.mrb[41].mxu1 }
0x1142   :  { %v6237_v8 = vpop.f32.mrb[42].mxu1 }
0x1143   :  { %v4634_v44 = vpop.f32.mrb[43].mxu1 }
0x1146   :  { %v6239_v1 = vpop.f32.mrb[44].mxu1 }
0x1147   :  { %v4637_v52 = vpop.f32.mrb[45].mxu1 }
0x11b7   :  { %v2240_v25 = vpop.f32.mrb[56].mxu0 }
0x11b8   :  { %v2241_v54 = vadd.f32 %v5358_v2, %v2240_v25  ;;  %v4663_v56 = vpop.f32.mrb[57].mxu0 }
0x11ba   :  { %v2254_v42 = vmul.f32 1.442695, %v2241_v54 }
0x11bb   :  { %v2245_v26 = vpop.f32.mrb[58].mxu0 }
0x11bc   :  { %5271 = vpow2.f32 %v2254_v42  ;;  %v2246_v57 = vadd.f32 %v5359_v50, %v2245_v26  ;;  %v4666_v59 = vpop.f32.mrb[59].mxu0 }
0x11be   :  { %v2256_v58 = vmul.f32 1.442695, %v2246_v57 }
0x11bf   :  { %v2250_v24 = vpop.f32.mrb[60].mxu0 }
0x11c0   :  { %5273 = vpow2.f32 %v2256_v58  ;;  %v2251_v9 = vadd.f32 %v5360_v4, %v2250_v24  ;;  %v4669_v61 = vpop.f32.mrb[61].mxu0 }
0x11c2   :  { %v2258_v38 = vmul.f32 1.442695, %v2251_v9 }
0x11c3   :  { %v2464_v28 = vpop.f32.mrb[62].mxu0 }
0x11c4   :  { %5275 = vpow2.f32 %v2258_v38  ;;  %v2465_v55 = vadd.f32 %v5358_v2, %v2464_v28  ;;  %v4693_v11 = vpop.f32.mrb[63].mxu0 }
0x11c6   :  { %v5272_v10 = vpop.eup %5271  ;;  %v2478_v16 = vmul.f32 1.442695, %v2465_v55 }
0x11c7   :  { %v2469_v62 = vpop.f32.mrb[64].mxu0  ;;  %v2260_v47 = vsel %vm339_vm6, %v5272_v10, 0.0 }
0x11c8   :  { %5277 = vpow2.f32 %v2478_v16  ;;  %v2470_v6 = vadd.f32 %v5359_v50, %v2469_v62  ;;  %2261 = vadd.xlane.f32.xlu0 %v2260_v47  ;;  %v4696_v63 = vpop.f32.mrb[65].mxu0 }
0x11c9   :  { %v5156_v63 = vpack.i.bf16 %v6127_v35, %v6125_v49 }
0x11ca   :  { %v5274_v12 = vpop.eup %5273  ;;  %v2480_v48 = vmul.f32 1.442695, %v2470_v6  ;;  %v5151_v6 = vpack.i.bf16 %v6116_v43, %v6114_v37 }
0x11cb   :  { %v2474_v18 = vpop.f32.mrb[66].mxu0  ;;  %v2263_v31 = vsel %vm339_vm6, %v5274_v12, 0.0 }
0x11cc   :  { %5279 = vpow2.f32 %v2480_v48  ;;  %v2475_v34 = vadd.f32 %v5360_v4, %v2474_v18  ;;  %2264 = vadd.xlane.f32.xlu1 %v2263_v31  ;;  %v4699_v17 = vpop.f32.mrb[67].mxu0 }
0x11ce   :  { %v5276_v40 = vpop.eup %5275  ;;  %v2482_v0 = vmul.f32 1.442695, %v2475_v34 }
0x11cf   :  { %v2266_v36 = vsel %vm346_vm7, %v5276_v40, 0.0 }
0x11d0   :  { %5281 = vpow2.f32 %v2482_v0  ;;  %2267 = vadd.xlane.f32.xlu0 %v2266_v36 }
0x11d2   :  { %v5278_v15 = vpop.eup %5277 }
0x11d3   :  { %v2484_v41 = vsel %vm339_vm6, %v5278_v15, 0.0 }
0x11d4   :  { %2485 = vadd.xlane.f32.xlu0 %v2484_v41 }
0x11d6   :  { %v5280_v39 = vpop.eup %5279 }
0x11d7   :  { %v2487_v46 = vsel %vm339_vm6, %v5280_v39, 0.0 }
0x11d8   :  { %2488 = vadd.xlane.f32.xlu0 %v2487_v46 }
0x11da   :  { %v5282_v44 = vpop.eup %5281 }
0x11db   :  { %v2490_v52 = vsel %vm346_vm7, %v5282_v44, 0.0 }
0x11dc   :  { %2491 = vadd.xlane.f32.xlu0 %v2490_v52 }
0x11dd   :  { %5147 = vrot.lane.b32.xlu1 %v6180_v7, %s5423_s28 }
0x11e1   :  { %2503 = vrot.lane.b32.xlu1 %v6183_v21, %s5423_s28 }
0x11e5   :  { %5152 = vrot.lane.b32.xlu1 %v5151_v6, %s5424_s29 }
0x11e9   :  { %5157 = vrot.lane.b32.xlu1 %v5156_v63, %s5424_s29 }
0x11f2   :  { %2279 = vrot.lane.b32.xlu0 %v6183_v21, %s5420_s19 }
0x1255   :  { %v2262_v25 = vpop.xlane.xlu0 %2261 }
0x1256   :  { %5283 = vrcp.f32 %v2262_v25 }
0x1259   :  { %v2265_v54 = vpop.xlane.xlu1 %2264 }
0x125a   :  { %5285 = vrcp.f32 %v2265_v54 }
0x125d   :  { %v2268_v2 = vpop.xlane.xlu0 %2267  ;;  %v5148_v26 = vpop.permute.xlu1 %5147 }
0x125e   :  { %5287 = vrcp.f32 %v2268_v2  ;;  %v5150_v59 = vunpack.i.h.bf16 %v5148_v26  ;;  %v5149_v58 = vunpack.i.l.bf16 %v5148_v26 }
0x1260   :  { %v5284_v57 = vpop.eup %5283  ;;  %v4999_v9 = vpack.c.bf16 %v5150_v59, %v5149_v58 }
0x1261   :  { %v2486_v56 = vpop.xlane.xlu0 %2485  ;;  %v2272_v7 = vmul.f32 %v5284_v57, %v5272_v10  ;;  %v2504_v38 = vpop.permute.xlu1 %2503 }
0x1262   :  { %5289 = vrcp.f32 %v2486_v56 }
0x1264   :  { %v5286_v4 = vpop.eup %5285 }
0x1265   :  { %v2489_v42 = vpop.xlane.xlu0 %2488  ;;  %v2273_v21 = vmul.f32 %v5286_v4, %v5274_v12  ;;  %v5153_v12 = vpop.permute.xlu1 %5152 }
0x1266   :  { %5291 = vrcp.f32 %v2489_v42  ;;  %v5155_v48 = vunpack.i.h.bf16 %v5153_v12  ;;  %v5154_v18 = vunpack.i.l.bf16 %v5153_v12 }
0x1268   :  { %v5288_v61 = vpop.eup %5287  ;;  %v6291_v31 = vpack.c.bf16 %v5155_v48, %v5154_v18 }
0x1269   :  { %v2492_v50 = vpop.xlane.xlu0 %2491  ;;  %v2274_v28 = vmul.f32 %v5288_v61, %v5276_v40  ;;  %v5158_v34 = vpop.permute.xlu1 %5157 }
0x126a   :  { %5293 = vrcp.f32 %v2492_v50  ;;  %v5160_v17 = vunpack.i.h.bf16 %v5158_v34  ;;  %v5159_v40 = vunpack.i.l.bf16 %v5158_v34  ;;  %5003 = vmatpush3.bf16.msra.mxu0 %v6291_v31 }
0x126b   :  { %5004 = vmatprep.subr.bf16.mxu0 %v5416_v29 }
0x126c   :  { %v5290_v55 = vpop.eup %5289  ;;  %v6295_v37 = vpack.c.bf16 %v5160_v17, %v5159_v40 }
0x126d   :  { %v2280_v24 = vpop.permute.xlu0 %2279  ;;  %v2496_v11 = vmul.f32 %v5290_v55, %v5278_v15 }
0x126e   :  { %4675 = vmatpush3.msk.msra.mxu1 %vm373_vm5, %v2280_v24  ;;  %5006 = vmatpush3.bf16.msra.mxu0 %v6295_v37 }
0x126f   :  { %4677 = vmatmul.mubr.msk.f32.vlgmr.msra.gmra.mrb[46].mxu1 %vm339_vm6, %v2272_v7  ;;  %4998 = vmatprep.subr.bf16.mxu1 %v5416_v29 }
0x1270   :  { %5000 = vmatpush3.bf16.msra.mxu1 %v4999_v9  ;;  %4679 = vmatprep.mubr.msk.f32.mxu1 %vm5417_vm2, %v5418_v33  ;;  %v5292_v10 = vpop.eup %5291  ;;  %v2003_v9 = vadd.f32 %v6239_v1, %v6058_v32 }
0x1271   :  { %4704 = vmatprep.subr.mxu1 %v5418_v33  ;;  %v2497_v16 = vmul.f32 %v5292_v10, %v5280_v39  ;;  %5013 = vmatprep.subr.bf16.mxu0 %v5416_v29 }
0x1273   :  { %4680 = vmatmul.mubr.msk.f32.gmra.mrb[48].mxu1 %vm339_vm6, %v2273_v21 }
0x1274   :  { %4705 = vmatpush3.msk.msra.mxu1 %vm373_vm5, %v2504_v38  ;;  %4682 = vmatprep.mubr.msk.f32.mxu1 %vm5417_vm2, %v5418_v33  ;;  %v5294_v62 = vpop.eup %5293 }
0x1275   :  { %5007 = vmatprep.subr.bf16.mxu1 %v5416_v29  ;;  %v2498_v47 = vmul.f32 %v5294_v62, %v5282_v44  ;;  %v2002_v62 = vadd.f32 %v6237_v8, %v6047_v20 }
0x1277   :  { %4683 = vmatmul.mubr.msk.f32.gmra.mrb[50].mxu1 %vm339_vm6, %v2274_v28 }
0x1278   :  { %4706 = vmatprep.mubr.msk.f32.mxu1 %vm5417_vm2, %v5418_v33 }
0x127b   :  { %4707 = vmatmul.mubr.msk.f32.vlgmr.msra.gmra.mrb[52].mxu1 %vm339_vm6, %v2496_v11  ;;  %v6331_v11 = vadd.f32 %v2003_v9, %v6044_v19 }
0x127c   :  { %4709 = vmatprep.mubr.msk.f32.mxu1 %vm5417_vm2, %v5418_v33 }
0x127f   :  { %4710 = vmatmul.mubr.msk.f32.gmra.mrb[54].mxu1 %vm339_vm6, %v2497_v16 }
0x1280   :  { %4712 = vmatprep.mubr.msk.f32.mxu1 %vm5417_vm2, %v5418_v33 }
0x1283   :  { %4713 = vmatmul.mubr.msk.f32.gmra.mrb[56].mxu1 %vm339_vm6, %v2498_v47 }
0x1284   :  { %4740 = vmatprep.mubr.msk.f32.mxu1 %vm5417_vm2, %v5418_v33 }
0x1342   :  { %v2360_v43 = vpop.f32.mrb[46].mxu1 }
0x1343   :  { %v4678_v49 = vpop.f32.mrb[47].mxu1 }
0x1346   :  { %v2365_v35 = vpop.f32.mrb[48].mxu1 }
0x1347   :  { %v4681_v0 = vpop.f32.mrb[49].mxu1 }
0x134a   :  { %v2370_v36 = vpop.f32.mrb[50].mxu1 }
0x134b   :  { %v4684_v15 = vpop.f32.mrb[51].mxu1 }
0x134e   :  { %v2584_v41 = vpop.f32.mrb[52].mxu1 }
0x134f   :  { %2601 = vrot.lane.b32.xlu0 %v2584_v41, %s5425_s30  ;;  %v4708_v39 = vpop.f32.mrb[53].mxu1 }
0x1352   :  { %v2589_v46 = vpop.f32.mrb[54].mxu1 }
0x1353   :  { %2603 = vrot.lane.b32.xlu1 %v2589_v46, %s5425_s30  ;;  %v4711_v44 = vpop.f32.mrb[55].mxu1 }
0x1356   :  { %v2594_v52 = vpop.f32.mrb[56].mxu1 }
0x1357   :  { %2605 = vrot.lane.b32.xlu0 %v2594_v52, %s5425_s30  ;;  %v4714_v25 = vpop.f32.mrb[57].mxu1  ;;  %2722 = vrot.lane.b32.xlu1 %v6176_v60, %s5424_s29 }
0x13c1   :  { %v2602_v2 = vpop.permute.xlu0 %2601 }
0x13c2   :  { %v2610_v54 = vsel %vm240_vm3, %v2360_v43, %v2602_v2 }
0x13c3   :  { %4724 = vmatmul.mubr.msk.f32.vlgmr.msra.gmra.mrb[68].mxu0 %vm82_vm0, %v2610_v54 }
0x13c4   :  { %4726 = vmatprep.mubr.msk.f32.mxu0 %vm5417_vm2, %v5418_v33 }
0x13c5   :  { %v2604_v56 = vpop.permute.xlu1 %2603 }
0x13c6   :  { %v2611_v42 = vsel %vm240_vm3, %v2365_v35, %v2604_v56 }
0x13c7   :  { %4727 = vmatmul.mubr.msk.f32.gmra.mrb[70].mxu0 %vm82_vm0, %v2611_v42 }
0x13c8   :  { %4729 = vmatprep.mubr.msk.f32.mxu0 %vm5417_vm2, %v5418_v33 }
0x13c9   :  { %v2606_v26 = vpop.permute.xlu0 %2605  ;;  %v6316_v59 = vpop.permute.xlu1 %2722 }
0x13ca   :  { %v2612_v50 = vsel %vm240_vm3, %v2370_v36, %v2606_v26 }
0x13cb   :  { %4730 = vmatmul.mubr.msk.f32.gmra.mrb[72].mxu0 %vm82_vm0, %v2612_v50 }
0x13cc   :  { %4757 = vmatprep.mubr.msk.f32.mxu0 %vm5417_vm2, %v5418_v33 }
0x1496   :  { %v2704_v57 = vpop.f32.mrb[68].mxu0 }
0x1497   :  { %v2718_v58 = vadd.f32 %v2704_v57, %v6061_v23  ;;  %v4725_v7 = vpop.f32.mrb[69].mxu0  ;;  %v2001_v23 = vadd.f32 %v6235_v27, %v6031_v13  ;;  %v2989_v13 = vsel %vm89_vm1, %v6331_v11, 0.0 }
0x1498   :  { %v58_v7 = vld [vmem:[%s6688_s4 + $0x40] sm:$0xff] }
0x1499   :  { %v6320_v24 = vadd.f32 %v6316_v59, %v2718_v58  ;;  %v6337_v1 = vadd.f32 %v2001_v23, %v6044_v19 }
0x149a   :  { %v2709_v4 = vpop.f32.mrb[70].mxu0 }
0x149b   :  { %v2719_v21 = vadd.f32 %v2709_v4, %v6070_v3  ;;  %v4728_v61 = vpop.f32.mrb[71].mxu0  ;;  %v2728_v38 = vsel %vm82_vm0, %v6320_v24, 0.0  ;;  %v2983_v47 = vsel %vm82_vm0, %v6337_v1, 0.0  ;;  %v59_v4 = vld [vmem:[%s6688_s4 + $0x48] sm:$0xff] }
0x149c   :  { %2729 = vadd.xlane.f32.xlu0 %v2728_v38  ;;  %v6383_v9 = vpack.c.bf16 %v59_v4, %v58_v7  ;;  %v61_v61 = vld [vmem:[%s6688_s4 + $0x58] sm:$0xff] }
0x149d   :  { %v2726_v28 = vadd.f32 %v6316_v59, %v2719_v21  ;;  %v60_v21 = vld [vmem:[%s6688_s4 + $0x50] sm:$0xff] }
0x149e   :  { %v2714_v55 = vpop.f32.mrb[72].mxu0  ;;  %5009 = vmatpush3.bf16.msra.mxu1 %v6383_v9  ;;  %v6393_v38 = vpack.c.bf16 %v61_v61, %v60_v21  ;;  %v65_v21 = vld [vmem:[%s6688_s4 + $0x78] sm:$0xff] }
0x149f   :  { %v2720_v10 = vadd.f32 %v2714_v55, %v6052_v51  ;;  %v4731_v16 = vpop.f32.mrb[73].mxu0  ;;  %v2731_v32 = vsel %vm82_vm0, %v2726_v28, 0.0  ;;  %v6345_v51 = vadd.f32 %v2002_v62, %v6044_v19  ;;  %5010 = vmatprep.subr.bf16.mxu1 %v5416_v29 }
0x14a0   :  { %2732 = vadd.xlane.f32.xlu1 %v2731_v32 }
0x14a1   :  { %v2727_v3 = vadd.f32 %v6316_v59, %v2720_v10  ;;  %v2986_v6 = vsel %vm82_vm0, %v6345_v51, 0.0 }
0x14a2   :  { %5012 = vmatpush3.bf16.msra.mxu1 %v6393_v38 }
0x14a3   :  { %v2734_v27 = vsel %vm89_vm1, %v2727_v3, 0.0  ;;  %5019 = vmatprep.subr.bf16.mxu1 %v5416_v29 }
0x14a4   :  { %2990 = vadd.xlane.f32.xlu1 %v2989_v13  ;;  %2735 = vadd.xlane.f32.xlu0 %v2734_v27 }
0x14a8   :  { %2984 = vadd.xlane.f32.xlu0 %v2983_v47 }
0x14ac   :  { %2987 = vadd.xlane.f32.xlu0 %v2986_v6 }
0x1529   :  { %v2730_v63 = vpop.xlane.xlu0 %2729 }
0x152a   :  { %v2737_v17 = vmul.f32 0.03125, %v2730_v63 }
0x152c   :  { %v2740_v36 = vsub.f32 %v6320_v24, %v2737_v17 }
0x152d   :  { %v2733_v20 = vpop.xlane.xlu1 %2732 }
0x152e   :  { %v2738_v40 = vmul.f32 0.03125, %v2733_v20  ;;  %v2743_v25 = vmul.f32 %v2740_v36, %v2740_v36 }
0x1530   :  { %v2741_v15 = vsub.f32 %v2726_v28, %v2738_v40  ;;  %v2746_v50 = vsel %vm82_vm0, %v2743_v25, 0.0 }
0x1531   :  { %v2991_v8 = vpop.xlane.xlu1 %2990  ;;  %v2736_v12 = vpop.xlane.xlu0 %2735 }
0x1532   :  { %v2994_v48 = vmul.f32 0.03125, %v2991_v8  ;;  %v2739_v41 = vmul.f32 0.03125, %v2736_v12  ;;  %v2744_v42 = vmul.f32 %v2741_v15, %v2741_v15 }
0x1534   :  { %v6352_v19 = vsub.f32 %v6331_v11, %v2994_v48  ;;  %v2742_v2 = vsub.f32 %v2727_v3, %v2739_v41  ;;  %v2749_v26 = vsel %vm82_vm0, %v2744_v42, 0.0 }
0x1535   :  { %v2985_v18 = vpop.xlane.xlu0 %2984 }
0x1536   :  { %v2992_v34 = vmul.f32 0.03125, %v2985_v18  ;;  %v3000_v44 = vmul.f32 %v6352_v19, %v6352_v19  ;;  %v2745_v57 = vmul.f32 %v2742_v2, %v2742_v2 }
0x1538   :  { %v6355_v43 = vsub.f32 %v6337_v1, %v2992_v34  ;;  %v3007_v54 = vsel %vm89_vm1, %v3000_v44, 0.0  ;;  %v2752_v58 = vsel %vm89_vm1, %v2745_v57, 0.0 }
0x1539   :  { %v2988_v49 = vpop.xlane.xlu0 %2987 }
0x153a   :  { %v2993_v35 = vmul.f32 0.03125, %v2988_v49  ;;  %v2998_v0 = vmul.f32 %v6355_v43, %v6355_v43 }
0x153c   :  { %v6361_v39 = vsub.f32 %v6345_v51, %v2993_v35  ;;  %v3001_v46 = vsel %vm82_vm0, %v2998_v0, 0.0 }
0x153d   :  { %3002 = vadd.xlane.f32.xlu1 %v3001_v46 }
0x153e   :  { %v2999_v52 = vmul.f32 %v6361_v39, %v6361_v39 }
0x1540   :  { %v3004_v56 = vsel %vm82_vm0, %v2999_v52, 0.0 }
0x1541   :  { %3008 = vadd.xlane.f32.xlu1 %v3007_v54  ;;  %3005 = vadd.xlane.f32.xlu0 %v3004_v56 }
0x1545   :  { %2750 = vadd.xlane.f32.xlu1 %v2749_v26  ;;  %2747 = vadd.xlane.f32.xlu0 %v2746_v50 }
0x1549   :  { %2753 = vadd.xlane.f32.xlu0 %v2752_v58 }
0x1556   :  { %2773 = vrot.lane.b32.xlu1 %v6110_v5, %s5424_s29 }
0x155f   :  { %2767 = vrot.lane.b32.xlu0 %v6110_v5, %s5420_s19 }
0x15ca   :  { %v3003_v28 = vpop.xlane.xlu1 %3002 }
0x15cb   :  { %v3010_v27 = vmul.f32 0.03125, %v3003_v28  ;;  %v2781_v28 = vsub.s32 6, %v5501_v22 }
0x15cd   :  { %v3013_v20 = vadd.f32 1e-05, %v3010_v27 }
0x15ce   :  { %v3009_v55 = vpop.xlane.xlu1 %3008  ;;  %v3006_v23 = vpop.xlane.xlu0 %3005 }
0x15cf   :  { %v3011_v8 = vmul.f32 0.03125, %v3006_v23  ;;  %v3012_v12 = vmul.f32 0.03125, %v3009_v55  ;;  %v6462_v55 = vld [vmem:[%s6689_s5] sm:$0xff] }
0x15d0   :  { %v6465_v23 = vrot.slane %v6462_v55, %v2781_v28 }
0x15d1   :  { %v3014_v48 = vadd.f32 1e-05, %v3011_v8  ;;  %v3015_v17 = vadd.f32 1e-05, %v3012_v12 }
0x15d2   :  { %v2751_v10 = vpop.xlane.xlu1 %2750  ;;  %v2748_v16 = vpop.xlane.xlu0 %2747 }
0x15d3   :  { %v2756_v32 = vmul.f32 0.03125, %v2751_v10  ;;  %v2755_v3 = vmul.f32 0.03125, %v2748_v16 }
0x15d5   :  { %v2759_v62 = vadd.f32 1e-05, %v2756_v32  ;;  %v2758_v13 = vadd.f32 1e-05, %v2755_v3 }
0x15d6   :  { %v2754_v47 = vpop.xlane.xlu0 %2753  ;;  %v6399_v0 = vpop.permute.xlu1 %2773 }
0x15d7   :  { %5295 = vrsqrt.f32 %v2759_v62  ;;  %v2757_v6 = vmul.f32 0.03125, %v2754_v47 }
0x15d8   :  { %5297 = vrsqrt.f32 %v2758_v13 }
0x15d9   :  { %v2760_v63 = vadd.f32 1e-05, %v2757_v6 }
0x15da   :  { %v6397_v40 = vpop.permute.xlu0 %2767 }
0x15db   :  { %5299 = vrsqrt.f32 %v2760_v63 }
0x15dc   :  { %5301 = vrsqrt.f32 %v3013_v20 }
0x15dd   :  { %5303 = vrsqrt.f32 %v3014_v48 }
0x15de   :  { %5305 = vrsqrt.f32 %v3015_v17 }
0x15e1   :  { %v5296_v18 = vpop.eup %5295 }
0x15e2   :  { %v5298_v34 = vpop.eup %5297  ;;  %v2765_v35 = vmul.f32 %v5296_v18, %v2741_v15 }
0x15e3   :  { %v2764_v49 = vmul.f32 %v5298_v34, %v2740_v36 }
0x15e4   :  { %v2771_v52 = vmul.f32 %v6397_v40, %v2765_v35 }
0x15e5   :  { %v5300_v41 = vpop.eup %5299  ;;  %v2770_v46 = vmul.f32 %v6397_v40, %v2764_v49 }
0x15e6   :  { %v2766_v25 = vmul.f32 %v5300_v41, %v2742_v2  ;;  %v5302_v54 = vpop.eup %5301  ;;  %v2777_v15 = vadd.f32 %v6399_v0, %v2771_v52 }
0x15e7   :  { %v2776_v44 = vadd.f32 %v6399_v0, %v2770_v46  ;;  %v3019_v36 = vmul.f32 %v5302_v54, %v6355_v43  ;;  %v5304_v42 = vpop.eup %5303 }
0x15e8   :  { %v2772_v56 = vmul.f32 %v6397_v40, %v2766_v25  ;;  %v3020_v43 = vmul.f32 %v5304_v42, %v6361_v39  ;;  %v5306_v26 = vpop.eup %5305 }
0x15e9   :  { %4741 = vmatmul.mubr.msk.f32.vlgmr.msra.gmra.mrb[58].mxu1 %vm82_vm0, %v2776_v44  ;;  %v3022_v2 = vmul.f32 %v3019_v36, %v6110_v5 }
0x15ea   :  { %4743 = vmatprep.mubr.msk.f32.mxu1 %vm5417_vm2, %v5418_v33  ;;  %5021 = vmatpush3.bf16.msra.mxu1 %v6121_v45  ;;  %v2778_v45 = vadd.f32 %v6399_v0, %v2772_v56  ;;  %v3023_v57 = vmul.f32 %v3020_v43, %v6110_v5 }
0x15eb   :  { %5022 = vmatprep.subr.bf16.mxu1 %v5416_v29  ;;  %v3025_v50 = vadd.f32 %v3022_v2, %v6149_v30 }
0x15ec   :  { %v3026_v39 = vadd.f32 %v3023_v57, %v6149_v30 }
0x15ed   :  { %4744 = vmatmul.mubr.msk.f32.gmra.mrb[60].mxu1 %vm82_vm0, %v2777_v15 }
0x15ee   :  { %4746 = vmatprep.mubr.msk.f32.mxu1 %vm5417_vm2, %v5418_v33  ;;  %5024 = vmatpush3.bf16.msra.mxu1 %v6136_v53  ;;  %v3021_v53 = vmul.f32 %v5306_v26, %v6352_v19  ;;  %v62_v19 = vld [vmem:[%s6688_s4 + $0x60] sm:$0xff] }
0x15ef   :  { %5025 = vmatprep.subr.bf16.mxu1 %v5416_v29 }
0x15f0   :  { %v3024_v58 = vmul.f32 %v3021_v53, %v6110_v5  ;;  %v63_v5 = vld [vmem:[%s6688_s4 + $0x68] sm:$0xff] }
0x15f1   :  { %4747 = vmatmul.mubr.msk.f32.gmra.mrb[62].mxu1 %vm82_vm0, %v2778_v45  ;;  %v6444_v4 = vpack.c.bf16 %v63_v5, %v62_v19 }
0x15f2   :  { %4774 = vmatprep.mubr.msk.f32.mxu1 %vm5417_vm2, %v5418_v33  ;;  %v3027_v7 = vadd.f32 %v3024_v58, %v6149_v30  ;;  %v64_v30 = vld [vmem:[%s6688_s4 + $0x70] sm:$0xff] }
0x15f3   :  { %5015 = vmatpush3.bf16.xpose.msra.mxu0 %v6444_v4  ;;  %v6454_v61 = vpack.c.bf16 %v65_v21, %v64_v30 }
0x15f4   :  { %5016 = vmatprep.subr.bf16.mxu0 %v5416_v29 }
0x15f5   :  { %4775 = vmatmul.mubr.msk.f32.vlgmr.msra.gmra.mrb[64].mxu1 %vm82_vm0, %v3025_v50 }
0x15f6   :  { %4777 = vmatprep.mubr.msk.f32.mxu1 %vm5417_vm2, %v5418_v33 }
0x15f9   :  { %4778 = vmatmul.mubr.msk.f32.gmra.mrb[66].mxu1 %vm82_vm0, %v3026_v39 }
0x15fa   :  { %4780 = vmatprep.mubr.msk.f32.mxu1 %vm5417_vm2, %v5418_v33 }
0x15fb   :  { %5018 = vmatpush3.bf16.xpose.msra.mxu0 %v6454_v61 }
0x15fc   :  { %5029 = vmatprep.subr.bf16.mxu0 %v5416_v29 }
0x15fd   :  { %4781 = vmatmul.mubr.msk.f32.gmra.mrb[68].mxu1 %vm82_vm0, %v3027_v7 }
0x15fe   :  { %4789 = vmatprep.mubr.msk.f32.mxu1 %vm5417_vm2, %v5418_v33 }
0x16bc   :  { %v2858_v10 = vpop.f32.mrb[58].mxu1 }
0x16bd   :  { %v2859_v16 = vadd.f32 %v2858_v10, %v6465_v23  ;;  %v4742_v32 = vpop.f32.mrb[59].mxu1 }
0x16bf   :  { %v2872_v3 = vmul.f32 %v2859_v16, %v2859_v16 }
0x16c0   :  { %v2863_v62 = vpop.f32.mrb[60].mxu1 }
0x16c1   :  { %v2875_v13 = vmul.f32 %v2872_v3, %v2859_v16  ;;  %v2864_v27 = vadd.f32 %v2863_v62, %v6465_v23  ;;  %v4745_v47 = vpop.f32.mrb[61].mxu1 }
0x16c3   :  { %v2878_v6 = vmul.f32 0.044715, %v2875_v13  ;;  %v2873_v63 = vmul.f32 %v2864_v27, %v2864_v27 }
0x16c4   :  { %v2868_v20 = vpop.f32.mrb[62].mxu1 }
0x16c5   :  { %v2881_v8 = vadd.f32 %v2878_v6, %v2859_v16  ;;  %v2876_v12 = vmul.f32 %v2873_v63, %v2864_v27  ;;  %v2869_v48 = vadd.f32 %v2868_v20, %v6465_v23  ;;  %v4748_v18 = vpop.f32.mrb[63].mxu1 }
0x16c7   :  { %v2884_v34 = vmul.f32 0.7978846, %v2881_v8  ;;  %v2879_v17 = vmul.f32 0.044715, %v2876_v12  ;;  %v2874_v49 = vmul.f32 %v2869_v48, %v2869_v48 }
0x16c8   :  { %v3103_v35 = vpop.f32.mrb[64].mxu1 }
0x16c9   :  { %5307 = vtanh.f32 %v2884_v34  ;;  %v2882_v41 = vadd.f32 %v2879_v17, %v2864_v27  ;;  %v2877_v46 = vmul.f32 %v2874_v49, %v2869_v48  ;;  %v4776_v44 = vpop.f32.mrb[65].mxu1  ;;  %v3104_v15 = vadd.f32 %v3103_v35, %v6176_v60 }
0x16cb   :  { %v2885_v52 = vmul.f32 0.7978846, %v2882_v41  ;;  %v2880_v25 = vmul.f32 0.044715, %v2877_v46 }
0x16cc   :  { %v3108_v54 = vpop.f32.mrb[66].mxu1 }
0x16cd   :  { %v2883_v36 = vadd.f32 %v2880_v25, %v2869_v48  ;;  %v6472_v56 = vadd.f32 %v3108_v54, %v6176_v60  ;;  %v4779_v42 = vpop.f32.mrb[67].mxu1  ;;  %5309 = vtanh.f32 %v2885_v52 }
0x16cf   :  { %v2886_v2 = vmul.f32 0.7978846, %v2883_v36  ;;  %v6475_v45 = vpack.i.bf16 %v6472_v56, %v3104_v15 }
0x16d0   :  { %v3113_v43 = vpop.f32.mrb[68].mxu1 }
0x16d1   :  { %5167 = vrot.lane.b32.xlu0 %v6475_v45, %s5421_s20  ;;  %5162 = vrot.lane.b32.xlu1 %v6475_v45, %s5419_s18  ;;  %v4782_v26 = vpop.f32.mrb[69].mxu1  ;;  %5311 = vtanh.f32 %v2886_v2  ;;  %v6482_v57 = vadd.f32 %v3113_v43, %v6176_v60 }
0x16d2   :  { %v6540_v26 = vld [vmem:[%s6685_s1 + $0x28] sm:$0x1] }
0x16d3   :  { %v5308_v50 = vpop.eup %5307 }
0x16d4   :  { %v2890_v53 = vadd.f32 1.0, %v5308_v50 }
0x16d5   :  { %3338 = vrot.lane.b32.xlu0 %v3104_v15, %s5422_s27  ;;  %3124 = vrot.lane.b32.xlu1 %v6482_v57, %s5419_s18 }
0x16d6   :  { %v2893_v39 = vmul.f32 0.5, %v2890_v53 }
0x16d7   :  { %v5310_v58 = vpop.eup %5309 }
0x16d8   :  { %v2896_v7 = vmul.f32 %v2893_v39, %v2859_v16  ;;  %v2891_v19 = vadd.f32 1.0, %v5310_v58 }
0x16d9   :  { %3348 = vrot.lane.b32.xlu1 %v6482_v57, %s5421_s20 }
0x16da   :  { %4758 = vmatmul.mubr.f32.vlgmr.msra.gmra.mrb[74].mxu0 %v2896_v7  ;;  %v2894_v5 = vmul.f32 0.5, %v2891_v19 }
0x16db   :  { %v5312_v30 = vpop.eup %5311  ;;  %4760 = vmatprep.mubr.msk.f32.mxu0 %vm5417_vm2, %v5418_v33 }
0x16dc   :  { %v2897_v60 = vmul.f32 %v2894_v5, %v2864_v27  ;;  %v2892_v21 = vadd.f32 1.0, %v5312_v30 }
0x16dd   :  { %5172 = vrot.lane.b32.xlu1 %v6475_v45, %s5420_s19 }
0x16de   :  { %4761 = vmatmul.mubr.f32.gmra.mrb[76].mxu0 %v2897_v60  ;;  %v2895_v28 = vmul.f32 0.5, %v2892_v21 }
0x16df   :  { %4763 = vmatprep.mubr.msk.f32.mxu0 %vm5417_vm2, %v5418_v33 }
0x16e0   :  { %v2898_v10 = vmul.f32 %v2895_v28, %v2869_v48 }
0x16e2   :  { %4764 = vmatmul.mubr.f32.gmra.mrb[78].mxu0 %v2898_v10 }
0x16e3   :  { %4804 = vmatprep.mubr.msk.f32.mxu0 %vm5417_vm2, %v5418_v33 }
0x1743   :  { %v5163_v16 = vpop.permute.xlu1 %5162  ;;  %v5168_v27 = vpop.permute.xlu0 %5167 }
0x1744   :  { %v5165_v32 = vunpack.i.h.bf16 %v5163_v16  ;;  %v5164_v3 = vunpack.i.l.bf16 %v5163_v16  ;;  %v5170_v6 = vunpack.i.h.bf16 %v5168_v27  ;;  %v5169_v63 = vunpack.i.l.bf16 %v5168_v27 }
0x1746   :  { %v5026_v62 = vpack.c.bf16 %v5165_v32, %v5164_v3  ;;  %v5033_v48 = vpack.c.bf16 %v5170_v6, %v5169_v63 }
0x1747   :  { %v3125_v13 = vpop.permute.xlu1 %3124  ;;  %v3339_v14 = vpop.permute.xlu0 %3338 }
0x1748   :  { %5028 = vmatpush3.bf16.xpose.msk.msra.mxu1 %vm5588_vm4, %v5026_v62 }
0x1749   :  { %4787 = vmatprep.subr.mxu1 %v5418_v33 }
0x174b   :  { %v3349_v47 = vpop.permute.xlu1 %3348 }
0x174f   :  { %v5173_v20 = vpop.permute.xlu1 %5172 }
0x1750   :  { %v5175_v8 = vunpack.i.h.bf16 %v5173_v20  ;;  %v5174_v12 = vunpack.i.l.bf16 %v5173_v20  ;;  %4788 = vmatpush3.xpose.msk.msra.mxu1 %vm240_vm3, %v3125_v13 }
0x1751   :  { %5032 = vmatprep.subr.bf16.mxu1 %v5416_v29 }
0x1752   :  { %v5030_v18 = vpack.c.bf16 %v5175_v8, %v5174_v12 }
0x1753   :  { %4790 = vmatmul.mubr.msk.f32.vlgmr.msra.gmra.mrb[70].mxu1 %vm240_vm3, %v3104_v15 }
0x1754   :  { %5031 = vmatpush3.bf16.msra.mxu0 %v5030_v18  ;;  %5035 = vmatpush3.bf16.xpose.msk.msra.mxu1 %vm5588_vm4, %v5033_v48 }
0x1755   :  { %4792 = vmatprep.mubr.msk.f32.mxu1 %vm5417_vm2, %v5418_v33  ;;  %4817 = vmatprep.subr.mxu1 %v5418_v33 }
0x1756   :  { %4802 = vmatprep.subr.mxu0 %v5418_v33 }
0x1757   :  { %4793 = vmatmul.mubr.msk.f32.gmra.mrb[72].mxu1 %vm240_vm3, %v6472_v56 }
0x1758   :  { %4795 = vmatprep.mubr.msk.f32.mxu1 %vm5417_vm2, %v5418_v33 }
0x175b   :  { %4796 = vmatmul.mubr.msk.f32.gmra.mrb[74].mxu1 %vm240_vm3, %v6482_v57 }
0x175c   :  { %4818 = vmatpush3.xpose.msk.msra.mxu1 %vm240_vm3, %v3349_v47  ;;  %4819 = vmatprep.mubr.msk.f32.mxu1 %vm5417_vm2, %v5418_v33 }
0x175d   :  { %5039 = vmatprep.subr.bf16.mxu1 %v5416_v29 }
0x175f   :  { %4820 = vmatmul.mubr.msk.f32.vlgmr.msra.gmra.mrb[76].mxu1 %vm240_vm3, %v3339_v14 }
0x1760   :  { %5041 = vmatpush3.bf16.msra.mxu1 %v6291_v31  ;;  %4822 = vmatprep.mubr.msk.f32.mxu1 %vm5417_vm2, %v5418_v33  ;;  %v5362_v31 = vld [vmem:[%s6685_s1 + $0x18] sm:$0xff] }
0x1761   :  { %5042 = vmatprep.subr.bf16.mxu1 %v5416_v29 }
0x1764   :  { %5044 = vmatpush3.bf16.msra.mxu1 %v6295_v37  ;;  %v6534_v37 = vld [vmem:[%s6685_s1 + $0x20] sm:$0xff] }
0x1765   :  { %5051 = vmatprep.subr.bf16.mxu1 %v5416_v29 }
0x17ad   :  { %v6526_v34 = vpop.f32.mrb[74].mxu0 }
0x17ae   :  { %v4759_v17 = vpop.f32.mrb[75].mxu0 }
0x17b1   :  { %v2970_v49 = vpop.f32.mrb[76].mxu0 }
0x17b2   :  { %v4762_v35 = vpop.f32.mrb[77].mxu0 }
0x17b5   :  { %v2974_v41 = vpop.f32.mrb[78].mxu0 }
0x17b6   :  { %v4765_v46 = vpop.f32.mrb[79].mxu0 }
0x1826   :  { %v3204_v44 = vpop.f32.mrb[70].mxu1 }
0x1827   :  { %v3205_v52 = vadd.f32 %v5362_v31, %v3204_v44  ;;  %v4791_v25 = vpop.f32.mrb[71].mxu1 }
0x1829   :  { %v3218_v54 = vmul.f32 1.442695, %v3205_v52 }
0x182a   :  { %v3209_v36 = vpop.f32.mrb[72].mxu1 }
0x182b   :  { %5313 = vpow2.f32 %v3218_v54  ;;  %v3210_v15 = vadd.f32 %v6534_v37, %v3209_v36  ;;  %v4794_v42 = vpop.f32.mrb[73].mxu1 }
0x182d   :  { %v3220_v2 = vmul.f32 1.442695, %v3210_v15 }
0x182e   :  { %v3214_v43 = vpop.f32.mrb[74].mxu1 }
0x182f   :  { %5315 = vpow2.f32 %v3220_v2  ;;  %v3215_v50 = vadd.f32 %v6540_v26, %v3214_v43  ;;  %v4797_v53 = vpop.f32.mrb[75].mxu1 }
0x1831   :  { %v3222_v39 = vmul.f32 1.442695, %v3215_v50 }
0x1832   :  { %v3428_v58 = vpop.f32.mrb[76].mxu1 }
0x1833   :  { %5317 = vpow2.f32 %v3222_v39  ;;  %v3429_v7 = vadd.f32 %v5362_v31, %v3428_v58  ;;  %v4821_v19 = vpop.f32.mrb[77].mxu1 }
0x1835   :  { %v5314_v5 = vpop.eup %5313  ;;  %v3442_v30 = vmul.f32 1.442695, %v3429_v7 }
0x1836   :  { %v3224_v60 = vsel %vm339_vm6, %v5314_v5, 0.0 }
0x1837   :  { %5319 = vpow2.f32 %v3442_v30  ;;  %3225 = vadd.xlane.f32.xlu1 %v3224_v60 }
0x1839   :  { %v5316_v21 = vpop.eup %5315 }
0x183a   :  { %v3227_v28 = vsel %vm339_vm6, %v5316_v21, 0.0 }
0x183b   :  { %3228 = vadd.xlane.f32.xlu0 %v3227_v28 }
0x183d   :  { %v5318_v10 = vpop.eup %5317 }
0x183e   :  { %v3230_v16 = vsel %vm346_vm7, %v5318_v10, 0.0 }
0x183f   :  { %3231 = vadd.xlane.f32.xlu0 %v3230_v16 }
0x1841   :  { %v5320_v32 = vpop.eup %5319 }
0x1842   :  { %v3448_v3 = vsel %vm339_vm6, %v5320_v32, 0.0 }
0x1843   :  { %3449 = vadd.xlane.f32.xlu0 %v3448_v3 }
0x1848   :  { %5177 = vrot.lane.b32.xlu1 %v6475_v45, %s5423_s28 }
0x184c   :  { %3467 = vrot.lane.b32.xlu1 %v6482_v57, %s5423_s28 }
0x1850   :  { %3340 = vrot.lane.b32.xlu1 %v6472_v56, %s5422_s27 }
0x1859   :  { %3243 = vrot.lane.b32.xlu0 %v6482_v57, %s5420_s19 }
0x185d   :  { %3342 = vrot.lane.b32.xlu0 %v6482_v57, %s5422_s27  ;;  %s5426_s27 = smov [#allocation5]  }
0x185e   :  { %s4035_s28 = sshll.u32 %s5426_s27, 4  ;;  %s4036_s28 = int_to_ptr.vmem [resolvable:$true] %s4035_s28 }
0x185f   :  { %p5392_p9 = scmp.lt.s32.totalorder %s4036_s28, %s4036_s28 }
0x18c4   :  { %v3226_v62 = vpop.xlane.xlu1 %3225 }
0x18c5   :  { %5321 = vrcp.f32 %v3226_v62 }
0x18c8   :  { %v5178_v13 = vpop.permute.xlu1 %5177  ;;  %v3229_v27 = vpop.xlane.xlu0 %3228 }
0x18c9   :  { %5323 = vrcp.f32 %v3229_v27  ;;  %v5180_v8 = vunpack.i.h.bf16 %v5178_v13  ;;  %v5179_v12 = vunpack.i.l.bf16 %v5178_v13 }
0x18cb   :  { %v5037_v18 = vpack.c.bf16 %v5180_v8, %v5179_v12 }
0x18cc   :  { %v3468_v47 = vpop.permute.xlu1 %3467  ;;  %v3232_v6 = vpop.xlane.xlu0 %3231 }
0x18cd   :  { %5325 = vrcp.f32 %v3232_v6 }
0x18cf   :  { %v5322_v20 = vpop.eup %5321 }
0x18d0   :  { %v3341_v45 = vpop.permute.xlu1 %3340  ;;  %v3450_v63 = vpop.xlane.xlu0 %3449  ;;  %v3236_v56 = vmul.f32 %v5322_v20, %v5314_v5 }
0x18d1   :  { %4823 = vmatmul.mubr.msk.f32.gmra.mrb[78].mxu1 %vm240_vm3, %v3341_v45  ;;  %5327 = vrcp.f32 %v3450_v63 }
0x18d2   :  { %4825 = vmatprep.mubr.msk.f32.mxu1 %vm5417_vm2, %v5418_v33 }
0x18d3   :  { %v5324_v48 = vpop.eup %5323 }
0x18d4   :  { %v3244_v57 = vpop.permute.xlu0 %3243  ;;  %v3237_v17 = vmul.f32 %v5324_v48, %v5316_v21 }
0x18d5   :  { %4803 = vmatpush3.msk.msra.mxu0 %vm373_vm5, %v3244_v57 }
0x18d6   :  { %4805 = vmatmul.mubr.msk.f32.vlgmr.msra.gmra.mrb[80].mxu0 %vm339_vm6, %v3236_v56  ;;  %5036 = vmatprep.subr.bf16.mxu0 %v5416_v29 }
0x18d7   :  { %5038 = vmatpush3.bf16.msra.mxu0 %v5037_v18  ;;  %4807 = vmatprep.mubr.msk.f32.mxu0 %vm5417_vm2, %v5418_v33  ;;  %v5326_v49 = vpop.eup %5325 }
0x18d8   :  { %v3343_v14 = vpop.permute.xlu0 %3342  ;;  %4832 = vmatprep.subr.mxu0 %v5418_v33  ;;  %v3238_v35 = vmul.f32 %v5326_v49, %v5318_v10 }
0x18d9   :  { %4826 = vmatmul.mubr.msk.f32.gmra.mrb[80].mxu1 %vm240_vm3, %v3343_v14 }
0x18da   :  { %4808 = vmatmul.mubr.msk.f32.gmra.mrb[82].mxu0 %vm339_vm6, %v3237_v17  ;;  %4851 = vmatprep.mubr.msk.f32.mxu1 %vm5417_vm2, %v5418_v33 }
0x18db   :  { %4833 = vmatpush3.msk.msra.mxu0 %vm373_vm5, %v3468_v47  ;;  %4810 = vmatprep.mubr.msk.f32.mxu0 %vm5417_vm2, %v5418_v33  ;;  %v5328_v41 = vpop.eup %5327 }
0x18dc   :  { %5045 = vmatprep.subr.bf16.mxu0 %v5416_v29  ;;  %v3460_v46 = vmul.f32 %v5328_v41, %v5320_v32 }
0x18de   :  { %4811 = vmatmul.mubr.msk.f32.gmra.mrb[84].mxu0 %vm339_vm6, %v3238_v35 }
0x18df   :  { %4834 = vmatprep.mubr.msk.f32.mxu0 %vm5417_vm2, %v5418_v33 }
0x18e2   :  { %4835 = vmatmul.mubr.msk.f32.vlgmr.msra.gmra.mrb[86].mxu0 %vm339_vm6, %v3460_v46 }
0x18e3   :  { %4837 = vmatprep.mubr.msk.f32.mxu0 %vm5417_vm2, %v5418_v33  ;;  %5047 = vmatpush3.bf16.msra.mxu0 %v6383_v9 }
0x18e4   :  { %5048 = vmatprep.subr.bf16.mxu0 %v5416_v29 }
0x18e7   :  { %5050 = vmatpush3.bf16.msra.mxu0 %v6393_v38 }
0x18e8   :  { %5057 = vmatprep.subr.bf16.mxu0 %v5416_v29 }
0x19a4   :  { %v3433_v44 = vpop.f32.mrb[78].mxu1 }
0x19a5   :  { %v3434_v31 = vadd.f32 %v6534_v37, %v3433_v44  ;;  %v4824_v52 = vpop.f32.mrb[79].mxu1 }
0x19a7   :  { %v3444_v25 = vmul.f32 1.442695, %v3434_v31 }
0x19a9   :  { %5329 = vpow2.f32 %v3444_v25  ;;  %v3324_v54 = vpop.f32.mrb[80].mxu0 }
0x19aa   :  { %v4806_v36 = vpop.f32.mrb[81].mxu0 }
0x19ac   :  { %v3438_v15 = vpop.f32.mrb[80].mxu1 }
0x19ad   :  { %v3329_v42 = vpop.f32.mrb[82].mxu0  ;;  %v4827_v2 = vpop.f32.mrb[81].mxu1  ;;  %v3439_v37 = vadd.f32 %v6540_v26, %v3438_v15 }
0x19ae   :  { %v4809_v43 = vpop.f32.mrb[83].mxu0 }
0x19af   :  { %v3446_v7 = vmul.f32 1.442695, %v3439_v37 }
0x19b1   :  { %v3334_v50 = vpop.f32.mrb[84].mxu0  ;;  %5331 = vpow2.f32 %v3446_v7 }
0x19b2   :  { %v4812_v9 = vpop.f32.mrb[85].mxu0 }
0x19b3   :  { %v5330_v53 = vpop.eup %5329 }
0x19b4   :  { %v3451_v39 = vsel %vm339_vm6, %v5330_v53, 0.0 }
0x19b5   :  { %3452 = vadd.xlane.f32.xlu0 %v3451_v39  ;;  %v3548_v38 = vpop.f32.mrb[86].mxu0 }
0x19b6   :  { %3565 = vrot.lane.b32.xlu1 %v3548_v38, %s5425_s30  ;;  %v4836_v58 = vpop.f32.mrb[87].mxu0 }
0x19bb   :  { %v5332_v19 = vpop.eup %5331 }
0x19bc   :  { %v3454_v5 = vsel %vm346_vm7, %v5332_v19, 0.0 }
0x19da   :  { %3455 = vadd.xlane.f32.xlu1 %v3454_v5 }
0x1a28   :  { %v3566_v30 = vpop.permute.xlu1 %3565 }
0x1a29   :  { %v3574_v60 = vsel %vm240_vm3, %v3324_v54, %v3566_v30 }
0x1a2a   :  { %4852 = vmatmul.mubr.msk.f32.vlgmr.msra.gmra.mrb[82].mxu1 %vm82_vm0, %v3574_v60 }
0x1a2b   :  { %4854 = vmatprep.mubr.msk.f32.mxu1 %vm5417_vm2, %v5418_v33  ;;  %5053 = vmatpush3.bf16.xpose.msra.mxu1 %v6444_v4 }
0x1a2c   :  { %5054 = vmatprep.subr.bf16.mxu1 %v5416_v29 }
0x1a33   :  { %5056 = vmatpush3.bf16.xpose.msra.mxu1 %v6454_v61 }
0x1a42   :  { %v3453_v26 = vpop.xlane.xlu0 %3452 }
0x1a43   :  { %5333 = vrcp.f32 %v3453_v26 }
0x1a4d   :  { %v5334_v21 = vpop.eup %5333 }
0x1a4e   :  { %v3461_v28 = vmul.f32 %v5334_v21, %v5330_v53 }
0x1a50   :  { %4838 = vmatmul.mubr.msk.f32.gmra.mrb[88].mxu0 %vm339_vm6, %v3461_v28 }
0x1a51   :  { %4840 = vmatprep.mubr.msk.f32.mxu0 %vm5417_vm2, %v5418_v33 }
0x1a67   :  { %v3456_v10 = vpop.xlane.xlu1 %3455 }
0x1a68   :  { %5335 = vrcp.f32 %v3456_v10 }
0x1a72   :  { %v5336_v16 = vpop.eup %5335 }
0x1a73   :  { %v3462_v32 = vmul.f32 %v5336_v16, %v5332_v19 }
0x1a75   :  { %4841 = vmatmul.mubr.msk.f32.gmra.mrb[90].mxu0 %vm339_vm6, %v3462_v32 }
0x1a76   :  { %4868 = vmatprep.mubr.msk.f32.mxu0 %vm5417_vm2, %v5418_v33 }
0x1afd   :  { %v3652_v4 = vpop.f32.mrb[82].mxu1 }
0x1afe   :  { %v3666_v61 = vadd.f32 %v3652_v4, %v6337_v1  ;;  %v4853_v3 = vpop.f32.mrb[83].mxu1 }
0x1aff   :  { %v2980_v3 = vsub.s32 7, %v5501_v22  ;;  %v6646_v22 = vld [vmem:[%s6689_s5 + $0x8] ss:$0 sm:$0xff] }
0x1b00   :  { %v6604_v62 = vadd.f32 %v3666_v61, %v6316_v59 }
0x1b02   :  { %v3672_v13 = vsel %vm82_vm0, %v6604_v62, 0.0 }
0x1b03   :  { %3673 = vadd.xlane.f32.xlu0 %v3672_v13 }
0x1b23   :  { %v3553_v27 = vpop.f32.mrb[88].mxu0 }
0x1b24   :  { %v4839_v47 = vpop.f32.mrb[89].mxu0 }
0x1b25   :  { %v2981_v47 = vrot.slane %v6462_v55, %v2980_v3 }
0x1b48   :  { %v3558_v6 = vpop.f32.mrb[90].mxu0 }
0x1b49   :  { %3569 = vrot.lane.b32.xlu1 %v3558_v6, %s5425_s30  ;;  %v4842_v45 = vpop.f32.mrb[91].mxu0 }
0x1b90   :  { %v3674_v63 = vpop.xlane.xlu0 %3673 }
0x1b91   :  { %v3681_v20 = vmul.f32 0.03125, %v3674_v63 }
0x1b93   :  { %v3684_v8 = vsub.f32 %v6604_v62, %v3681_v20 }
0x1b95   :  { %v3687_v12 = vmul.f32 %v3684_v8, %v3684_v8 }
0x1b97   :  { %v3690_v1 = vsel %vm82_vm0, %v3687_v12, 0.0 }
0x1b98   :  { %3691 = vadd.xlane.f32.xlu0 %v3690_v1 }
0x1bae   :  { %3567 = vrot.lane.b32.xlu0 %v3553_v27, %s5425_s30  ;;  %v2977_v27 = vadd.f32 %v6526_v34, %v6320_v24  ;;  %s5387_s30 = scalar_lea.vmem %s4036_s28, 32 }
0x1baf   :  { %p5388_p8 = scmp.ne.s32.totalorder %s4036_s28, %s5387_s30  ;;  %p5393_p10 = scmp.lt.s32.totalorder %s5387_s30, %s5387_s30 }
0x1bb0   :  { %v2982_v20 = vadd.f32 %v2981_v47, %v2977_v27 }
0x1bb1   :  { %p5394_p11 = por %p5393_p10, %p5392_p9 }
0x1bb3   :  { %p5395_p12 = pnand %p5394_p11, %p5388_p8 }
0x1bbb   :  { %v3570_v17 = vpop.permute.xlu1 %3569 }
0x1bbc   :  { %v3576_v49 = vsel %vm240_vm3, %v3334_v50, %v3570_v17 }
0x1c25   :  { %v3692_v56 = vpop.xlane.xlu0 %3691 }
0x1c26   :  { %v3699_v57 = vmul.f32 0.03125, %v3692_v56 }
0x1c28   :  { %v3702_v48 = vadd.f32 1e-05, %v3699_v57 }
0x1c29   :  { %v3568_v18 = vpop.permute.xlu0 %3567 }
0x1c2a   :  { %5337 = vrsqrt.f32 %v3702_v48  ;;  %v3575_v14 = vsel %vm240_vm3, %v3329_v42, %v3568_v18 }
0x1c2b   :  { %4855 = vmatmul.mubr.msk.f32.gmra.mrb[84].mxu1 %vm82_vm0, %v3575_v14 }
0x1c2c   :  { %4857 = vmatprep.mubr.msk.f32.mxu1 %vm5417_vm2, %v5418_v33 }
0x1c2f   :  { %4858 = vmatmul.mubr.msk.f32.gmra.mrb[86].mxu1 %vm82_vm0, %v3576_v49 }
0x1c30   :  { %4885 = vmatprep.mubr.msk.f32.mxu1 %vm5417_vm2, %v5418_v33 }
0x1c34   :  { %v5338_v35 = vpop.eup %5337 }
0x1c35   :  { %v3708_v41 = vmul.f32 %v5338_v35, %v3684_v8 }
0x1c37   :  { %v3711_v46 = vmul.f32 %v3708_v41, %v6397_v40 }
0x1c39   :  { %v3714_v44 = vadd.f32 %v3711_v46, %v6399_v0 }
0x1c3b   :  { %4869 = vmatmul.mubr.msk.f32.vlgmr.msra.gmra.mrb[92].mxu0 %vm82_vm0, %v3714_v44 }
0x1c3c   :  { %4871 = vmatprep.mubr.msk.f32.mxu0 %vm5417_vm2, %v5418_v33 }
0x1cfe   :  { %v3657_v31 = vpop.f32.mrb[84].mxu1 }
0x1cff   :  { %v3667_v52 = vadd.f32 %v3657_v31, %v6345_v51  ;;  %v4856_v25 = vpop.f32.mrb[85].mxu1 }
0x1d01   :  { %v3670_v54 = vadd.f32 %v3667_v52, %v6316_v59 }
0x1d02   :  { %v3662_v36 = vpop.f32.mrb[86].mxu1 }
0x1d03   :  { %v3668_v15 = vadd.f32 %v3662_v36, %v6331_v11  ;;  %v4859_v42 = vpop.f32.mrb[87].mxu1  ;;  %v3675_v2 = vsel %vm82_vm0, %v3670_v54, 0.0 }
0x1d04   :  { %3676 = vadd.xlane.f32.xlu1 %v3675_v2 }
0x1d05   :  { %v3671_v43 = vadd.f32 %v3668_v15, %v6316_v59 }
0x1d07   :  { %v3678_v50 = vsel %vm89_vm1, %v3671_v43, 0.0 }
0x1d08   :  { %3679 = vadd.xlane.f32.xlu0 %v3678_v50 }
0x1d0e   :  { %v3792_v9 = vpop.f32.mrb[92].mxu0 }
0x1d0f   :  { %v3793_v53 = vadd.f32 %v3792_v9, %v6465_v23  ;;  %v4870_v39 = vpop.f32.mrb[93].mxu0 }
0x1d11   :  { %v3806_v51 = vmul.f32 %v3793_v53, %v3793_v53 }
0x1d13   :  { %v3809_v38 = vmul.f32 %v3806_v51, %v3793_v53 }
0x1d15   :  { %v3812_v58 = vmul.f32 0.044715, %v3809_v38 }
0x1d17   :  { %v3815_v37 = vadd.f32 %v3812_v58, %v3793_v53 }
0x1d19   :  { %v3818_v7 = vmul.f32 0.7978846, %v3815_v37 }
0x1d1b   :  { %5339 = vtanh.f32 %v3818_v7 }
0x1d25   :  { %v5340_v11 = vpop.eup %5339 }
0x1d26   :  { %v3824_v19 = vadd.f32 1.0, %v5340_v11 }
0x1d28   :  { %v3827_v5 = vmul.f32 0.5, %v3824_v19 }
0x1d2a   :  { %v3830_v30 = vmul.f32 %v3827_v5, %v3793_v53 }
0x1d2c   :  { %4886 = vmatmul.mubr.f32.vlgmr.msra.gmra.mrb[88].mxu1 %v3830_v30 }
0x1d2d   :  { %4888 = vmatprep.mubr.msk.f32.mxu1 %vm5417_vm2, %v5418_v33 }
0x1d91   :  { %v3677_v59 = vpop.xlane.xlu1 %3676 }
0x1d92   :  { %v3682_v60 = vmul.f32 0.03125, %v3677_v59 }
0x1d94   :  { %v3685_v26 = vsub.f32 %v3670_v54, %v3682_v60 }
0x1d95   :  { %v3680_v21 = vpop.xlane.xlu0 %3679 }
0x1d96   :  { %v3683_v28 = vmul.f32 0.03125, %v3680_v21  ;;  %v3688_v10 = vmul.f32 %v3685_v26, %v3685_v26 }
0x1d98   :  { %v3686_v16 = vsub.f32 %v3671_v43, %v3683_v28  ;;  %v3693_v32 = vsel %vm82_vm0, %v3688_v10, 0.0 }
0x1d99   :  { %3694 = vadd.xlane.f32.xlu0 %v3693_v32 }
0x1d9a   :  { %v3689_v4 = vmul.f32 %v3686_v16, %v3686_v16 }
0x1d9c   :  { %v3696_v61 = vsel %vm89_vm1, %v3689_v4, 0.0 }
0x1d9d   :  { %3697 = vadd.xlane.f32.xlu1 %v3696_v61 }
0x1dff   :  { %v3899_v13 = vpop.f32.mrb[88].mxu1 }
0x1e00   :  { %v3911_v6 = vadd.f32 %v3899_v13, %v6604_v62  ;;  %v4887_v45 = vpop.f32.mrb[89].mxu1 }
0x1e02   :  { %v3912_v63 = vadd.f32 %v3911_v6, %v2981_v47  ;;  %v46_v47 = vld [vmem:[#allocation2 + $0x40] sm:$0xff]  ;;  %v47_v6 = vld [vmem:[#allocation2 + $0x48] sm:$0xff] }
0x1e03   :  { %v5058_v45 = vpack.c.bf16 %v47_v6, %v46_v47 }
0x1e04   :  { %v3914_v8 = vrot.slane %v3912_v63, 7  ;;  %v49_v63 = vld [vmem:[#allocation2 + $0x58] sm:$0xff] }
0x1e05   :  { %5059 = vmatpush3.bf16.msra.mxu0 %v5058_v45 }
0x1e06   :  { %v3916_v12 = vsel %vm373_vm5, %v2982_v20, %v3914_v8  ;;  %5060 = vmatprep.subr.bf16.mxu0 %v5416_v29 }
0x1e07   :  { %v3918_v1 = vsel %vm3917_vm8, %v3916_v12, 0.0 }
0x1e08   :  { %3919 = vadd.xlane.f32.xlu0 %v3918_v1 }
0x1e1e   :  { %3937 = vrot.lane.b32.xlu0 %v6646_v22, %s5419_s18 }
0x1e26   :  { %v3695_v24 = vpop.xlane.xlu0 %3694 }
0x1e27   :  { %v3700_v55 = vmul.f32 0.03125, %v3695_v24 }
0x1e29   :  { %v3703_v34 = vadd.f32 1e-05, %v3700_v55 }
0x1e2a   :  { %v3698_v62 = vpop.xlane.xlu1 %3697 }
0x1e2b   :  { %5341 = vrsqrt.f32 %v3703_v34  ;;  %v3701_v56 = vmul.f32 0.03125, %v3698_v62 }
0x1e2d   :  { %v3704_v57 = vadd.f32 1e-05, %v3701_v56 }
0x1e2f   :  { %5343 = vrsqrt.f32 %v3704_v57 }
0x1e35   :  { %v5342_v48 = vpop.eup %5341 }
0x1e36   :  { %v3709_v18 = vmul.f32 %v5342_v48, %v3685_v26 }
0x1e38   :  { %v3712_v14 = vmul.f32 %v3709_v18, %v6397_v40  ;;  %v4026_v18 = vld [vmem:[%s6686_s2] sm:$0x3] }
0x1e39   :  { %v5344_v17 = vpop.eup %5343 }
0x1e3a   :  { %v3715_v49 = vadd.f32 %v3712_v14, %v6399_v0  ;;  %v3710_v35 = vmul.f32 %v5344_v17, %v3686_v16 }
0x1e3c   :  { %4872 = vmatmul.mubr.msk.f32.gmra.mrb[94].mxu0 %vm82_vm0, %v3715_v49  ;;  %v3713_v41 = vmul.f32 %v3710_v35, %v6397_v40 }
0x1e3d   :  { %4874 = vmatprep.mubr.msk.f32.mxu0 %vm5417_vm2, %v5418_v33 }
0x1e3e   :  { %v3716_v46 = vadd.f32 %v3713_v41, %v6399_v0 }
0x1e40   :  { %4875 = vmatmul.mubr.msk.f32.gmra.mrb[96].mxu0 %vm82_vm0, %v3716_v46 }
0x1e41   :  { %4902 = vmatprep.mubr.msk.f32.mxu0 %vm5417_vm2, %v5418_v33 }
0x1e95   :  { %v3920_v44 = vpop.xlane.xlu0 %3919 }
0x1e96   :  { %v3921_v31 = vmul.f32 0.03125, %v3920_v44 }
0x1e98   :  { %v3922_v52 = vsub.f32 %v3916_v12, %v3921_v31 }
0x1e99   :  { %v3938_v4 = vpop.permute.xlu0 %3937 }
0x1e9a   :  { %v3923_v25 = vmul.f32 %v3922_v52, %v3922_v52 }
0x1e9c   :  { %v3924_v54 = vsel %vm3917_vm8, %v3923_v25, 0.0 }
0x1e9d   :  { %3925 = vadd.xlane.f32.xlu1 %v3924_v54 }
0x1f0f   :  { %v3797_v36 = vpop.f32.mrb[94].mxu0 }
0x1f10   :  { %v3798_v40 = vadd.f32 %v3797_v36, %v6465_v23  ;;  %v4873_v15 = vpop.f32.mrb[95].mxu0 }
0x1f12   :  { %v3807_v42 = vmul.f32 %v3798_v40, %v3798_v40 }
0x1f13   :  { %v3802_v2 = vpop.f32.mrb[96].mxu0 }
0x1f14   :  { %v3810_v43 = vmul.f32 %v3807_v42, %v3798_v40  ;;  %v3803_v0 = vadd.f32 %v3802_v2, %v6465_v23  ;;  %v4876_v50 = vpop.f32.mrb[97].mxu0 }
0x1f16   :  { %v3813_v9 = vmul.f32 0.044715, %v3810_v43  ;;  %v3808_v53 = vmul.f32 %v3803_v0, %v3803_v0 }
0x1f18   :  { %v3816_v39 = vadd.f32 %v3813_v9, %v3798_v40  ;;  %v3811_v51 = vmul.f32 %v3808_v53, %v3803_v0 }
0x1f1a   :  { %v3819_v38 = vmul.f32 0.7978846, %v3816_v39  ;;  %v3814_v58 = vmul.f32 0.044715, %v3811_v51 }
0x1f1c   :  { %v3817_v37 = vadd.f32 %v3814_v58, %v3803_v0  ;;  %5345 = vtanh.f32 %v3819_v38 }
0x1f1e   :  { %v3820_v7 = vmul.f32 0.7978846, %v3817_v37 }
0x1f20   :  { %5347 = vtanh.f32 %v3820_v7 }
0x1f26   :  { %v5346_v11 = vpop.eup %5345 }
0x1f27   :  { %v3825_v19 = vadd.f32 1.0, %v5346_v11 }
0x1f29   :  { %v3828_v5 = vmul.f32 0.5, %v3825_v19 }
0x1f2a   :  { %v5348_v30 = vpop.eup %5347  ;;  %v3926_v59 = vpop.xlane.xlu1 %3925 }
0x1f2b   :  { %v3927_v60 = vmul.f32 0.03125, %v3926_v59  ;;  %v3831_v26 = vmul.f32 %v3828_v5, %v3798_v40  ;;  %v3826_v21 = vadd.f32 1.0, %v5348_v30 }
0x1f2d   :  { %v3928_v23 = vadd.f32 1e-05, %v3927_v60  ;;  %4889 = vmatmul.mubr.f32.gmra.mrb[90].mxu1 %v3831_v26  ;;  %v3829_v28 = vmul.f32 0.5, %v3826_v21 }
0x1f2e   :  { %4891 = vmatprep.mubr.msk.f32.mxu1 %vm5417_vm2, %v5418_v33  ;;  %v48_v33 = vld [vmem:[#allocation2 + $0x50] sm:$0xff] }
0x1f2f   :  { %5349 = vrsqrt.f32 %v3928_v23  ;;  %v3832_v10 = vmul.f32 %v3829_v28, %v3803_v0  ;;  %v5061_v20 = vpack.c.bf16 %v49_v63, %v48_v33 }
0x1f31   :  { %4892 = vmatmul.mubr.f32.gmra.mrb[92].mxu1 %v3832_v10  ;;  %5062 = vmatpush3.bf16.msra.mxu0 %v5061_v20 }
0x1f39   :  { %v5350_v16 = vpop.eup %5349 }
0x1f3a   :  { %v3930_v32 = vmul.f32 %v5350_v16, %v3922_v52 }
0x1f3c   :  { %v3935_v61 = vmul.f32 %v6646_v22, %v3930_v32 }
0x1f3e   :  { %v3940_v3 = vadd.f32 %v3938_v4, %v3935_v61 }
0x1f40   :  { %v3941_v13 = vmul.f32 %v3940_v3, %v3940_v3 }
0x1f42   :  { %v3942_v27 = vsel %vm3917_vm8, %v3941_v13, 0.0 }
0x1f43   :  { %3943 = vadd.xlane.f32.xlu1 %v3942_v27 }
0x1fd0   :  { %v3944_v8 = vpop.xlane.xlu1 %3943 }
0x1fd1   :  { %5351 = vrsqrt.f32 %v3944_v8 }
0x1fdb   :  { %v5352_v12 = vpop.eup %5351 }
0x1fdc   :  { %v3946_v1 = vmul.f32 %v5352_v12, %v3940_v3 }
0x1fde   :  { %4903 = vmatmul.mubr.msk.f32.vlgmr.msra.gmra.mrb[98].mxu0 %vm82_vm0, %v3946_v1 }
0x2000   :  { %v3904_v22 = vpop.f32.mrb[90].mxu1 }
0x2001   :  { %v4890_v24 = vpop.f32.mrb[91].mxu1 }
0x2004   :  { %v3908_v55 = vpop.f32.mrb[92].mxu1 }
0x2005   :  { %v4893_v34 = vpop.f32.mrb[93].mxu1 }
0x20b1   :  { %v4016_v62 = vpop.f32.mrb[98].mxu0 }
0x20b2   :  { %v4168_v56 = vmul.f32 -1.442695, %v4016_v62  ;;  %v4904_v57 = vpop.f32.mrb[99].mxu0 }
0x20b4   :  { %5353 = vpow2.f32 %v4168_v56 }
0x20be   :  { %v5354_v48 = vpop.eup %5353 }
0x20bf   :  { %v4023_v29 = vadd.f32 1.0, %v5354_v48 }
0x20c1   :  { %5355 = vrcp.f32 %v4023_v29 }
0x20cb   :  { %v5356_v14 = vpop.eup %5355 }
0x20cc   :  { %v4027_v17 = vmul.f32 %v5356_v14, %v4026_v18 }
0x20ce   :  { %4028 = vst [vmem:[#allocation5] sm:$0x3] %v4027_v17 }
0x20cf   :  { %5398 = shalt.err (!%p5395_p12)
}
0x20d0   :  { %s5399_s9 = scalar_lea.hbm %s6690_s6, 32 }
0x20d1   :  { %p5400_p13 = scmp.ne.s32.totalorder %s6690_s6, %s5399_s9  ;;  %p5403_p0 = scmp.lt.u32.totalorder %s5399_s9, %s6690_s6 }
0x20d3   :  { %p5405_p1 = pnand %p5403_p0, %p5400_p13 }
0x20d5   :  { %5408 = shalt.err (!%p5405_p1)
}
0x20d6   :  { %4038 = dma.vmem_to_hbm [thread:$0]  %s4036_s28, 32, %s6690_s6, [#allocation4]  }
0x20d7   :  { %5411 = dma.done.wait [#allocation4], 32  }
0x20d8   :  { %5412 = vsyncadd [#allocation4], 4294967264 }
0x20d9   :  { %4042 = vsyncpa [#allocation3], 1 }
0x20da   :  { %4043 = vsyncpa [#allocation4], 1 }

</bundles_post_ra>
